<compile_context>
chip_gen: v7x
topology: tpu7x:2x2x1
jax: 0.10.0
libtpu: 0.0.40
codegen_flags: <defaults>
</compile_context>

<pallas_src>
import numpy as np

import jax
import jax.numpy as jnp
from jax import lax
from jax.experimental import pallas as pl
from jax.experimental.pallas import tpu as pltpu

NUM_CLASSES = 10


# ----------------------------------------------------------------------------
# Fused LeNet forward kernel (one image per grid step).
# ----------------------------------------------------------------------------
def _lenet_kernel(x_ref, a1_ref, b1_ref, a2_ref, b2_ref,
                  wfc1_ref, bfc1_ref, wfc2_ref, bfc2_ref, wfc3_ref, bfc3_ref,
                  out_ref):
    f32, bf16 = jnp.float32, jnp.bfloat16

    def conv_pool(lhs_for, a_ref):
        """Fused valid-conv + 2x2/stride-2 max-pool (pre-bias, pre-ReLU).

        Returns max over the four pool phases (dh, dw) of
            sum_kh  lhs_for(dh, kh) @ a_ref[dw, kh]
        with f32 accumulation.  lhs rows are pooled output rows, lanes are
        (input W, Cin) interleaved; a_ref[dw, kh] is the Toeplitz-lowered
        filter row kh restricted to output-column phase dw.
        """
        best = None
        for dh in range(2):
            accs = [None, None]
            for kh in range(5):
                lhs = lhs_for(dh, kh).astype(bf16)
                for dw in range(2):
                    d = jnp.dot(lhs, a_ref[dw, kh],
                                preferred_element_type=f32)
                    accs[dw] = d if accs[dw] is None else accs[dw] + d
            cand = jnp.maximum(accs[0], accs[1])
            best = cand if best is None else jnp.maximum(best, cand)
        return best

    # --- conv1 (3->6, 5x5) + ReLU + 2x2 pool ---------------------------------
    # Kept split by pooled-row parity e: p1[e] is (7, 84) f32 with lanes
    # (w, c_out) interleaved (w major) and rows = pooled rows 2*s + e.
    p1 = []
    for e in range(2):
        def lhs1(dh, kh, _e=e):
            q = 2 * _e + dh + kh            # input row = 4*s + q, s = 0..6
            return x_ref[q % 4, q // 4:q // 4 + 7, :]             # (7, 96)
        pre = conv_pool(lhs1, a1_ref)                              # (7, 84)
        p1.append(jnp.maximum(pre + b1_ref[...], 0.0))

    # --- conv2 (6->16, 5x5) + ReLU + 2x2 pool --------------------------------
    def lhs2(dh, kh):
        q = dh + kh                          # p1 row = 2*t + q, t = 0..4
        return p1[q % 2][q // 2:q // 2 + 5, :]                     # (5, 84)
    p2 = jnp.maximum(conv_pool(lhs2, a2_ref) + b2_ref[...], 0.0)   # (5, 80)

    # --- fc1 (400 -> 120, padded to 128 lanes) + ReLU ------------------------
    # K = 400 is consumed as 5 row-blocks of 80 (one per pooled row of p2), so
    # no flatten/reshape is needed in-kernel.
    h1 = None
    for t in range(5):
        d = jnp.dot(p2[t:t + 1, :].astype(bf16), wfc1_ref[t],
                    preferred_element_type=f32)                    # (1, 128)
        h1 = d if h1 is None else h1 + d
    h1 = jnp.maximum(h1 + bfc1_ref[...], 0.0)

    # --- fc2 (120 -> 84, padded) + ReLU, fc3 (84 -> 10, padded) --------------
    h2 = jnp.dot(h1.astype(bf16), wfc2_ref[...], preferred_element_type=f32)
    h2 = jnp.maximum(h2 + bfc2_ref[...], 0.0)
    out = jnp.dot(h2.astype(bf16), wfc3_ref[...], preferred_element_type=f32)
    out_ref[...] = out + bfc3_ref[...]                             # (1, 128)


# ----------------------------------------------------------------------------
# Host-side, one-time parameter repacking (pure weight plumbing, zero runtime
# cost): Toeplitz-lowered conv weights, lane-expanded biases, fc1 row permute
# (CHW -> HWC flatten order), fc outputs zero-padded to 128 lanes.
# ----------------------------------------------------------------------------
def pack_params(p):
    w1 = np.asarray(p["conv1_w"], np.float32)   # (6, 3, 5, 5)   OIHW
    b1 = np.asarray(p["conv1_b"], np.float32)
    w2 = np.asarray(p["conv2_w"], np.float32)   # (16, 6, 5, 5)
    b2 = np.asarray(p["conv2_b"], np.float32)
    fw1 = np.asarray(p["fc1_w"], np.float32)    # (120, 400)
    fb1 = np.asarray(p["fc1_b"], np.float32)
    fw2 = np.asarray(p["fc2_w"], np.float32)    # (84, 120)
    fb2 = np.asarray(p["fc2_b"], np.float32)
    fw3 = np.asarray(p["fc3_w"], np.float32)    # (10, 84)
    fb3 = np.asarray(p["fc3_b"], np.float32)

    def toeplitz(w, in_w, out_w, cin, cout):
        # a[dw, kh, win*cin + ci, pw*cout + co] = w[co, ci, kh, kw]
        #   with win = 2*pw + dw + kw  (conv + 2x2-pool column phase dw)
        a = np.zeros((2, 5, in_w * cin, out_w * cout), np.float32)
        for dw in range(2):
            for kh in range(5):
                for kw in range(5):
                    blk = w[:, :, kh, kw].T          # (cin, cout)
                    for pw in range(out_w):
                        win = 2 * pw + dw + kw
                        a[dw, kh, win * cin:(win + 1) * cin,
                          pw * cout:(pw + 1) * cout] = blk
        return a

    a1 = toeplitz(w1, 32, 14, 3, 6)     # (2, 5, 96, 84)
    a2 = toeplitz(w2, 14, 5, 6, 16)     # (2, 5, 84, 80)
    b1e = np.tile(b1, 14)[None, :]      # (1, 84)
    b2e = np.tile(b2, 5)[None, :]       # (1, 80)

    # fc1: permute K=400 rows from PyTorch CHW flatten order to this kernel's
    # HWC slab order (row t*80 + pw*16 + c  <->  torch index c*25 + t*5 + pw),
    # pad 120 -> 128 output lanes, split K into 5 blocks of 80.
    idx = np.empty(400, np.int32)
    for ph in range(5):
        for pw in range(5):
            for c in range(16):
                idx[ph * 80 + pw * 16 + c] = c * 25 + ph * 5 + pw
    wfc1 = np.pad(fw1.T[idx], ((0, 0), (0, 8))).reshape(5, 80, 128)
    bfc1 = np.pad(fb1, (0, 8))[None, :]
    wfc2 = np.pad(fw2.T, ((0, 8), (0, 44)))          # (128, 128)
    bfc2 = np.pad(fb2, (0, 44))[None, :]
    wfc3 = np.pad(fw3.T, ((0, 44), (0, 118)))        # (128, 128)
    bfc3 = np.pad(fb3, (0, 118))[None, :]

    bf16 = jnp.bfloat16
    return {
        "a1": jnp.asarray(a1, bf16), "b1": jnp.asarray(b1e),
        "a2": jnp.asarray(a2, bf16), "b2": jnp.asarray(b2e),
        "wfc1": jnp.asarray(wfc1, bf16), "bfc1": jnp.asarray(bfc1),
        "wfc2": jnp.asarray(wfc2, bf16), "bfc2": jnp.asarray(bfc2),
        "wfc3": jnp.asarray(wfc3, bf16), "bfc3": jnp.asarray(bfc3),
    }


# ----------------------------------------------------------------------------
# Forward wrapper: single fused pallas_call, grid over the batch.
# ----------------------------------------------------------------------------
def lenet_forward(x_nchw, packed):
    n = x_nchw.shape[0]
    # NCHW -> NHWC row slabs (lanes = W*C), pre-split by input row mod 4 so
    # the fused conv1+pool1 needs only contiguous row slices in-kernel.
    x = jnp.transpose(x_nchw, (0, 2, 3, 1)).reshape(n, 32, 96)
    xm4 = jnp.stack([x[:, m::4, :] for m in range(4)], axis=0)   # (4, N, 8, 96)

    def full(shape):
        return pl.BlockSpec(shape, lambda i: (0,) * len(shape))

    out = pl.pallas_call(
        _lenet_kernel,
        out_shape=jax.ShapeDtypeStruct((n, 1, 128), jnp.float32),
        grid=(n,),
        in_specs=[
            # image i; batch dim squeezed -> kernel ref is (4, 8, 96)
            pl.BlockSpec((4, None, 8, 96), lambda i: (0, i, 0, 0)),
            full((2, 5, 96, 84)), full((1, 84)),                   # conv1
            full((2, 5, 84, 80)), full((1, 80)),                   # conv2
            full((5, 80, 128)), full((1, 128)),                    # fc1
            full((128, 128)), full((1, 128)),                      # fc2
            full((128, 128)), full((1, 128)),                      # fc3
        ],
        # batch dim squeezed -> kernel out ref is (1, 128), lane-dense store
        out_specs=pl.BlockSpec((None, 1, 128), lambda i: (i, 0, 0)),
        compiler_params=pltpu.CompilerParams(
            dimension_semantics=("parallel",)),
    )(xm4, packed["a1"], packed["b1"], packed["a2"], packed["b2"],
      packed["wfc1"], packed["bfc1"], packed["wfc2"], packed["bfc2"],
      packed["wfc3"], packed["bfc3"])
    return out[:, 0, :NUM_CLASSES]


# ----------------------------------------------------------------------------
# Pure-JAX reference (mirrors the PyTorch forward exactly, f32 HIGHEST).
# ----------------------------------------------------------------------------
def lenet_reference(x_nchw, p):
    hp = lax.Precision.HIGHEST
    dn = ("NCHW", "OIHW", "NCHW")
    y = lax.conv_general_dilated(x_nchw, p["conv1_w"], (1, 1), "VALID",
                                 dimension_numbers=dn, precision=hp)
    y = jnp.maximum(y + p["conv1_b"][None, :, None, None], 0.0)
    y = lax.reduce_window(y, -jnp.inf, lax.max, (1, 1, 2, 2), (1, 1, 2, 2), "VALID")
    y = lax.conv_general_dilated(y, p["conv2_w"], (1, 1), "VALID",
                                 dimension_numbers=dn, precision=hp)
    y = jnp.maximum(y + p["conv2_b"][None, :, None, None], 0.0)
    y = lax.reduce_window(y, -jnp.inf, lax.max, (1, 1, 2, 2), (1, 1, 2, 2), "VALID")
    y = y.reshape(y.shape[0], -1)
    y = jnp.maximum(jnp.dot(y, p["fc1_w"].T, precision=hp) + p["fc1_b"], 0.0)
    y = jnp.maximum(jnp.dot(y, p["fc2_w"].T, precision=hp) + p["fc2_b"], 0.0)
    y = jnp.dot(y, p["fc3_w"].T, precision=hp) + p["fc3_b"]
    return y


# ----------------------------------------------------------------------------
# Deterministic parameter init (shapes from LeNet.__init__, num_classes=10)
# ----------------------------------------------------------------------------
def init_params(key):
    shapes = {
        "conv1_w": (6, 3, 5, 5),   "conv1_b": (6,),
        "conv2_w": (16, 6, 5, 5),  "conv2_b": (16,),
        "fc1_w":   (120, 400),     "fc1_b":   (120,),
        "fc2_w":   (84, 120),      "fc2_b":   (84,),
        "fc3_w":   (10, 84),       "fc3_b":   (10,),
    }
    params = {}
    for name, shp in shapes.items():
        key, sub = jax.random.split(key)
        params[name] = 0.1 * jax.random.normal(sub, shp, dtype=jnp.float32)
    return params


if __name__ == "__main__":
    key = jax.random.PRNGKey(0)
    pkey, xkey = jax.random.split(key)
    params = init_params(pkey)
    packed = pack_params(params)

    # CIFAR-shaped input (batch=2): fc1 expects 16*5*5=400, which forces 32x32x3.
    x = jax.random.normal(xkey, (2, 3, 32, 32), dtype=jnp.float32)

    fwd = jax.jit(lenet_forward)
    out = jax.block_until_ready(fwd(x, packed))
    ref = jax.block_until_ready(lenet_reference(x, params))

    assert out.shape == (2, NUM_CLASSES), out.shape
    # Kernel uses bf16 MXU operands with f32 accumulation -> loose tolerance.
    assert jnp.allclose(out, ref, rtol=3e-2, atol=3e-2), (
        "Pallas output mismatch vs reference: max|diff|="
        f"{float(jnp.max(jnp.abs(out - ref)))}")
    print("KERNEL_OK")
</pallas_src>

<mosaic_0001>
module attributes {stable_mosaic.version = 11 : i64} {
  func.func @_lenet_kernel(%arg0: i32, %arg1: memref<4x1x8x96xf32, #tpu.memory_space<vmem>>, %arg2: memref<2x5x96x84xbf16, #tpu.memory_space<vmem>>, %arg3: memref<1x84xf32, #tpu.memory_space<vmem>>, %arg4: memref<2x5x84x80xbf16, #tpu.memory_space<vmem>>, %arg5: memref<1x80xf32, #tpu.memory_space<vmem>>, %arg6: memref<5x80x128xbf16, #tpu.memory_space<vmem>>, %arg7: memref<1x128xf32, #tpu.memory_space<vmem>>, %arg8: memref<128x128xbf16, #tpu.memory_space<vmem>>, %arg9: memref<1x128xf32, #tpu.memory_space<vmem>>, %arg10: memref<128x128xbf16, #tpu.memory_space<vmem>>, %arg11: memref<1x128xf32, #tpu.memory_space<vmem>>, %arg12: memref<1x1x128xf32, #tpu.memory_space<vmem>>) attributes {dimension_semantics = [#tpu.dimension_semantics<parallel>], iteration_bounds = array<i64: 2>, scalar_prefetch = 0 : i64, scratch_operands = 0 : i64, tpu.core_type = #tpu.core_type<tc>, window_params = [{transform_indices = @transform_0, window_bounds = array<i64: 4, 1, 8, 96>}, {pipeline_mode = #tpu.pipeline_mode<synchronous>, transform_indices = @transform_1, window_bounds = array<i64: 2, 5, 96, 84>}, {pipeline_mode = #tpu.pipeline_mode<synchronous>, transform_indices = @transform_2, window_bounds = array<i64: 1, 84>}, {pipeline_mode = #tpu.pipeline_mode<synchronous>, transform_indices = @transform_3, window_bounds = array<i64: 2, 5, 84, 80>}, {pipeline_mode = #tpu.pipeline_mode<synchronous>, transform_indices = @transform_4, window_bounds = array<i64: 1, 80>}, {pipeline_mode = #tpu.pipeline_mode<synchronous>, transform_indices = @transform_5, window_bounds = array<i64: 5, 80, 128>}, {pipeline_mode = #tpu.pipeline_mode<synchronous>, transform_indices = @transform_6, window_bounds = array<i64: 1, 128>}, {pipeline_mode = #tpu.pipeline_mode<synchronous>, transform_indices = @transform_7, window_bounds = array<i64: 128, 128>}, {pipeline_mode = #tpu.pipeline_mode<synchronous>, transform_indices = @transform_8, window_bounds = array<i64: 1, 128>}, {pipeline_mode = #tpu.pipeline_mode<synchronous>, transform_indices = @transform_9, window_bounds = array<i64: 128, 128>}, {pipeline_mode = #tpu.pipeline_mode<synchronous>, transform_indices = @transform_10, window_bounds = array<i64: 1, 128>}, {transform_indices = @transform_11, window_bounds = array<i64: 1, 1, 128>}]} {
    %c0 = arith.constant 0 : index
    %c0_0 = arith.constant 0 : index
    %c0_1 = arith.constant 0 : index
    %c0_2 = arith.constant 0 : index
    %0 = vector.load %arg1[%c0, %c0_0, %c0_1, %c0_2] : memref<4x1x8x96xf32, #tpu.memory_space<vmem>>, vector<1x1x7x96xf32>
    %1 = vector.shape_cast %0 : vector<1x1x7x96xf32> to vector<7x96xf32>
    %2 = arith.truncf %1 : vector<7x96xf32> to vector<7x96xbf16>
    %c0_3 = arith.constant 0 : index
    %c0_4 = arith.constant 0 : index
    %c0_5 = arith.constant 0 : index
    %c0_6 = arith.constant 0 : index
    %3 = vector.load %arg2[%c0_3, %c0_4, %c0_5, %c0_6] : memref<2x5x96x84xbf16, #tpu.memory_space<vmem>>, vector<1x1x96x84xbf16>
    %4 = vector.shape_cast %3 : vector<1x1x96x84xbf16> to vector<96x84xbf16>
    %cst = arith.constant dense<0.000000e+00> : vector<7x84xf32>
    %5 = tpu.matmul %2, %4, %cst {dimension_numbers = #tpu.dot_dimension_numbers<[1], [0], [0], [1], [0, 0, 1, 1], [], []>} : vector<7x96xbf16>, vector<96x84xbf16>, vector<7x84xf32> -> vector<7x84xf32>
    %c1 = arith.constant 1 : index
    %c0_7 = arith.constant 0 : index
    %c0_8 = arith.constant 0 : index
    %c0_9 = arith.constant 0 : index
    %6 = vector.load %arg2[%c1, %c0_7, %c0_8, %c0_9] : memref<2x5x96x84xbf16, #tpu.memory_space<vmem>>, vector<1x1x96x84xbf16>
    %7 = vector.shape_cast %6 : vector<1x1x96x84xbf16> to vector<96x84xbf16>
    %cst_10 = arith.constant dense<0.000000e+00> : vector<7x84xf32>
    %8 = tpu.matmul %2, %7, %cst_10 {dimension_numbers = #tpu.dot_dimension_numbers<[1], [0], [0], [1], [0, 0, 1, 1], [], []>} : vector<7x96xbf16>, vector<96x84xbf16>, vector<7x84xf32> -> vector<7x84xf32>
    %c1_11 = arith.constant 1 : index
    %c0_12 = arith.constant 0 : index
    %c0_13 = arith.constant 0 : index
    %c0_14 = arith.constant 0 : index
    %9 = vector.load %arg1[%c1_11, %c0_12, %c0_13, %c0_14] : memref<4x1x8x96xf32, #tpu.memory_space<vmem>>, vector<1x1x7x96xf32>
    %10 = vector.shape_cast %9 : vector<1x1x7x96xf32> to vector<7x96xf32>
    %11 = arith.truncf %10 : vector<7x96xf32> to vector<7x96xbf16>
    %c0_15 = arith.constant 0 : index
    %c1_16 = arith.constant 1 : index
    %c0_17 = arith.constant 0 : index
    %c0_18 = arith.constant 0 : index
    %12 = vector.load %arg2[%c0_15, %c1_16, %c0_17, %c0_18] : memref<2x5x96x84xbf16, #tpu.memory_space<vmem>>, vector<1x1x96x84xbf16>
    %13 = vector.shape_cast %12 : vector<1x1x96x84xbf16> to vector<96x84xbf16>
    %cst_19 = arith.constant dense<0.000000e+00> : vector<7x84xf32>
    %14 = tpu.matmul %11, %13, %cst_19 {dimension_numbers = #tpu.dot_dimension_numbers<[1], [0], [0], [1], [0, 0, 1, 1], [], []>} : vector<7x96xbf16>, vector<96x84xbf16>, vector<7x84xf32> -> vector<7x84xf32>
    %15 = arith.addf %5, %14 : vector<7x84xf32>
    %c1_20 = arith.constant 1 : index
    %c1_21 = arith.constant 1 : index
    %c0_22 = arith.constant 0 : index
    %c0_23 = arith.constant 0 : index
    %16 = vector.load %arg2[%c1_20, %c1_21, %c0_22, %c0_23] : memref<2x5x96x84xbf16, #tpu.memory_space<vmem>>, vector<1x1x96x84xbf16>
    %17 = vector.shape_cast %16 : vector<1x1x96x84xbf16> to vector<96x84xbf16>
    %cst_24 = arith.constant dense<0.000000e+00> : vector<7x84xf32>
    %18 = tpu.matmul %11, %17, %cst_24 {dimension_numbers = #tpu.dot_dimension_numbers<[1], [0], [0], [1], [0, 0, 1, 1], [], []>} : vector<7x96xbf16>, vector<96x84xbf16>, vector<7x84xf32> -> vector<7x84xf32>
    %19 = arith.addf %8, %18 : vector<7x84xf32>
    %c2 = arith.constant 2 : index
    %c0_25 = arith.constant 0 : index
    %c0_26 = arith.constant 0 : index
    %c0_27 = arith.constant 0 : index
    %20 = vector.load %arg1[%c2, %c0_25, %c0_26, %c0_27] : memref<4x1x8x96xf32, #tpu.memory_space<vmem>>, vector<1x1x7x96xf32>
    %21 = vector.shape_cast %20 : vector<1x1x7x96xf32> to vector<7x96xf32>
    %22 = arith.truncf %21 : vector<7x96xf32> to vector<7x96xbf16>
    %c0_28 = arith.constant 0 : index
    %c2_29 = arith.constant 2 : index
    %c0_30 = arith.constant 0 : index
    %c0_31 = arith.constant 0 : index
    %23 = vector.load %arg2[%c0_28, %c2_29, %c0_30, %c0_31] : memref<2x5x96x84xbf16, #tpu.memory_space<vmem>>, vector<1x1x96x84xbf16>
    %24 = vector.shape_cast %23 : vector<1x1x96x84xbf16> to vector<96x84xbf16>
    %cst_32 = arith.constant dense<0.000000e+00> : vector<7x84xf32>
    %25 = tpu.matmul %22, %24, %cst_32 {dimension_numbers = #tpu.dot_dimension_numbers<[1], [0], [0], [1], [0, 0, 1, 1], [], []>} : vector<7x96xbf16>, vector<96x84xbf16>, vector<7x84xf32> -> vector<7x84xf32>
    %26 = arith.addf %15, %25 : vector<7x84xf32>
    %c1_33 = arith.constant 1 : index
    %c2_34 = arith.constant 2 : index
    %c0_35 = arith.constant 0 : index
    %c0_36 = arith.constant 0 : index
    %27 = vector.load %arg2[%c1_33, %c2_34, %c0_35, %c0_36] : memref<2x5x96x84xbf16, #tpu.memory_space<vmem>>, vector<1x1x96x84xbf16>
    %28 = vector.shape_cast %27 : vector<1x1x96x84xbf16> to vector<96x84xbf16>
    %cst_37 = arith.constant dense<0.000000e+00> : vector<7x84xf32>
    %29 = tpu.matmul %22, %28, %cst_37 {dimension_numbers = #tpu.dot_dimension_numbers<[1], [0], [0], [1], [0, 0, 1, 1], [], []>} : vector<7x96xbf16>, vector<96x84xbf16>, vector<7x84xf32> -> vector<7x84xf32>
    %30 = arith.addf %19, %29 : vector<7x84xf32>
    %c3 = arith.constant 3 : index
    %c0_38 = arith.constant 0 : index
    %c0_39 = arith.constant 0 : index
    %c0_40 = arith.constant 0 : index
    %31 = vector.load %arg1[%c3, %c0_38, %c0_39, %c0_40] : memref<4x1x8x96xf32, #tpu.memory_space<vmem>>, vector<1x1x7x96xf32>
    %32 = vector.shape_cast %31 : vector<1x1x7x96xf32> to vector<7x96xf32>
    %33 = arith.truncf %32 : vector<7x96xf32> to vector<7x96xbf16>
    %c0_41 = arith.constant 0 : index
    %c3_42 = arith.constant 3 : index
    %c0_43 = arith.constant 0 : index
    %c0_44 = arith.constant 0 : index
    %34 = vector.load %arg2[%c0_41, %c3_42, %c0_43, %c0_44] : memref<2x5x96x84xbf16, #tpu.memory_space<vmem>>, vector<1x1x96x84xbf16>
    %35 = vector.shape_cast %34 : vector<1x1x96x84xbf16> to vector<96x84xbf16>
    %cst_45 = arith.constant dense<0.000000e+00> : vector<7x84xf32>
    %36 = tpu.matmul %33, %35, %cst_45 {dimension_numbers = #tpu.dot_dimension_numbers<[1], [0], [0], [1], [0, 0, 1, 1], [], []>} : vector<7x96xbf16>, vector<96x84xbf16>, vector<7x84xf32> -> vector<7x84xf32>
    %37 = arith.addf %26, %36 : vector<7x84xf32>
    %c1_46 = arith.constant 1 : index
    %c3_47 = arith.constant 3 : index
    %c0_48 = arith.constant 0 : index
    %c0_49 = arith.constant 0 : index
    %38 = vector.load %arg2[%c1_46, %c3_47, %c0_48, %c0_49] : memref<2x5x96x84xbf16, #tpu.memory_space<vmem>>, vector<1x1x96x84xbf16>
    %39 = vector.shape_cast %38 : vector<1x1x96x84xbf16> to vector<96x84xbf16>
    %cst_50 = arith.constant dense<0.000000e+00> : vector<7x84xf32>
    %40 = tpu.matmul %33, %39, %cst_50 {dimension_numbers = #tpu.dot_dimension_numbers<[1], [0], [0], [1], [0, 0, 1, 1], [], []>} : vector<7x96xbf16>, vector<96x84xbf16>, vector<7x84xf32> -> vector<7x84xf32>
    %41 = arith.addf %30, %40 : vector<7x84xf32>
    %c0_51 = arith.constant 0 : index
    %c0_52 = arith.constant 0 : index
    %c1_53 = arith.constant 1 : index
    %c0_54 = arith.constant 0 : index
    %42 = vector.load %arg1[%c0_51, %c0_52, %c1_53, %c0_54] : memref<4x1x8x96xf32, #tpu.memory_space<vmem>>, vector<1x1x7x96xf32>
    %43 = vector.shape_cast %42 : vector<1x1x7x96xf32> to vector<7x96xf32>
    %44 = arith.truncf %43 : vector<7x96xf32> to vector<7x96xbf16>
    %c0_55 = arith.constant 0 : index
    %c4 = arith.constant 4 : index
    %c0_56 = arith.constant 0 : index
    %c0_57 = arith.constant 0 : index
    %45 = vector.load %arg2[%c0_55, %c4, %c0_56, %c0_57] : memref<2x5x96x84xbf16, #tpu.memory_space<vmem>>, vector<1x1x96x84xbf16>
    %46 = vector.shape_cast %45 : vector<1x1x96x84xbf16> to vector<96x84xbf16>
    %cst_58 = arith.constant dense<0.000000e+00> : vector<7x84xf32>
    %47 = tpu.matmul %44, %46, %cst_58 {dimension_numbers = #tpu.dot_dimension_numbers<[1], [0], [0], [1], [0, 0, 1, 1], [], []>} : vector<7x96xbf16>, vector<96x84xbf16>, vector<7x84xf32> -> vector<7x84xf32>
    %48 = arith.addf %37, %47 : vector<7x84xf32>
    %c1_59 = arith.constant 1 : index
    %c4_60 = arith.constant 4 : index
    %c0_61 = arith.constant 0 : index
    %c0_62 = arith.constant 0 : index
    %49 = vector.load %arg2[%c1_59, %c4_60, %c0_61, %c0_62] : memref<2x5x96x84xbf16, #tpu.memory_space<vmem>>, vector<1x1x96x84xbf16>
    %50 = vector.shape_cast %49 : vector<1x1x96x84xbf16> to vector<96x84xbf16>
    %cst_63 = arith.constant dense<0.000000e+00> : vector<7x84xf32>
    %51 = tpu.matmul %44, %50, %cst_63 {dimension_numbers = #tpu.dot_dimension_numbers<[1], [0], [0], [1], [0, 0, 1, 1], [], []>} : vector<7x96xbf16>, vector<96x84xbf16>, vector<7x84xf32> -> vector<7x84xf32>
    %52 = arith.addf %41, %51 : vector<7x84xf32>
    %53 = arith.maximumf %48, %52 : vector<7x84xf32>
    %c1_64 = arith.constant 1 : index
    %c0_65 = arith.constant 0 : index
    %c0_66 = arith.constant 0 : index
    %c0_67 = arith.constant 0 : index
    %54 = vector.load %arg1[%c1_64, %c0_65, %c0_66, %c0_67] : memref<4x1x8x96xf32, #tpu.memory_space<vmem>>, vector<1x1x7x96xf32>
    %55 = vector.shape_cast %54 : vector<1x1x7x96xf32> to vector<7x96xf32>
    %56 = arith.truncf %55 : vector<7x96xf32> to vector<7x96xbf16>
    %c0_68 = arith.constant 0 : index
    %c0_69 = arith.constant 0 : index
    %c0_70 = arith.constant 0 : index
    %c0_71 = arith.constant 0 : index
    %57 = vector.load %arg2[%c0_68, %c0_69, %c0_70, %c0_71] : memref<2x5x96x84xbf16, #tpu.memory_space<vmem>>, vector<1x1x96x84xbf16>
    %58 = vector.shape_cast %57 : vector<1x1x96x84xbf16> to vector<96x84xbf16>
    %cst_72 = arith.constant dense<0.000000e+00> : vector<7x84xf32>
    %59 = tpu.matmul %56, %58, %cst_72 {dimension_numbers = #tpu.dot_dimension_numbers<[1], [0], [0], [1], [0, 0, 1, 1], [], []>} : vector<7x96xbf16>, vector<96x84xbf16>, vector<7x84xf32> -> vector<7x84xf32>
    %c1_73 = arith.constant 1 : index
    %c0_74 = arith.constant 0 : index
    %c0_75 = arith.constant 0 : index
    %c0_76 = arith.constant 0 : index
    %60 = vector.load %arg2[%c1_73, %c0_74, %c0_75, %c0_76] : memref<2x5x96x84xbf16, #tpu.memory_space<vmem>>, vector<1x1x96x84xbf16>
    %61 = vector.shape_cast %60 : vector<1x1x96x84xbf16> to vector<96x84xbf16>
    %cst_77 = arith.constant dense<0.000000e+00> : vector<7x84xf32>
    %62 = tpu.matmul %56, %61, %cst_77 {dimension_numbers = #tpu.dot_dimension_numbers<[1], [0], [0], [1], [0, 0, 1, 1], [], []>} : vector<7x96xbf16>, vector<96x84xbf16>, vector<7x84xf32> -> vector<7x84xf32>
    %c2_78 = arith.constant 2 : index
    %c0_79 = arith.constant 0 : index
    %c0_80 = arith.constant 0 : index
    %c0_81 = arith.constant 0 : index
    %63 = vector.load %arg1[%c2_78, %c0_79, %c0_80, %c0_81] : memref<4x1x8x96xf32, #tpu.memory_space<vmem>>, vector<1x1x7x96xf32>
    %64 = vector.shape_cast %63 : vector<1x1x7x96xf32> to vector<7x96xf32>
    %65 = arith.truncf %64 : vector<7x96xf32> to vector<7x96xbf16>
    %c0_82 = arith.constant 0 : index
    %c1_83 = arith.constant 1 : index
    %c0_84 = arith.constant 0 : index
    %c0_85 = arith.constant 0 : index
    %66 = vector.load %arg2[%c0_82, %c1_83, %c0_84, %c0_85] : memref<2x5x96x84xbf16, #tpu.memory_space<vmem>>, vector<1x1x96x84xbf16>
    %67 = vector.shape_cast %66 : vector<1x1x96x84xbf16> to vector<96x84xbf16>
    %cst_86 = arith.constant dense<0.000000e+00> : vector<7x84xf32>
    %68 = tpu.matmul %65, %67, %cst_86 {dimension_numbers = #tpu.dot_dimension_numbers<[1], [0], [0], [1], [0, 0, 1, 1], [], []>} : vector<7x96xbf16>, vector<96x84xbf16>, vector<7x84xf32> -> vector<7x84xf32>
    %69 = arith.addf %59, %68 : vector<7x84xf32>
    %c1_87 = arith.constant 1 : index
    %c1_88 = arith.constant 1 : index
    %c0_89 = arith.constant 0 : index
    %c0_90 = arith.constant 0 : index
    %70 = vector.load %arg2[%c1_87, %c1_88, %c0_89, %c0_90] : memref<2x5x96x84xbf16, #tpu.memory_space<vmem>>, vector<1x1x96x84xbf16>
    %71 = vector.shape_cast %70 : vector<1x1x96x84xbf16> to vector<96x84xbf16>
    %cst_91 = arith.constant dense<0.000000e+00> : vector<7x84xf32>
    %72 = tpu.matmul %65, %71, %cst_91 {dimension_numbers = #tpu.dot_dimension_numbers<[1], [0], [0], [1], [0, 0, 1, 1], [], []>} : vector<7x96xbf16>, vector<96x84xbf16>, vector<7x84xf32> -> vector<7x84xf32>
    %73 = arith.addf %62, %72 : vector<7x84xf32>
    %c3_92 = arith.constant 3 : index
    %c0_93 = arith.constant 0 : index
    %c0_94 = arith.constant 0 : index
    %c0_95 = arith.constant 0 : index
    %74 = vector.load %arg1[%c3_92, %c0_93, %c0_94, %c0_95] : memref<4x1x8x96xf32, #tpu.memory_space<vmem>>, vector<1x1x7x96xf32>
    %75 = vector.shape_cast %74 : vector<1x1x7x96xf32> to vector<7x96xf32>
    %76 = arith.truncf %75 : vector<7x96xf32> to vector<7x96xbf16>
    %c0_96 = arith.constant 0 : index
    %c2_97 = arith.constant 2 : index
    %c0_98 = arith.constant 0 : index
    %c0_99 = arith.constant 0 : index
    %77 = vector.load %arg2[%c0_96, %c2_97, %c0_98, %c0_99] : memref<2x5x96x84xbf16, #tpu.memory_space<vmem>>, vector<1x1x96x84xbf16>
    %78 = vector.shape_cast %77 : vector<1x1x96x84xbf16> to vector<96x84xbf16>
    %cst_100 = arith.constant dense<0.000000e+00> : vector<7x84xf32>
    %79 = tpu.matmul %76, %78, %cst_100 {dimension_numbers = #tpu.dot_dimension_numbers<[1], [0], [0], [1], [0, 0, 1, 1], [], []>} : vector<7x96xbf16>, vector<96x84xbf16>, vector<7x84xf32> -> vector<7x84xf32>
    %80 = arith.addf %69, %79 : vector<7x84xf32>
    %c1_101 = arith.constant 1 : index
    %c2_102 = arith.constant 2 : index
    %c0_103 = arith.constant 0 : index
    %c0_104 = arith.constant 0 : index
    %81 = vector.load %arg2[%c1_101, %c2_102, %c0_103, %c0_104] : memref<2x5x96x84xbf16, #tpu.memory_space<vmem>>, vector<1x1x96x84xbf16>
    %82 = vector.shape_cast %81 : vector<1x1x96x84xbf16> to vector<96x84xbf16>
    %cst_105 = arith.constant dense<0.000000e+00> : vector<7x84xf32>
    %83 = tpu.matmul %76, %82, %cst_105 {dimension_numbers = #tpu.dot_dimension_numbers<[1], [0], [0], [1], [0, 0, 1, 1], [], []>} : vector<7x96xbf16>, vector<96x84xbf16>, vector<7x84xf32> -> vector<7x84xf32>
    %84 = arith.addf %73, %83 : vector<7x84xf32>
    %c0_106 = arith.constant 0 : index
    %c0_107 = arith.constant 0 : index
    %c1_108 = arith.constant 1 : index
    %c0_109 = arith.constant 0 : index
    %85 = vector.load %arg1[%c0_106, %c0_107, %c1_108, %c0_109] : memref<4x1x8x96xf32, #tpu.memory_space<vmem>>, vector<1x1x7x96xf32>
    %86 = vector.shape_cast %85 : vector<1x1x7x96xf32> to vector<7x96xf32>
    %87 = arith.truncf %86 : vector<7x96xf32> to vector<7x96xbf16>
    %c0_110 = arith.constant 0 : index
    %c3_111 = arith.constant 3 : index
    %c0_112 = arith.constant 0 : index
    %c0_113 = arith.constant 0 : index
    %88 = vector.load %arg2[%c0_110, %c3_111, %c0_112, %c0_113] : memref<2x5x96x84xbf16, #tpu.memory_space<vmem>>, vector<1x1x96x84xbf16>
    %89 = vector.shape_cast %88 : vector<1x1x96x84xbf16> to vector<96x84xbf16>
    %cst_114 = arith.constant dense<0.000000e+00> : vector<7x84xf32>
    %90 = tpu.matmul %87, %89, %cst_114 {dimension_numbers = #tpu.dot_dimension_numbers<[1], [0], [0], [1], [0, 0, 1, 1], [], []>} : vector<7x96xbf16>, vector<96x84xbf16>, vector<7x84xf32> -> vector<7x84xf32>
    %91 = arith.addf %80, %90 : vector<7x84xf32>
    %c1_115 = arith.constant 1 : index
    %c3_116 = arith.constant 3 : index
    %c0_117 = arith.constant 0 : index
    %c0_118 = arith.constant 0 : index
    %92 = vector.load %arg2[%c1_115, %c3_116, %c0_117, %c0_118] : memref<2x5x96x84xbf16, #tpu.memory_space<vmem>>, vector<1x1x96x84xbf16>
    %93 = vector.shape_cast %92 : vector<1x1x96x84xbf16> to vector<96x84xbf16>
    %cst_119 = arith.constant dense<0.000000e+00> : vector<7x84xf32>
    %94 = tpu.matmul %87, %93, %cst_119 {dimension_numbers = #tpu.dot_dimension_numbers<[1], [0], [0], [1], [0, 0, 1, 1], [], []>} : vector<7x96xbf16>, vector<96x84xbf16>, vector<7x84xf32> -> vector<7x84xf32>
    %95 = arith.addf %84, %94 : vector<7x84xf32>
    %c1_120 = arith.constant 1 : index
    %c0_121 = arith.constant 0 : index
    %c1_122 = arith.constant 1 : index
    %c0_123 = arith.constant 0 : index
    %96 = vector.load %arg1[%c1_120, %c0_121, %c1_122, %c0_123] : memref<4x1x8x96xf32, #tpu.memory_space<vmem>>, vector<1x1x7x96xf32>
    %97 = vector.shape_cast %96 : vector<1x1x7x96xf32> to vector<7x96xf32>
    %98 = arith.truncf %97 : vector<7x96xf32> to vector<7x96xbf16>
    %c0_124 = arith.constant 0 : index
    %c4_125 = arith.constant 4 : index
    %c0_126 = arith.constant 0 : index
    %c0_127 = arith.constant 0 : index
    %99 = vector.load %arg2[%c0_124, %c4_125, %c0_126, %c0_127] : memref<2x5x96x84xbf16, #tpu.memory_space<vmem>>, vector<1x1x96x84xbf16>
    %100 = vector.shape_cast %99 : vector<1x1x96x84xbf16> to vector<96x84xbf16>
    %cst_128 = arith.constant dense<0.000000e+00> : vector<7x84xf32>
    %101 = tpu.matmul %98, %100, %cst_128 {dimension_numbers = #tpu.dot_dimension_numbers<[1], [0], [0], [1], [0, 0, 1, 1], [], []>} : vector<7x96xbf16>, vector<96x84xbf16>, vector<7x84xf32> -> vector<7x84xf32>
    %102 = arith.addf %91, %101 : vector<7x84xf32>
    %c1_129 = arith.constant 1 : index
    %c4_130 = arith.constant 4 : index
    %c0_131 = arith.constant 0 : index
    %c0_132 = arith.constant 0 : index
    %103 = vector.load %arg2[%c1_129, %c4_130, %c0_131, %c0_132] : memref<2x5x96x84xbf16, #tpu.memory_space<vmem>>, vector<1x1x96x84xbf16>
    %104 = vector.shape_cast %103 : vector<1x1x96x84xbf16> to vector<96x84xbf16>
    %cst_133 = arith.constant dense<0.000000e+00> : vector<7x84xf32>
    %105 = tpu.matmul %98, %104, %cst_133 {dimension_numbers = #tpu.dot_dimension_numbers<[1], [0], [0], [1], [0, 0, 1, 1], [], []>} : vector<7x96xbf16>, vector<96x84xbf16>, vector<7x84xf32> -> vector<7x84xf32>
    %106 = arith.addf %95, %105 : vector<7x84xf32>
    %107 = arith.maximumf %102, %106 : vector<7x84xf32>
    %108 = arith.maximumf %53, %107 : vector<7x84xf32>
    %c0_134 = arith.constant 0 : index
    %c0_135 = arith.constant 0 : index
    %109 = vector.load %arg3[%c0_134, %c0_135] : memref<1x84xf32, #tpu.memory_space<vmem>>, vector<1x84xf32>
    %110 = vector.broadcast %109 : vector<1x84xf32> to vector<7x84xf32>
    %111 = arith.addf %108, %110 : vector<7x84xf32>
    %cst_136 = arith.constant 0.000000e+00 : f32
    %112 = vector.broadcast %cst_136 : f32 to vector<7x84xf32>
    %113 = arith.maximumf %111, %112 : vector<7x84xf32>
    %c2_137 = arith.constant 2 : index
    %c0_138 = arith.constant 0 : index
    %c0_139 = arith.constant 0 : index
    %c0_140 = arith.constant 0 : index
    %114 = vector.load %arg1[%c2_137, %c0_138, %c0_139, %c0_140] : memref<4x1x8x96xf32, #tpu.memory_space<vmem>>, vector<1x1x7x96xf32>
    %115 = vector.shape_cast %114 : vector<1x1x7x96xf32> to vector<7x96xf32>
    %116 = arith.truncf %115 : vector<7x96xf32> to vector<7x96xbf16>
    %c0_141 = arith.constant 0 : index
    %c0_142 = arith.constant 0 : index
    %c0_143 = arith.constant 0 : index
    %c0_144 = arith.constant 0 : index
    %117 = vector.load %arg2[%c0_141, %c0_142, %c0_143, %c0_144] : memref<2x5x96x84xbf16, #tpu.memory_space<vmem>>, vector<1x1x96x84xbf16>
    %118 = vector.shape_cast %117 : vector<1x1x96x84xbf16> to vector<96x84xbf16>
    %cst_145 = arith.constant dense<0.000000e+00> : vector<7x84xf32>
    %119 = tpu.matmul %116, %118, %cst_145 {dimension_numbers = #tpu.dot_dimension_numbers<[1], [0], [0], [1], [0, 0, 1, 1], [], []>} : vector<7x96xbf16>, vector<96x84xbf16>, vector<7x84xf32> -> vector<7x84xf32>
    %c1_146 = arith.constant 1 : index
    %c0_147 = arith.constant 0 : index
    %c0_148 = arith.constant 0 : index
    %c0_149 = arith.constant 0 : index
    %120 = vector.load %arg2[%c1_146, %c0_147, %c0_148, %c0_149] : memref<2x5x96x84xbf16, #tpu.memory_space<vmem>>, vector<1x1x96x84xbf16>
    %121 = vector.shape_cast %120 : vector<1x1x96x84xbf16> to vector<96x84xbf16>
    %cst_150 = arith.constant dense<0.000000e+00> : vector<7x84xf32>
    %122 = tpu.matmul %116, %121, %cst_150 {dimension_numbers = #tpu.dot_dimension_numbers<[1], [0], [0], [1], [0, 0, 1, 1], [], []>} : vector<7x96xbf16>, vector<96x84xbf16>, vector<7x84xf32> -> vector<7x84xf32>
    %c3_151 = arith.constant 3 : index
    %c0_152 = arith.constant 0 : index
    %c0_153 = arith.constant 0 : index
    %c0_154 = arith.constant 0 : index
    %123 = vector.load %arg1[%c3_151, %c0_152, %c0_153, %c0_154] : memref<4x1x8x96xf32, #tpu.memory_space<vmem>>, vector<1x1x7x96xf32>
    %124 = vector.shape_cast %123 : vector<1x1x7x96xf32> to vector<7x96xf32>
    %125 = arith.truncf %124 : vector<7x96xf32> to vector<7x96xbf16>
    %c0_155 = arith.constant 0 : index
    %c1_156 = arith.constant 1 : index
    %c0_157 = arith.constant 0 : index
    %c0_158 = arith.constant 0 : index
    %126 = vector.load %arg2[%c0_155, %c1_156, %c0_157, %c0_158] : memref<2x5x96x84xbf16, #tpu.memory_space<vmem>>, vector<1x1x96x84xbf16>
    %127 = vector.shape_cast %126 : vector<1x1x96x84xbf16> to vector<96x84xbf16>
    %cst_159 = arith.constant dense<0.000000e+00> : vector<7x84xf32>
    %128 = tpu.matmul %125, %127, %cst_159 {dimension_numbers = #tpu.dot_dimension_numbers<[1], [0], [0], [1], [0, 0, 1, 1], [], []>} : vector<7x96xbf16>, vector<96x84xbf16>, vector<7x84xf32> -> vector<7x84xf32>
    %129 = arith.addf %119, %128 : vector<7x84xf32>
    %c1_160 = arith.constant 1 : index
    %c1_161 = arith.constant 1 : index
    %c0_162 = arith.constant 0 : index
    %c0_163 = arith.constant 0 : index
    %130 = vector.load %arg2[%c1_160, %c1_161, %c0_162, %c0_163] : memref<2x5x96x84xbf16, #tpu.memory_space<vmem>>, vector<1x1x96x84xbf16>
    %131 = vector.shape_cast %130 : vector<1x1x96x84xbf16> to vector<96x84xbf16>
    %cst_164 = arith.constant dense<0.000000e+00> : vector<7x84xf32>
    %132 = tpu.matmul %125, %131, %cst_164 {dimension_numbers = #tpu.dot_dimension_numbers<[1], [0], [0], [1], [0, 0, 1, 1], [], []>} : vector<7x96xbf16>, vector<96x84xbf16>, vector<7x84xf32> -> vector<7x84xf32>
    %133 = arith.addf %122, %132 : vector<7x84xf32>
    %c0_165 = arith.constant 0 : index
    %c0_166 = arith.constant 0 : index
    %c1_167 = arith.constant 1 : index
    %c0_168 = arith.constant 0 : index
    %134 = vector.load %arg1[%c0_165, %c0_166, %c1_167, %c0_168] : memref<4x1x8x96xf32, #tpu.memory_space<vmem>>, vector<1x1x7x96xf32>
    %135 = vector.shape_cast %134 : vector<1x1x7x96xf32> to vector<7x96xf32>
    %136 = arith.truncf %135 : vector<7x96xf32> to vector<7x96xbf16>
    %c0_169 = arith.constant 0 : index
    %c2_170 = arith.constant 2 : index
    %c0_171 = arith.constant 0 : index
    %c0_172 = arith.constant 0 : index
    %137 = vector.load %arg2[%c0_169, %c2_170, %c0_171, %c0_172] : memref<2x5x96x84xbf16, #tpu.memory_space<vmem>>, vector<1x1x96x84xbf16>
    %138 = vector.shape_cast %137 : vector<1x1x96x84xbf16> to vector<96x84xbf16>
    %cst_173 = arith.constant dense<0.000000e+00> : vector<7x84xf32>
    %139 = tpu.matmul %136, %138, %cst_173 {dimension_numbers = #tpu.dot_dimension_numbers<[1], [0], [0], [1], [0, 0, 1, 1], [], []>} : vector<7x96xbf16>, vector<96x84xbf16>, vector<7x84xf32> -> vector<7x84xf32>
    %140 = arith.addf %129, %139 : vector<7x84xf32>
    %c1_174 = arith.constant 1 : index
    %c2_175 = arith.constant 2 : index
    %c0_176 = arith.constant 0 : index
    %c0_177 = arith.constant 0 : index
    %141 = vector.load %arg2[%c1_174, %c2_175, %c0_176, %c0_177] : memref<2x5x96x84xbf16, #tpu.memory_space<vmem>>, vector<1x1x96x84xbf16>
    %142 = vector.shape_cast %141 : vector<1x1x96x84xbf16> to vector<96x84xbf16>
    %cst_178 = arith.constant dense<0.000000e+00> : vector<7x84xf32>
    %143 = tpu.matmul %136, %142, %cst_178 {dimension_numbers = #tpu.dot_dimension_numbers<[1], [0], [0], [1], [0, 0, 1, 1], [], []>} : vector<7x96xbf16>, vector<96x84xbf16>, vector<7x84xf32> -> vector<7x84xf32>
    %144 = arith.addf %133, %143 : vector<7x84xf32>
    %c1_179 = arith.constant 1 : index
    %c0_180 = arith.constant 0 : index
    %c1_181 = arith.constant 1 : index
    %c0_182 = arith.constant 0 : index
    %145 = vector.load %arg1[%c1_179, %c0_180, %c1_181, %c0_182] : memref<4x1x8x96xf32, #tpu.memory_space<vmem>>, vector<1x1x7x96xf32>
    %146 = vector.shape_cast %145 : vector<1x1x7x96xf32> to vector<7x96xf32>
    %147 = arith.truncf %146 : vector<7x96xf32> to vector<7x96xbf16>
    %c0_183 = arith.constant 0 : index
    %c3_184 = arith.constant 3 : index
    %c0_185 = arith.constant 0 : index
    %c0_186 = arith.constant 0 : index
    %148 = vector.load %arg2[%c0_183, %c3_184, %c0_185, %c0_186] : memref<2x5x96x84xbf16, #tpu.memory_space<vmem>>, vector<1x1x96x84xbf16>
    %149 = vector.shape_cast %148 : vector<1x1x96x84xbf16> to vector<96x84xbf16>
    %cst_187 = arith.constant dense<0.000000e+00> : vector<7x84xf32>
    %150 = tpu.matmul %147, %149, %cst_187 {dimension_numbers = #tpu.dot_dimension_numbers<[1], [0], [0], [1], [0, 0, 1, 1], [], []>} : vector<7x96xbf16>, vector<96x84xbf16>, vector<7x84xf32> -> vector<7x84xf32>
    %151 = arith.addf %140, %150 : vector<7x84xf32>
    %c1_188 = arith.constant 1 : index
    %c3_189 = arith.constant 3 : index
    %c0_190 = arith.constant 0 : index
    %c0_191 = arith.constant 0 : index
    %152 = vector.load %arg2[%c1_188, %c3_189, %c0_190, %c0_191] : memref<2x5x96x84xbf16, #tpu.memory_space<vmem>>, vector<1x1x96x84xbf16>
    %153 = vector.shape_cast %152 : vector<1x1x96x84xbf16> to vector<96x84xbf16>
    %cst_192 = arith.constant dense<0.000000e+00> : vector<7x84xf32>
    %154 = tpu.matmul %147, %153, %cst_192 {dimension_numbers = #tpu.dot_dimension_numbers<[1], [0], [0], [1], [0, 0, 1, 1], [], []>} : vector<7x96xbf16>, vector<96x84xbf16>, vector<7x84xf32> -> vector<7x84xf32>
    %155 = arith.addf %144, %154 : vector<7x84xf32>
    %c2_193 = arith.constant 2 : index
    %c0_194 = arith.constant 0 : index
    %c1_195 = arith.constant 1 : index
    %c0_196 = arith.constant 0 : index
    %156 = vector.load %arg1[%c2_193, %c0_194, %c1_195, %c0_196] : memref<4x1x8x96xf32, #tpu.memory_space<vmem>>, vector<1x1x7x96xf32>
    %157 = vector.shape_cast %156 : vector<1x1x7x96xf32> to vector<7x96xf32>
    %158 = arith.truncf %157 : vector<7x96xf32> to vector<7x96xbf16>
    %c0_197 = arith.constant 0 : index
    %c4_198 = arith.constant 4 : index
    %c0_199 = arith.constant 0 : index
    %c0_200 = arith.constant 0 : index
    %159 = vector.load %arg2[%c0_197, %c4_198, %c0_199, %c0_200] : memref<2x5x96x84xbf16, #tpu.memory_space<vmem>>, vector<1x1x96x84xbf16>
    %160 = vector.shape_cast %159 : vector<1x1x96x84xbf16> to vector<96x84xbf16>
    %cst_201 = arith.constant dense<0.000000e+00> : vector<7x84xf32>
    %161 = tpu.matmul %158, %160, %cst_201 {dimension_numbers = #tpu.dot_dimension_numbers<[1], [0], [0], [1], [0, 0, 1, 1], [], []>} : vector<7x96xbf16>, vector<96x84xbf16>, vector<7x84xf32> -> vector<7x84xf32>
    %162 = arith.addf %151, %161 : vector<7x84xf32>
    %c1_202 = arith.constant 1 : index
    %c4_203 = arith.constant 4 : index
    %c0_204 = arith.constant 0 : index
    %c0_205 = arith.constant 0 : index
    %163 = vector.load %arg2[%c1_202, %c4_203, %c0_204, %c0_205] : memref<2x5x96x84xbf16, #tpu.memory_space<vmem>>, vector<1x1x96x84xbf16>
    %164 = vector.shape_cast %163 : vector<1x1x96x84xbf16> to vector<96x84xbf16>
    %cst_206 = arith.constant dense<0.000000e+00> : vector<7x84xf32>
    %165 = tpu.matmul %158, %164, %cst_206 {dimension_numbers = #tpu.dot_dimension_numbers<[1], [0], [0], [1], [0, 0, 1, 1], [], []>} : vector<7x96xbf16>, vector<96x84xbf16>, vector<7x84xf32> -> vector<7x84xf32>
    %166 = arith.addf %155, %165 : vector<7x84xf32>
    %167 = arith.maximumf %162, %166 : vector<7x84xf32>
    %c3_207 = arith.constant 3 : index
    %c0_208 = arith.constant 0 : index
    %c0_209 = arith.constant 0 : index
    %c0_210 = arith.constant 0 : index
    %168 = vector.load %arg1[%c3_207, %c0_208, %c0_209, %c0_210] : memref<4x1x8x96xf32, #tpu.memory_space<vmem>>, vector<1x1x7x96xf32>
    %169 = vector.shape_cast %168 : vector<1x1x7x96xf32> to vector<7x96xf32>
    %170 = arith.truncf %169 : vector<7x96xf32> to vector<7x96xbf16>
    %c0_211 = arith.constant 0 : index
    %c0_212 = arith.constant 0 : index
    %c0_213 = arith.constant 0 : index
    %c0_214 = arith.constant 0 : index
    %171 = vector.load %arg2[%c0_211, %c0_212, %c0_213, %c0_214] : memref<2x5x96x84xbf16, #tpu.memory_space<vmem>>, vector<1x1x96x84xbf16>
    %172 = vector.shape_cast %171 : vector<1x1x96x84xbf16> to vector<96x84xbf16>
    %cst_215 = arith.constant dense<0.000000e+00> : vector<7x84xf32>
    %173 = tpu.matmul %170, %172, %cst_215 {dimension_numbers = #tpu.dot_dimension_numbers<[1], [0], [0], [1], [0, 0, 1, 1], [], []>} : vector<7x96xbf16>, vector<96x84xbf16>, vector<7x84xf32> -> vector<7x84xf32>
    %c1_216 = arith.constant 1 : index
    %c0_217 = arith.constant 0 : index
    %c0_218 = arith.constant 0 : index
    %c0_219 = arith.constant 0 : index
    %174 = vector.load %arg2[%c1_216, %c0_217, %c0_218, %c0_219] : memref<2x5x96x84xbf16, #tpu.memory_space<vmem>>, vector<1x1x96x84xbf16>
    %175 = vector.shape_cast %174 : vector<1x1x96x84xbf16> to vector<96x84xbf16>
    %cst_220 = arith.constant dense<0.000000e+00> : vector<7x84xf32>
    %176 = tpu.matmul %170, %175, %cst_220 {dimension_numbers = #tpu.dot_dimension_numbers<[1], [0], [0], [1], [0, 0, 1, 1], [], []>} : vector<7x96xbf16>, vector<96x84xbf16>, vector<7x84xf32> -> vector<7x84xf32>
    %c0_221 = arith.constant 0 : index
    %c0_222 = arith.constant 0 : index
    %c1_223 = arith.constant 1 : index
    %c0_224 = arith.constant 0 : index
    %177 = vector.load %arg1[%c0_221, %c0_222, %c1_223, %c0_224] : memref<4x1x8x96xf32, #tpu.memory_space<vmem>>, vector<1x1x7x96xf32>
    %178 = vector.shape_cast %177 : vector<1x1x7x96xf32> to vector<7x96xf32>
    %179 = arith.truncf %178 : vector<7x96xf32> to vector<7x96xbf16>
    %c0_225 = arith.constant 0 : index
    %c1_226 = arith.constant 1 : index
    %c0_227 = arith.constant 0 : index
    %c0_228 = arith.constant 0 : index
    %180 = vector.load %arg2[%c0_225, %c1_226, %c0_227, %c0_228] : memref<2x5x96x84xbf16, #tpu.memory_space<vmem>>, vector<1x1x96x84xbf16>
    %181 = vector.shape_cast %180 : vector<1x1x96x84xbf16> to vector<96x84xbf16>
    %cst_229 = arith.constant dense<0.000000e+00> : vector<7x84xf32>
    %182 = tpu.matmul %179, %181, %cst_229 {dimension_numbers = #tpu.dot_dimension_numbers<[1], [0], [0], [1], [0, 0, 1, 1], [], []>} : vector<7x96xbf16>, vector<96x84xbf16>, vector<7x84xf32> -> vector<7x84xf32>
    %183 = arith.addf %173, %182 : vector<7x84xf32>
    %c1_230 = arith.constant 1 : index
    %c1_231 = arith.constant 1 : index
    %c0_232 = arith.constant 0 : index
    %c0_233 = arith.constant 0 : index
    %184 = vector.load %arg2[%c1_230, %c1_231, %c0_232, %c0_233] : memref<2x5x96x84xbf16, #tpu.memory_space<vmem>>, vector<1x1x96x84xbf16>
    %185 = vector.shape_cast %184 : vector<1x1x96x84xbf16> to vector<96x84xbf16>
    %cst_234 = arith.constant dense<0.000000e+00> : vector<7x84xf32>
    %186 = tpu.matmul %179, %185, %cst_234 {dimension_numbers = #tpu.dot_dimension_numbers<[1], [0], [0], [1], [0, 0, 1, 1], [], []>} : vector<7x96xbf16>, vector<96x84xbf16>, vector<7x84xf32> -> vector<7x84xf32>
    %187 = arith.addf %176, %186 : vector<7x84xf32>
    %c1_235 = arith.constant 1 : index
    %c0_236 = arith.constant 0 : index
    %c1_237 = arith.constant 1 : index
    %c0_238 = arith.constant 0 : index
    %188 = vector.load %arg1[%c1_235, %c0_236, %c1_237, %c0_238] : memref<4x1x8x96xf32, #tpu.memory_space<vmem>>, vector<1x1x7x96xf32>
    %189 = vector.shape_cast %188 : vector<1x1x7x96xf32> to vector<7x96xf32>
    %190 = arith.truncf %189 : vector<7x96xf32> to vector<7x96xbf16>
    %c0_239 = arith.constant 0 : index
    %c2_240 = arith.constant 2 : index
    %c0_241 = arith.constant 0 : index
    %c0_242 = arith.constant 0 : index
    %191 = vector.load %arg2[%c0_239, %c2_240, %c0_241, %c0_242] : memref<2x5x96x84xbf16, #tpu.memory_space<vmem>>, vector<1x1x96x84xbf16>
    %192 = vector.shape_cast %191 : vector<1x1x96x84xbf16> to vector<96x84xbf16>
    %cst_243 = arith.constant dense<0.000000e+00> : vector<7x84xf32>
    %193 = tpu.matmul %190, %192, %cst_243 {dimension_numbers = #tpu.dot_dimension_numbers<[1], [0], [0], [1], [0, 0, 1, 1], [], []>} : vector<7x96xbf16>, vector<96x84xbf16>, vector<7x84xf32> -> vector<7x84xf32>
    %194 = arith.addf %183, %193 : vector<7x84xf32>
    %c1_244 = arith.constant 1 : index
    %c2_245 = arith.constant 2 : index
    %c0_246 = arith.constant 0 : index
    %c0_247 = arith.constant 0 : index
    %195 = vector.load %arg2[%c1_244, %c2_245, %c0_246, %c0_247] : memref<2x5x96x84xbf16, #tpu.memory_space<vmem>>, vector<1x1x96x84xbf16>
    %196 = vector.shape_cast %195 : vector<1x1x96x84xbf16> to vector<96x84xbf16>
    %cst_248 = arith.constant dense<0.000000e+00> : vector<7x84xf32>
    %197 = tpu.matmul %190, %196, %cst_248 {dimension_numbers = #tpu.dot_dimension_numbers<[1], [0], [0], [1], [0, 0, 1, 1], [], []>} : vector<7x96xbf16>, vector<96x84xbf16>, vector<7x84xf32> -> vector<7x84xf32>
    %198 = arith.addf %187, %197 : vector<7x84xf32>
    %c2_249 = arith.constant 2 : index
    %c0_250 = arith.constant 0 : index
    %c1_251 = arith.constant 1 : index
    %c0_252 = arith.constant 0 : index
    %199 = vector.load %arg1[%c2_249, %c0_250, %c1_251, %c0_252] : memref<4x1x8x96xf32, #tpu.memory_space<vmem>>, vector<1x1x7x96xf32>
    %200 = vector.shape_cast %199 : vector<1x1x7x96xf32> to vector<7x96xf32>
    %201 = arith.truncf %200 : vector<7x96xf32> to vector<7x96xbf16>
    %c0_253 = arith.constant 0 : index
    %c3_254 = arith.constant 3 : index
    %c0_255 = arith.constant 0 : index
    %c0_256 = arith.constant 0 : index
    %202 = vector.load %arg2[%c0_253, %c3_254, %c0_255, %c0_256] : memref<2x5x96x84xbf16, #tpu.memory_space<vmem>>, vector<1x1x96x84xbf16>
    %203 = vector.shape_cast %202 : vector<1x1x96x84xbf16> to vector<96x84xbf16>
    %cst_257 = arith.constant dense<0.000000e+00> : vector<7x84xf32>
    %204 = tpu.matmul %201, %203, %cst_257 {dimension_numbers = #tpu.dot_dimension_numbers<[1], [0], [0], [1], [0, 0, 1, 1], [], []>} : vector<7x96xbf16>, vector<96x84xbf16>, vector<7x84xf32> -> vector<7x84xf32>
    %205 = arith.addf %194, %204 : vector<7x84xf32>
    %c1_258 = arith.constant 1 : index
    %c3_259 = arith.constant 3 : index
    %c0_260 = arith.constant 0 : index
    %c0_261 = arith.constant 0 : index
    %206 = vector.load %arg2[%c1_258, %c3_259, %c0_260, %c0_261] : memref<2x5x96x84xbf16, #tpu.memory_space<vmem>>, vector<1x1x96x84xbf16>
    %207 = vector.shape_cast %206 : vector<1x1x96x84xbf16> to vector<96x84xbf16>
    %cst_262 = arith.constant dense<0.000000e+00> : vector<7x84xf32>
    %208 = tpu.matmul %201, %207, %cst_262 {dimension_numbers = #tpu.dot_dimension_numbers<[1], [0], [0], [1], [0, 0, 1, 1], [], []>} : vector<7x96xbf16>, vector<96x84xbf16>, vector<7x84xf32> -> vector<7x84xf32>
    %209 = arith.addf %198, %208 : vector<7x84xf32>
    %c3_263 = arith.constant 3 : index
    %c0_264 = arith.constant 0 : index
    %c1_265 = arith.constant 1 : index
    %c0_266 = arith.constant 0 : index
    %210 = vector.load %arg1[%c3_263, %c0_264, %c1_265, %c0_266] : memref<4x1x8x96xf32, #tpu.memory_space<vmem>>, vector<1x1x7x96xf32>
    %211 = vector.shape_cast %210 : vector<1x1x7x96xf32> to vector<7x96xf32>
    %212 = arith.truncf %211 : vector<7x96xf32> to vector<7x96xbf16>
    %c0_267 = arith.constant 0 : index
    %c4_268 = arith.constant 4 : index
    %c0_269 = arith.constant 0 : index
    %c0_270 = arith.constant 0 : index
    %213 = vector.load %arg2[%c0_267, %c4_268, %c0_269, %c0_270] : memref<2x5x96x84xbf16, #tpu.memory_space<vmem>>, vector<1x1x96x84xbf16>
    %214 = vector.shape_cast %213 : vector<1x1x96x84xbf16> to vector<96x84xbf16>
    %cst_271 = arith.constant dense<0.000000e+00> : vector<7x84xf32>
    %215 = tpu.matmul %212, %214, %cst_271 {dimension_numbers = #tpu.dot_dimension_numbers<[1], [0], [0], [1], [0, 0, 1, 1], [], []>} : vector<7x96xbf16>, vector<96x84xbf16>, vector<7x84xf32> -> vector<7x84xf32>
    %216 = arith.addf %205, %215 : vector<7x84xf32>
    %c1_272 = arith.constant 1 : index
    %c4_273 = arith.constant 4 : index
    %c0_274 = arith.constant 0 : index
    %c0_275 = arith.constant 0 : index
    %217 = vector.load %arg2[%c1_272, %c4_273, %c0_274, %c0_275] : memref<2x5x96x84xbf16, #tpu.memory_space<vmem>>, vector<1x1x96x84xbf16>
    %218 = vector.shape_cast %217 : vector<1x1x96x84xbf16> to vector<96x84xbf16>
    %cst_276 = arith.constant dense<0.000000e+00> : vector<7x84xf32>
    %219 = tpu.matmul %212, %218, %cst_276 {dimension_numbers = #tpu.dot_dimension_numbers<[1], [0], [0], [1], [0, 0, 1, 1], [], []>} : vector<7x96xbf16>, vector<96x84xbf16>, vector<7x84xf32> -> vector<7x84xf32>
    %220 = arith.addf %209, %219 : vector<7x84xf32>
    %221 = arith.maximumf %216, %220 : vector<7x84xf32>
    %222 = arith.maximumf %167, %221 : vector<7x84xf32>
    %c0_277 = arith.constant 0 : index
    %c0_278 = arith.constant 0 : index
    %223 = vector.load %arg3[%c0_277, %c0_278] : memref<1x84xf32, #tpu.memory_space<vmem>>, vector<1x84xf32>
    %224 = vector.broadcast %223 : vector<1x84xf32> to vector<7x84xf32>
    %225 = arith.addf %222, %224 : vector<7x84xf32>
    %cst_279 = arith.constant 0.000000e+00 : f32
    %226 = vector.broadcast %cst_279 : f32 to vector<7x84xf32>
    %227 = arith.maximumf %225, %226 : vector<7x84xf32>
    %228 = vector.extract_strided_slice %113 {offsets = [0, 0], sizes = [5, 84], strides = [1, 1]} : vector<7x84xf32> to vector<5x84xf32>
    %229 = arith.truncf %228 : vector<5x84xf32> to vector<5x84xbf16>
    %c0_280 = arith.constant 0 : index
    %c0_281 = arith.constant 0 : index
    %c0_282 = arith.constant 0 : index
    %c0_283 = arith.constant 0 : index
    %230 = vector.load %arg4[%c0_280, %c0_281, %c0_282, %c0_283] : memref<2x5x84x80xbf16, #tpu.memory_space<vmem>>, vector<1x1x84x80xbf16>
    %231 = vector.shape_cast %230 : vector<1x1x84x80xbf16> to vector<84x80xbf16>
    %cst_284 = arith.constant dense<0.000000e+00> : vector<5x80xf32>
    %232 = tpu.matmul %229, %231, %cst_284 {dimension_numbers = #tpu.dot_dimension_numbers<[1], [0], [0], [1], [0, 0, 1, 1], [], []>} : vector<5x84xbf16>, vector<84x80xbf16>, vector<5x80xf32> -> vector<5x80xf32>
    %c1_285 = arith.constant 1 : index
    %c0_286 = arith.constant 0 : index
    %c0_287 = arith.constant 0 : index
    %c0_288 = arith.constant 0 : index
    %233 = vector.load %arg4[%c1_285, %c0_286, %c0_287, %c0_288] : memref<2x5x84x80xbf16, #tpu.memory_space<vmem>>, vector<1x1x84x80xbf16>
    %234 = vector.shape_cast %233 : vector<1x1x84x80xbf16> to vector<84x80xbf16>
    %cst_289 = arith.constant dense<0.000000e+00> : vector<5x80xf32>
    %235 = tpu.matmul %229, %234, %cst_289 {dimension_numbers = #tpu.dot_dimension_numbers<[1], [0], [0], [1], [0, 0, 1, 1], [], []>} : vector<5x84xbf16>, vector<84x80xbf16>, vector<5x80xf32> -> vector<5x80xf32>
    %236 = vector.extract_strided_slice %227 {offsets = [0, 0], sizes = [5, 84], strides = [1, 1]} : vector<7x84xf32> to vector<5x84xf32>
    %237 = arith.truncf %236 : vector<5x84xf32> to vector<5x84xbf16>
    %c0_290 = arith.constant 0 : index
    %c1_291 = arith.constant 1 : index
    %c0_292 = arith.constant 0 : index
    %c0_293 = arith.constant 0 : index
    %238 = vector.load %arg4[%c0_290, %c1_291, %c0_292, %c0_293] : memref<2x5x84x80xbf16, #tpu.memory_space<vmem>>, vector<1x1x84x80xbf16>
    %239 = vector.shape_cast %238 : vector<1x1x84x80xbf16> to vector<84x80xbf16>
    %cst_294 = arith.constant dense<0.000000e+00> : vector<5x80xf32>
    %240 = tpu.matmul %237, %239, %cst_294 {dimension_numbers = #tpu.dot_dimension_numbers<[1], [0], [0], [1], [0, 0, 1, 1], [], []>} : vector<5x84xbf16>, vector<84x80xbf16>, vector<5x80xf32> -> vector<5x80xf32>
    %241 = arith.addf %232, %240 : vector<5x80xf32>
    %c1_295 = arith.constant 1 : index
    %c1_296 = arith.constant 1 : index
    %c0_297 = arith.constant 0 : index
    %c0_298 = arith.constant 0 : index
    %242 = vector.load %arg4[%c1_295, %c1_296, %c0_297, %c0_298] : memref<2x5x84x80xbf16, #tpu.memory_space<vmem>>, vector<1x1x84x80xbf16>
    %243 = vector.shape_cast %242 : vector<1x1x84x80xbf16> to vector<84x80xbf16>
    %cst_299 = arith.constant dense<0.000000e+00> : vector<5x80xf32>
    %244 = tpu.matmul %237, %243, %cst_299 {dimension_numbers = #tpu.dot_dimension_numbers<[1], [0], [0], [1], [0, 0, 1, 1], [], []>} : vector<5x84xbf16>, vector<84x80xbf16>, vector<5x80xf32> -> vector<5x80xf32>
    %245 = arith.addf %235, %244 : vector<5x80xf32>
    %246 = vector.extract_strided_slice %113 {offsets = [1, 0], sizes = [5, 84], strides = [1, 1]} : vector<7x84xf32> to vector<5x84xf32>
    %247 = arith.truncf %246 : vector<5x84xf32> to vector<5x84xbf16>
    %c0_300 = arith.constant 0 : index
    %c2_301 = arith.constant 2 : index
    %c0_302 = arith.constant 0 : index
    %c0_303 = arith.constant 0 : index
    %248 = vector.load %arg4[%c0_300, %c2_301, %c0_302, %c0_303] : memref<2x5x84x80xbf16, #tpu.memory_space<vmem>>, vector<1x1x84x80xbf16>
    %249 = vector.shape_cast %248 : vector<1x1x84x80xbf16> to vector<84x80xbf16>
    %cst_304 = arith.constant dense<0.000000e+00> : vector<5x80xf32>
    %250 = tpu.matmul %247, %249, %cst_304 {dimension_numbers = #tpu.dot_dimension_numbers<[1], [0], [0], [1], [0, 0, 1, 1], [], []>} : vector<5x84xbf16>, vector<84x80xbf16>, vector<5x80xf32> -> vector<5x80xf32>
    %251 = arith.addf %241, %250 : vector<5x80xf32>
    %c1_305 = arith.constant 1 : index
    %c2_306 = arith.constant 2 : index
    %c0_307 = arith.constant 0 : index
    %c0_308 = arith.constant 0 : index
    %252 = vector.load %arg4[%c1_305, %c2_306, %c0_307, %c0_308] : memref<2x5x84x80xbf16, #tpu.memory_space<vmem>>, vector<1x1x84x80xbf16>
    %253 = vector.shape_cast %252 : vector<1x1x84x80xbf16> to vector<84x80xbf16>
    %cst_309 = arith.constant dense<0.000000e+00> : vector<5x80xf32>
    %254 = tpu.matmul %247, %253, %cst_309 {dimension_numbers = #tpu.dot_dimension_numbers<[1], [0], [0], [1], [0, 0, 1, 1], [], []>} : vector<5x84xbf16>, vector<84x80xbf16>, vector<5x80xf32> -> vector<5x80xf32>
    %255 = arith.addf %245, %254 : vector<5x80xf32>
    %256 = vector.extract_strided_slice %227 {offsets = [1, 0], sizes = [5, 84], strides = [1, 1]} : vector<7x84xf32> to vector<5x84xf32>
    %257 = arith.truncf %256 : vector<5x84xf32> to vector<5x84xbf16>
    %c0_310 = arith.constant 0 : index
    %c3_311 = arith.constant 3 : index
    %c0_312 = arith.constant 0 : index
    %c0_313 = arith.constant 0 : index
    %258 = vector.load %arg4[%c0_310, %c3_311, %c0_312, %c0_313] : memref<2x5x84x80xbf16, #tpu.memory_space<vmem>>, vector<1x1x84x80xbf16>
    %259 = vector.shape_cast %258 : vector<1x1x84x80xbf16> to vector<84x80xbf16>
    %cst_314 = arith.constant dense<0.000000e+00> : vector<5x80xf32>
    %260 = tpu.matmul %257, %259, %cst_314 {dimension_numbers = #tpu.dot_dimension_numbers<[1], [0], [0], [1], [0, 0, 1, 1], [], []>} : vector<5x84xbf16>, vector<84x80xbf16>, vector<5x80xf32> -> vector<5x80xf32>
    %261 = arith.addf %251, %260 : vector<5x80xf32>
    %c1_315 = arith.constant 1 : index
    %c3_316 = arith.constant 3 : index
    %c0_317 = arith.constant 0 : index
    %c0_318 = arith.constant 0 : index
    %262 = vector.load %arg4[%c1_315, %c3_316, %c0_317, %c0_318] : memref<2x5x84x80xbf16, #tpu.memory_space<vmem>>, vector<1x1x84x80xbf16>
    %263 = vector.shape_cast %262 : vector<1x1x84x80xbf16> to vector<84x80xbf16>
    %cst_319 = arith.constant dense<0.000000e+00> : vector<5x80xf32>
    %264 = tpu.matmul %257, %263, %cst_319 {dimension_numbers = #tpu.dot_dimension_numbers<[1], [0], [0], [1], [0, 0, 1, 1], [], []>} : vector<5x84xbf16>, vector<84x80xbf16>, vector<5x80xf32> -> vector<5x80xf32>
    %265 = arith.addf %255, %264 : vector<5x80xf32>
    %266 = vector.extract_strided_slice %113 {offsets = [2, 0], sizes = [5, 84], strides = [1, 1]} : vector<7x84xf32> to vector<5x84xf32>
    %267 = arith.truncf %266 : vector<5x84xf32> to vector<5x84xbf16>
    %c0_320 = arith.constant 0 : index
    %c4_321 = arith.constant 4 : index
    %c0_322 = arith.constant 0 : index
    %c0_323 = arith.constant 0 : index
    %268 = vector.load %arg4[%c0_320, %c4_321, %c0_322, %c0_323] : memref<2x5x84x80xbf16, #tpu.memory_space<vmem>>, vector<1x1x84x80xbf16>
    %269 = vector.shape_cast %268 : vector<1x1x84x80xbf16> to vector<84x80xbf16>
    %cst_324 = arith.constant dense<0.000000e+00> : vector<5x80xf32>
    %270 = tpu.matmul %267, %269, %cst_324 {dimension_numbers = #tpu.dot_dimension_numbers<[1], [0], [0], [1], [0, 0, 1, 1], [], []>} : vector<5x84xbf16>, vector<84x80xbf16>, vector<5x80xf32> -> vector<5x80xf32>
    %271 = arith.addf %261, %270 : vector<5x80xf32>
    %c1_325 = arith.constant 1 : index
    %c4_326 = arith.constant 4 : index
    %c0_327 = arith.constant 0 : index
    %c0_328 = arith.constant 0 : index
    %272 = vector.load %arg4[%c1_325, %c4_326, %c0_327, %c0_328] : memref<2x5x84x80xbf16, #tpu.memory_space<vmem>>, vector<1x1x84x80xbf16>
    %273 = vector.shape_cast %272 : vector<1x1x84x80xbf16> to vector<84x80xbf16>
    %cst_329 = arith.constant dense<0.000000e+00> : vector<5x80xf32>
    %274 = tpu.matmul %267, %273, %cst_329 {dimension_numbers = #tpu.dot_dimension_numbers<[1], [0], [0], [1], [0, 0, 1, 1], [], []>} : vector<5x84xbf16>, vector<84x80xbf16>, vector<5x80xf32> -> vector<5x80xf32>
    %275 = arith.addf %265, %274 : vector<5x80xf32>
    %276 = arith.maximumf %271, %275 : vector<5x80xf32>
    %277 = vector.extract_strided_slice %227 {offsets = [0, 0], sizes = [5, 84], strides = [1, 1]} : vector<7x84xf32> to vector<5x84xf32>
    %278 = arith.truncf %277 : vector<5x84xf32> to vector<5x84xbf16>
    %c0_330 = arith.constant 0 : index
    %c0_331 = arith.constant 0 : index
    %c0_332 = arith.constant 0 : index
    %c0_333 = arith.constant 0 : index
    %279 = vector.load %arg4[%c0_330, %c0_331, %c0_332, %c0_333] : memref<2x5x84x80xbf16, #tpu.memory_space<vmem>>, vector<1x1x84x80xbf16>
    %280 = vector.shape_cast %279 : vector<1x1x84x80xbf16> to vector<84x80xbf16>
    %cst_334 = arith.constant dense<0.000000e+00> : vector<5x80xf32>
    %281 = tpu.matmul %278, %280, %cst_334 {dimension_numbers = #tpu.dot_dimension_numbers<[1], [0], [0], [1], [0, 0, 1, 1], [], []>} : vector<5x84xbf16>, vector<84x80xbf16>, vector<5x80xf32> -> vector<5x80xf32>
    %c1_335 = arith.constant 1 : index
    %c0_336 = arith.constant 0 : index
    %c0_337 = arith.constant 0 : index
    %c0_338 = arith.constant 0 : index
    %282 = vector.load %arg4[%c1_335, %c0_336, %c0_337, %c0_338] : memref<2x5x84x80xbf16, #tpu.memory_space<vmem>>, vector<1x1x84x80xbf16>
    %283 = vector.shape_cast %282 : vector<1x1x84x80xbf16> to vector<84x80xbf16>
    %cst_339 = arith.constant dense<0.000000e+00> : vector<5x80xf32>
    %284 = tpu.matmul %278, %283, %cst_339 {dimension_numbers = #tpu.dot_dimension_numbers<[1], [0], [0], [1], [0, 0, 1, 1], [], []>} : vector<5x84xbf16>, vector<84x80xbf16>, vector<5x80xf32> -> vector<5x80xf32>
    %285 = vector.extract_strided_slice %113 {offsets = [1, 0], sizes = [5, 84], strides = [1, 1]} : vector<7x84xf32> to vector<5x84xf32>
    %286 = arith.truncf %285 : vector<5x84xf32> to vector<5x84xbf16>
    %c0_340 = arith.constant 0 : index
    %c1_341 = arith.constant 1 : index
    %c0_342 = arith.constant 0 : index
    %c0_343 = arith.constant 0 : index
    %287 = vector.load %arg4[%c0_340, %c1_341, %c0_342, %c0_343] : memref<2x5x84x80xbf16, #tpu.memory_space<vmem>>, vector<1x1x84x80xbf16>
    %288 = vector.shape_cast %287 : vector<1x1x84x80xbf16> to vector<84x80xbf16>
    %cst_344 = arith.constant dense<0.000000e+00> : vector<5x80xf32>
    %289 = tpu.matmul %286, %288, %cst_344 {dimension_numbers = #tpu.dot_dimension_numbers<[1], [0], [0], [1], [0, 0, 1, 1], [], []>} : vector<5x84xbf16>, vector<84x80xbf16>, vector<5x80xf32> -> vector<5x80xf32>
    %290 = arith.addf %281, %289 : vector<5x80xf32>
    %c1_345 = arith.constant 1 : index
    %c1_346 = arith.constant 1 : index
    %c0_347 = arith.constant 0 : index
    %c0_348 = arith.constant 0 : index
    %291 = vector.load %arg4[%c1_345, %c1_346, %c0_347, %c0_348] : memref<2x5x84x80xbf16, #tpu.memory_space<vmem>>, vector<1x1x84x80xbf16>
    %292 = vector.shape_cast %291 : vector<1x1x84x80xbf16> to vector<84x80xbf16>
    %cst_349 = arith.constant dense<0.000000e+00> : vector<5x80xf32>
    %293 = tpu.matmul %286, %292, %cst_349 {dimension_numbers = #tpu.dot_dimension_numbers<[1], [0], [0], [1], [0, 0, 1, 1], [], []>} : vector<5x84xbf16>, vector<84x80xbf16>, vector<5x80xf32> -> vector<5x80xf32>
    %294 = arith.addf %284, %293 : vector<5x80xf32>
    %295 = vector.extract_strided_slice %227 {offsets = [1, 0], sizes = [5, 84], strides = [1, 1]} : vector<7x84xf32> to vector<5x84xf32>
    %296 = arith.truncf %295 : vector<5x84xf32> to vector<5x84xbf16>
    %c0_350 = arith.constant 0 : index
    %c2_351 = arith.constant 2 : index
    %c0_352 = arith.constant 0 : index
    %c0_353 = arith.constant 0 : index
    %297 = vector.load %arg4[%c0_350, %c2_351, %c0_352, %c0_353] : memref<2x5x84x80xbf16, #tpu.memory_space<vmem>>, vector<1x1x84x80xbf16>
    %298 = vector.shape_cast %297 : vector<1x1x84x80xbf16> to vector<84x80xbf16>
    %cst_354 = arith.constant dense<0.000000e+00> : vector<5x80xf32>
    %299 = tpu.matmul %296, %298, %cst_354 {dimension_numbers = #tpu.dot_dimension_numbers<[1], [0], [0], [1], [0, 0, 1, 1], [], []>} : vector<5x84xbf16>, vector<84x80xbf16>, vector<5x80xf32> -> vector<5x80xf32>
    %300 = arith.addf %290, %299 : vector<5x80xf32>
    %c1_355 = arith.constant 1 : index
    %c2_356 = arith.constant 2 : index
    %c0_357 = arith.constant 0 : index
    %c0_358 = arith.constant 0 : index
    %301 = vector.load %arg4[%c1_355, %c2_356, %c0_357, %c0_358] : memref<2x5x84x80xbf16, #tpu.memory_space<vmem>>, vector<1x1x84x80xbf16>
    %302 = vector.shape_cast %301 : vector<1x1x84x80xbf16> to vector<84x80xbf16>
    %cst_359 = arith.constant dense<0.000000e+00> : vector<5x80xf32>
    %303 = tpu.matmul %296, %302, %cst_359 {dimension_numbers = #tpu.dot_dimension_numbers<[1], [0], [0], [1], [0, 0, 1, 1], [], []>} : vector<5x84xbf16>, vector<84x80xbf16>, vector<5x80xf32> -> vector<5x80xf32>
    %304 = arith.addf %294, %303 : vector<5x80xf32>
    %305 = vector.extract_strided_slice %113 {offsets = [2, 0], sizes = [5, 84], strides = [1, 1]} : vector<7x84xf32> to vector<5x84xf32>
    %306 = arith.truncf %305 : vector<5x84xf32> to vector<5x84xbf16>
    %c0_360 = arith.constant 0 : index
    %c3_361 = arith.constant 3 : index
    %c0_362 = arith.constant 0 : index
    %c0_363 = arith.constant 0 : index
    %307 = vector.load %arg4[%c0_360, %c3_361, %c0_362, %c0_363] : memref<2x5x84x80xbf16, #tpu.memory_space<vmem>>, vector<1x1x84x80xbf16>
    %308 = vector.shape_cast %307 : vector<1x1x84x80xbf16> to vector<84x80xbf16>
    %cst_364 = arith.constant dense<0.000000e+00> : vector<5x80xf32>
    %309 = tpu.matmul %306, %308, %cst_364 {dimension_numbers = #tpu.dot_dimension_numbers<[1], [0], [0], [1], [0, 0, 1, 1], [], []>} : vector<5x84xbf16>, vector<84x80xbf16>, vector<5x80xf32> -> vector<5x80xf32>
    %310 = arith.addf %300, %309 : vector<5x80xf32>
    %c1_365 = arith.constant 1 : index
    %c3_366 = arith.constant 3 : index
    %c0_367 = arith.constant 0 : index
    %c0_368 = arith.constant 0 : index
    %311 = vector.load %arg4[%c1_365, %c3_366, %c0_367, %c0_368] : memref<2x5x84x80xbf16, #tpu.memory_space<vmem>>, vector<1x1x84x80xbf16>
    %312 = vector.shape_cast %311 : vector<1x1x84x80xbf16> to vector<84x80xbf16>
    %cst_369 = arith.constant dense<0.000000e+00> : vector<5x80xf32>
    %313 = tpu.matmul %306, %312, %cst_369 {dimension_numbers = #tpu.dot_dimension_numbers<[1], [0], [0], [1], [0, 0, 1, 1], [], []>} : vector<5x84xbf16>, vector<84x80xbf16>, vector<5x80xf32> -> vector<5x80xf32>
    %314 = arith.addf %304, %313 : vector<5x80xf32>
    %315 = vector.extract_strided_slice %227 {offsets = [2, 0], sizes = [5, 84], strides = [1, 1]} : vector<7x84xf32> to vector<5x84xf32>
    %316 = arith.truncf %315 : vector<5x84xf32> to vector<5x84xbf16>
    %c0_370 = arith.constant 0 : index
    %c4_371 = arith.constant 4 : index
    %c0_372 = arith.constant 0 : index
    %c0_373 = arith.constant 0 : index
    %317 = vector.load %arg4[%c0_370, %c4_371, %c0_372, %c0_373] : memref<2x5x84x80xbf16, #tpu.memory_space<vmem>>, vector<1x1x84x80xbf16>
    %318 = vector.shape_cast %317 : vector<1x1x84x80xbf16> to vector<84x80xbf16>
    %cst_374 = arith.constant dense<0.000000e+00> : vector<5x80xf32>
    %319 = tpu.matmul %316, %318, %cst_374 {dimension_numbers = #tpu.dot_dimension_numbers<[1], [0], [0], [1], [0, 0, 1, 1], [], []>} : vector<5x84xbf16>, vector<84x80xbf16>, vector<5x80xf32> -> vector<5x80xf32>
    %320 = arith.addf %310, %319 : vector<5x80xf32>
    %c1_375 = arith.constant 1 : index
    %c4_376 = arith.constant 4 : index
    %c0_377 = arith.constant 0 : index
    %c0_378 = arith.constant 0 : index
    %321 = vector.load %arg4[%c1_375, %c4_376, %c0_377, %c0_378] : memref<2x5x84x80xbf16, #tpu.memory_space<vmem>>, vector<1x1x84x80xbf16>
    %322 = vector.shape_cast %321 : vector<1x1x84x80xbf16> to vector<84x80xbf16>
    %cst_379 = arith.constant dense<0.000000e+00> : vector<5x80xf32>
    %323 = tpu.matmul %316, %322, %cst_379 {dimension_numbers = #tpu.dot_dimension_numbers<[1], [0], [0], [1], [0, 0, 1, 1], [], []>} : vector<5x84xbf16>, vector<84x80xbf16>, vector<5x80xf32> -> vector<5x80xf32>
    %324 = arith.addf %314, %323 : vector<5x80xf32>
    %325 = arith.maximumf %320, %324 : vector<5x80xf32>
    %326 = arith.maximumf %276, %325 : vector<5x80xf32>
    %c0_380 = arith.constant 0 : index
    %c0_381 = arith.constant 0 : index
    %327 = vector.load %arg5[%c0_380, %c0_381] : memref<1x80xf32, #tpu.memory_space<vmem>>, vector<1x80xf32>
    %328 = vector.broadcast %327 : vector<1x80xf32> to vector<5x80xf32>
    %329 = arith.addf %326, %328 : vector<5x80xf32>
    %cst_382 = arith.constant 0.000000e+00 : f32
    %330 = vector.broadcast %cst_382 : f32 to vector<5x80xf32>
    %331 = arith.maximumf %329, %330 : vector<5x80xf32>
    %332 = vector.extract_strided_slice %331 {offsets = [0, 0], sizes = [1, 80], strides = [1, 1]} : vector<5x80xf32> to vector<1x80xf32>
    %333 = arith.truncf %332 : vector<1x80xf32> to vector<1x80xbf16>
    %c0_383 = arith.constant 0 : index
    %c0_384 = arith.constant 0 : index
    %c0_385 = arith.constant 0 : index
    %334 = vector.load %arg6[%c0_383, %c0_384, %c0_385] : memref<5x80x128xbf16, #tpu.memory_space<vmem>>, vector<1x80x128xbf16>
    %335 = vector.shape_cast %334 : vector<1x80x128xbf16> to vector<80x128xbf16>
    %cst_386 = arith.constant dense<0.000000e+00> : vector<1x128xf32>
    %336 = tpu.matmul %333, %335, %cst_386 {dimension_numbers = #tpu.dot_dimension_numbers<[1], [0], [0], [1], [0, 0, 1, 1], [], []>} : vector<1x80xbf16>, vector<80x128xbf16>, vector<1x128xf32> -> vector<1x128xf32>
    %337 = vector.extract_strided_slice %331 {offsets = [1, 0], sizes = [1, 80], strides = [1, 1]} : vector<5x80xf32> to vector<1x80xf32>
    %338 = arith.truncf %337 : vector<1x80xf32> to vector<1x80xbf16>
    %c1_387 = arith.constant 1 : index
    %c0_388 = arith.constant 0 : index
    %c0_389 = arith.constant 0 : index
    %339 = vector.load %arg6[%c1_387, %c0_388, %c0_389] : memref<5x80x128xbf16, #tpu.memory_space<vmem>>, vector<1x80x128xbf16>
    %340 = vector.shape_cast %339 : vector<1x80x128xbf16> to vector<80x128xbf16>
    %cst_390 = arith.constant dense<0.000000e+00> : vector<1x128xf32>
    %341 = tpu.matmul %338, %340, %cst_390 {dimension_numbers = #tpu.dot_dimension_numbers<[1], [0], [0], [1], [0, 0, 1, 1], [], []>} : vector<1x80xbf16>, vector<80x128xbf16>, vector<1x128xf32> -> vector<1x128xf32>
    %342 = arith.addf %336, %341 : vector<1x128xf32>
    %343 = vector.extract_strided_slice %331 {offsets = [2, 0], sizes = [1, 80], strides = [1, 1]} : vector<5x80xf32> to vector<1x80xf32>
    %344 = arith.truncf %343 : vector<1x80xf32> to vector<1x80xbf16>
    %c2_391 = arith.constant 2 : index
    %c0_392 = arith.constant 0 : index
    %c0_393 = arith.constant 0 : index
    %345 = vector.load %arg6[%c2_391, %c0_392, %c0_393] : memref<5x80x128xbf16, #tpu.memory_space<vmem>>, vector<1x80x128xbf16>
    %346 = vector.shape_cast %345 : vector<1x80x128xbf16> to vector<80x128xbf16>
    %cst_394 = arith.constant dense<0.000000e+00> : vector<1x128xf32>
    %347 = tpu.matmul %344, %346, %cst_394 {dimension_numbers = #tpu.dot_dimension_numbers<[1], [0], [0], [1], [0, 0, 1, 1], [], []>} : vector<1x80xbf16>, vector<80x128xbf16>, vector<1x128xf32> -> vector<1x128xf32>
    %348 = arith.addf %342, %347 : vector<1x128xf32>
    %349 = vector.extract_strided_slice %331 {offsets = [3, 0], sizes = [1, 80], strides = [1, 1]} : vector<5x80xf32> to vector<1x80xf32>
    %350 = arith.truncf %349 : vector<1x80xf32> to vector<1x80xbf16>
    %c3_395 = arith.constant 3 : index
    %c0_396 = arith.constant 0 : index
    %c0_397 = arith.constant 0 : index
    %351 = vector.load %arg6[%c3_395, %c0_396, %c0_397] : memref<5x80x128xbf16, #tpu.memory_space<vmem>>, vector<1x80x128xbf16>
    %352 = vector.shape_cast %351 : vector<1x80x128xbf16> to vector<80x128xbf16>
    %cst_398 = arith.constant dense<0.000000e+00> : vector<1x128xf32>
    %353 = tpu.matmul %350, %352, %cst_398 {dimension_numbers = #tpu.dot_dimension_numbers<[1], [0], [0], [1], [0, 0, 1, 1], [], []>} : vector<1x80xbf16>, vector<80x128xbf16>, vector<1x128xf32> -> vector<1x128xf32>
    %354 = arith.addf %348, %353 : vector<1x128xf32>
    %355 = vector.extract_strided_slice %331 {offsets = [4, 0], sizes = [1, 80], strides = [1, 1]} : vector<5x80xf32> to vector<1x80xf32>
    %356 = arith.truncf %355 : vector<1x80xf32> to vector<1x80xbf16>
    %c4_399 = arith.constant 4 : index
    %c0_400 = arith.constant 0 : index
    %c0_401 = arith.constant 0 : index
    %357 = vector.load %arg6[%c4_399, %c0_400, %c0_401] : memref<5x80x128xbf16, #tpu.memory_space<vmem>>, vector<1x80x128xbf16>
    %358 = vector.shape_cast %357 : vector<1x80x128xbf16> to vector<80x128xbf16>
    %cst_402 = arith.constant dense<0.000000e+00> : vector<1x128xf32>
    %359 = tpu.matmul %356, %358, %cst_402 {dimension_numbers = #tpu.dot_dimension_numbers<[1], [0], [0], [1], [0, 0, 1, 1], [], []>} : vector<1x80xbf16>, vector<80x128xbf16>, vector<1x128xf32> -> vector<1x128xf32>
    %360 = arith.addf %354, %359 : vector<1x128xf32>
    %c0_403 = arith.constant 0 : index
    %c0_404 = arith.constant 0 : index
    %361 = vector.load %arg7[%c0_403, %c0_404] : memref<1x128xf32, #tpu.memory_space<vmem>>, vector<1x128xf32>
    %362 = arith.addf %360, %361 : vector<1x128xf32>
    %cst_405 = arith.constant 0.000000e+00 : f32
    %363 = vector.broadcast %cst_405 : f32 to vector<1x128xf32>
    %364 = arith.maximumf %362, %363 : vector<1x128xf32>
    %365 = arith.truncf %364 : vector<1x128xf32> to vector<1x128xbf16>
    %c0_406 = arith.constant 0 : index
    %c0_407 = arith.constant 0 : index
    %366 = vector.load %arg8[%c0_406, %c0_407] : memref<128x128xbf16, #tpu.memory_space<vmem>>, vector<128x128xbf16>
    %cst_408 = arith.constant dense<0.000000e+00> : vector<1x128xf32>
    %367 = tpu.matmul %365, %366, %cst_408 {dimension_numbers = #tpu.dot_dimension_numbers<[1], [0], [0], [1], [0, 0, 1, 1], [], []>} : vector<1x128xbf16>, vector<128x128xbf16>, vector<1x128xf32> -> vector<1x128xf32>
    %c0_409 = arith.constant 0 : index
    %c0_410 = arith.constant 0 : index
    %368 = vector.load %arg9[%c0_409, %c0_410] : memref<1x128xf32, #tpu.memory_space<vmem>>, vector<1x128xf32>
    %369 = arith.addf %367, %368 : vector<1x128xf32>
    %cst_411 = arith.constant 0.000000e+00 : f32
    %370 = vector.broadcast %cst_411 : f32 to vector<1x128xf32>
    %371 = arith.maximumf %369, %370 : vector<1x128xf32>
    %372 = arith.truncf %371 : vector<1x128xf32> to vector<1x128xbf16>
    %c0_412 = arith.constant 0 : index
    %c0_413 = arith.constant 0 : index
    %373 = vector.load %arg10[%c0_412, %c0_413] : memref<128x128xbf16, #tpu.memory_space<vmem>>, vector<128x128xbf16>
    %cst_414 = arith.constant dense<0.000000e+00> : vector<1x128xf32>
    %374 = tpu.matmul %372, %373, %cst_414 {dimension_numbers = #tpu.dot_dimension_numbers<[1], [0], [0], [1], [0, 0, 1, 1], [], []>} : vector<1x128xbf16>, vector<128x128xbf16>, vector<1x128xf32> -> vector<1x128xf32>
    %c0_415 = arith.constant 0 : index
    %c0_416 = arith.constant 0 : index
    %375 = vector.load %arg11[%c0_415, %c0_416] : memref<1x128xf32, #tpu.memory_space<vmem>>, vector<1x128xf32>
    %376 = arith.addf %374, %375 : vector<1x128xf32>
    %c0_417 = arith.constant 0 : index
    %c0_418 = arith.constant 0 : index
    %c0_419 = arith.constant 0 : index
    %377 = vector.load %arg12[%c0_417, %c0_418, %c0_419] : memref<1x1x128xf32, #tpu.memory_space<vmem>>, vector<1x1x128xf32>
    %378 = vector.shape_cast %377 : vector<1x1x128xf32> to vector<1x128xf32>
    %379 = vector.shape_cast %376 : vector<1x128xf32> to vector<1x1x128xf32>
    tpu.vector_store %arg12[%c0_417, %c0_418, %c0_419], %379 {strides = array<i32>} : memref<1x1x128xf32, #tpu.memory_space<vmem>>, vector<1x1x128xf32>,
    return
  }
  func.func @transform_0(%arg0: i32) -> (i32, i32, i32, i32) {
    %c0_i32 = arith.constant 0 : i32
    %c0_i32_0 = arith.constant 0 : i32
    %c0_i32_1 = arith.constant 0 : i32
    %c0_i32_2 = arith.constant 0 : i32
    return %c0_i32, %arg0, %c0_i32_0, %c0_i32_1 : i32, i32, i32, i32
  }
  func.func @transform_1(%arg0: i32) -> (i32, i32, i32, i32) {
    %c0_i32 = arith.constant 0 : i32
    %c0_i32_0 = arith.constant 0 : i32
    %c0_i32_1 = arith.constant 0 : i32
    %c0_i32_2 = arith.constant 0 : i32
    %c0_i32_3 = arith.constant 0 : i32
    return %c0_i32, %c0_i32_0, %c0_i32_1, %c0_i32_2 : i32, i32, i32, i32
  }
  func.func @transform_2(%arg0: i32) -> (i32, i32) {
    %c0_i32 = arith.constant 0 : i32
    %c0_i32_0 = arith.constant 0 : i32
    %c0_i32_1 = arith.constant 0 : i32
    return %c0_i32, %c0_i32_0 : i32, i32
  }
  func.func @transform_3(%arg0: i32) -> (i32, i32, i32, i32) {
    %c0_i32 = arith.constant 0 : i32
    %c0_i32_0 = arith.constant 0 : i32
    %c0_i32_1 = arith.constant 0 : i32
    %c0_i32_2 = arith.constant 0 : i32
    %c0_i32_3 = arith.constant 0 : i32
    return %c0_i32, %c0_i32_0, %c0_i32_1, %c0_i32_2 : i32, i32, i32, i32
  }
  func.func @transform_4(%arg0: i32) -> (i32, i32) {
    %c0_i32 = arith.constant 0 : i32
    %c0_i32_0 = arith.constant 0 : i32
    %c0_i32_1 = arith.constant 0 : i32
    return %c0_i32, %c0_i32_0 : i32, i32
  }
  func.func @transform_5(%arg0: i32) -> (i32, i32, i32) {
    %c0_i32 = arith.constant 0 : i32
    %c0_i32_0 = arith.constant 0 : i32
    %c0_i32_1 = arith.constant 0 : i32
    %c0_i32_2 = arith.constant 0 : i32
    return %c0_i32, %c0_i32_0, %c0_i32_1 : i32, i32, i32
  }
  func.func @transform_6(%arg0: i32) -> (i32, i32) {
    %c0_i32 = arith.constant 0 : i32
    %c0_i32_0 = arith.constant 0 : i32
    %c0_i32_1 = arith.constant 0 : i32
    return %c0_i32, %c0_i32_0 : i32, i32
  }
  func.func @transform_7(%arg0: i32) -> (i32, i32) {
    %c0_i32 = arith.constant 0 : i32
    %c0_i32_0 = arith.constant 0 : i32
    %c0_i32_1 = arith.constant 0 : i32
    return %c0_i32, %c0_i32_0 : i32, i32
  }
  func.func @transform_8(%arg0: i32) -> (i32, i32) {
    %c0_i32 = arith.constant 0 : i32
    %c0_i32_0 = arith.constant 0 : i32
    %c0_i32_1 = arith.constant 0 : i32
    return %c0_i32, %c0_i32_0 : i32, i32
  }
  func.func @transform_9(%arg0: i32) -> (i32, i32) {
    %c0_i32 = arith.constant 0 : i32
    %c0_i32_0 = arith.constant 0 : i32
    %c0_i32_1 = arith.constant 0 : i32
    return %c0_i32, %c0_i32_0 : i32, i32
  }
  func.func @transform_10(%arg0: i32) -> (i32, i32) {
    %c0_i32 = arith.constant 0 : i32
    %c0_i32_0 = arith.constant 0 : i32
    %c0_i32_1 = arith.constant 0 : i32
    return %c0_i32, %c0_i32_0 : i32, i32
  }
  func.func @transform_11(%arg0: i32) -> (i32, i32, i32) {
    %c0_i32 = arith.constant 0 : i32
    %c0_i32_0 = arith.constant 0 : i32
    %c0_i32_1 = arith.constant 0 : i32
    return %arg0, %c0_i32, %c0_i32_0 : i32, i32, i32
  }
}

</mosaic_0001>

<bundles_post_ra>
// kernel: lenet_forward.1
= control target key start
LH: loop header
LB: loop body
LE: loop exit
PB: predicated region body
PF: predicated region fallthrough
CT: control target
= control target key end

     0   :  { %16 = vsyncpa [#allocation4], 0  ;;  %s9394_s0 = inlined_call_operand.vmem [shape: f32[4,2,8,96], index: 0, kind: input, shape index: {}]   ;;  %s9395_s1 = inlined_call_operand.vmem [shape: bf16[2,5,96,84], index: 1, kind: input, shape index: {}]   ;;  %s9396_s2 = inlined_call_operand.vmem [shape: f32[1,84], index: 2, kind: input, shape index: {}]   ;;  %s9397_s3 = inlined_call_operand.vmem [shape: bf16[2,5,84,80], index: 3, kind: input, shape index: {}]   ;;  %s9398_s4 = inlined_call_operand.vmem [shape: f32[1,80], index: 4, kind: input, shape index: {}]   ;;  %s9399_s5 = inlined_call_operand.vmem [shape: bf16[5,80,128], index: 5, kind: input, shape index: {}]   ;;  %s9400_s6 = inlined_call_operand.vmem [shape: f32[1,128], index: 6, kind: input, shape index: {}]   ;;  %s9401_s7 = inlined_call_operand.vmem [shape: bf16[128,128], index: 7, kind: input, shape index: {}]   ;;  %s9402_s8 = inlined_call_operand.vmem [shape: f32[1,128], index: 8, kind: input, shape index: {}]   ;;  %s9403_s9 = inlined_call_operand.vmem [shape: bf16[128,128], index: 9, kind: input, shape index: {}]   ;;  %s9404_s10 = inlined_call_operand.vmem [shape: f32[1,128], index: 10, kind: input, shape index: {}]   ;;  %s9405_s11 = inlined_call_operand.hbm [shape: f32[2,1,128], index: 11, kind: output, shape index: {}]  }
   0x1   :  { %18 = vsyncpa [#allocation4 + $0x1], 0  ;;  %s7273_s17 = smov 0   ;;  %s7275_s18 = smov 0  }
   0x2   :  { %s7277_s19 = smov 0   ;;  %s7279_s20 = smov 0  }
   0x3 LB: > { %s4666_s21 = sadd.s32 4294967295, %s7208_s20   ;;  %s4667_s22 = sadd.s32 4294967294, %s7208_s20   ;;  %s7208_s20 = sphi %s7279_s20, %s9427_s20   ;;  %s7204_s19 = sphi %s7277_s19, %s9426_s19   ;;  %s7200_s18 = sphi %s7275_s18, %s9425_s18   ;;  %s7196_s17 = sphi %s7273_s17, %s9424_s17  }
   0x4   : > { %s7296_s23 = sadd.s32 1, %s7208_s20   ;;  %s31_s24 = sadd.s32 1, %s7204_s19 }
   0x5   : > { %s28_s25 = ssub.s32 %s7208_s20, %s7296_s23  ;;  %p38_p0 = scmp.ne.s32.totalorder %s7204_s19, %s7200_s18 }
   0x6   : > { %p29_p1 = scmp.eq.s32.totalorder %s28_s25, 0  ;;  %p39_p2 = scmp.eq.s32.totalorder %s7208_s20, 0 }
   0x7   : > { %p278_p3 = scmp.eq.s32.totalorder %s4666_s21, 1  ;;  %p283_p4 = scmp.ne.s32.totalorder %s7200_s18, %s7196_s17 }
   0x8   : > { %s7309_s26 = scalar_select %p29_p1, %s7204_s19, %s31_s24  }
   0x9   : > { %p40_p5 = por %p39_p2, %p38_p0  ;;  %p7311_p6 = por %p278_p3, %p38_p0 }
   0xa   : > { %p284_p7 = scmp.eq.s32.totalorder %s4667_s22, 1  ;;  %p4669_p9 = scmp.ge.s32.totalorder %s7208_s20, 2 }
   0xc   : > { %p7315_p8 = por %p284_p7, %p283_p4  ;;  %330 = sbr.rel (%p4669_p9) target bundleno = 26 (0x1a), region = 56 }
  0x13   : > { %333 = sbr.rel (!%p40_p5) target bundleno = 26 (0x1a), region = 60  ;;  %s335_s29 = sand.u32 (%p40_p5), 1, %s7204_s19  }
  0x14   : > { %s4671_s30 = sshll.u32 (%p40_p5), %s7208_s20, 3  ;;  %s4670_s12 = sshll.u32 (%p40_p5), %s335_s29, 5 }
  0x15   : > { %s339_s15 = scalar_lea.vmem (%p40_p5), %s9394_s0, %s4671_s30  ;;  %s337_s16 = scalar_lea.vmem (%p40_p5), [#allocation2], %s4670_s12 }
  0x16   : > { %v373_v0 = vld [vmem:[%s339_s15] sm:$0xff] (%p40_p5)  ;;  %v375_v1 = vld [vmem:[%s339_s15 + $0x10] sm:$0xff] (%p40_p5) }
  0x17   : > { %v377_v2 = vld [vmem:[%s339_s15 + $0x20] sm:$0xff] (%p40_p5)  ;;  %374 = vst [vmem:[%s337_s16] sm:$0xff] (%p40_p5), %v373_v0  ;;  %376 = vst [vmem:[%s337_s16 + $0x8] sm:$0xff] (%p40_p5), %v375_v1  ;;  %v379_v3 = vld [vmem:[%s339_s15 + $0x30] sm:$0xff] (%p40_p5) }
  0x18   : > { %378 = vst [vmem:[%s337_s16 + $0x10] sm:$0xff] (%p40_p5), %v377_v2  ;;  %380 = vst [vmem:[%s337_s16 + $0x18] sm:$0xff] (%p40_p5), %v379_v3 }
  0x1a PF: > { %p4672_p10 = scmp.ge.s32.totalorder %s7208_s20, 1  ;;  %p385_p11 = scmp.lt.s32.totalorder %s7208_s20, 3 }
  0x1c   : > { %p386_p12 = pnand %p4672_p10, %p385_p11 }
  0x1e   : > { %389 = sbr.rel (%p386_p12) target bundleno = 1887 (0x75f), region = 98 }
  0x25   : > { %v6929_v4 = vld [vmem:[%s9395_s1 + $0x30] sm:$0xff]   ;;  %v7210_v5 = vmov 0.0   ;;  %v6930_v6 = vld [vmem:[%s9395_s1 + $0x120] sm:$0xff]   ;;  %v6931_v7 = vld [vmem:[%s9395_s1 + $0x38] sm:$0xff]   ;;  %vm7211_vm0 = vmmov 0   ;;  %s7360_s25 = sand.u32 1, %s7200_s18  }
  0x26   : > { %5626 = vmatprep.subr.bf16.mxu0 %v7210_v5  ;;  %5658 = vmatprep.subr.bf16.mxu1 %v7210_v5  ;;  %v6932_v8 = vld [vmem:[%s9395_s1 + $0x128] sm:$0xff]   ;;  %v6933_v9 = vld [vmem:[%s9395_s1 + $0x40] sm:$0xff]   ;;  %v7356_v10 = vld [vmem:[%s9395_s1 + $0x130] sm:$0xff]   ;;  %s4673_s14 = sshll.u32 %s7360_s25, 5  ;;  %vm510_vm1 = vcmask 785408   ;;  %vm2679_vm2 = vcmask 1041408  }
  0x27   : > { %5627 = vmatpush3.bf16.msra.mxu0 %v6929_v4  ;;  %5638 = vmatprep.mubr.msk.bf16.mxu0 %vm7211_vm0, %v7210_v5  ;;  %v7365_v11 = vld [vmem:[%s9395_s1 + $0x48] sm:$0xff]   ;;  %v7372_v12 = vld [vmem:[%s9395_s1 + $0x138] sm:$0xff]   ;;  %v7380_v13 = vld [vmem:[%s9395_s1 + $0x50] sm:$0xff]   ;;  %s7396_s12 = scalar_lea.vmem [#allocation2], %s4673_s14  ;;  %vm2675_vm3 = vcmask 687104   ;;  %vm4001_vm4 = vcmask 654336  }
  0x28   : > { %5659 = vmatpush3.bf16.msra.mxu1 %v6930_v6  ;;  %5628 = vmatprep.subr.bf16.mxu0 %v7210_v5  ;;  %v7387_v14 = vld [vmem:[%s9395_s1 + $0x140] sm:$0xff]   ;;  %v7393_v15 = vld [vmem:[%s9395_s1 + $0x58] sm:$0xff]   ;;  %v4686_v16 = vld [vmem:[%s7396_s12 + $0x8] sm:$0x7f]  ;;  %s5155_s29 = sshll.u32 %s4666_s21, 4  ;;  %s429_s30 = scalar_lea.vmem [#allocation3], %s7360_s25 }
  0x29   : > { %5660 = vmatprep.subr.bf16.mxu1 %v7210_v5  ;;  %5670 = vmatprep.mubr.msk.bf16.mxu1 %vm7211_vm0, %v7210_v5  ;;  %v7404_v17 = vld [vmem:[%s9395_s1 + $0x148] sm:$0xff]   ;;  %v7407_v18 = vpack.c.bf16 %v4686_v16, %v4686_v16  ;;  %v7413_v19 = vld [vmem:[%s9395_s1] sm:$0xff]   ;;  %v7420_v20 = vld [vmem:[%s9395_s1 + $0xf0] sm:$0xff]   ;;  %s4606_s13 = sshll.u32 %s429_s30, 4  ;;  %s9350_s16 = scalar_lea.hbm %s9405_s11, %s5155_s29  ;;  %s9352_s13 = int_to_ptr.vmem [resolvable:$true] %s4606_s13 }
  0x2a   : > { %v7431_v21 = vld [vmem:[%s9395_s1 + $0x8] sm:$0xff]   ;;  %v7438_v22 = vld [vmem:[%s9395_s1 + $0xf8] sm:$0xff]   ;;  %v7449_v23 = vld [vmem:[%s9395_s1 + $0x10] sm:$0xff]   ;;  %s4594_s22 = scalar_lea.sflag [#allocation4], %s7360_s25  ;;  %s7146_s21 = scalar_lea.vmem %s9352_s13, 16 }
  0x2b   : > { %5629 = vmatpush3.bf16.msra.mxu0 %v6931_v7  ;;  %v7456_v24 = vld [vmem:[%s9395_s1 + $0x100] sm:$0xff]   ;;  %v7463_v25 = vld [vmem:[%s9395_s1 + $0x18] sm:$0xff]   ;;  %v7470_v26 = vld [vmem:[%s9395_s1 + $0x108] sm:$0xff]   ;;  %p7147_p13 = scmp.ne.s32.totalorder %s9352_s13, %s7146_s21 }
  0x2c   : > { %5661 = vmatpush3.bf16.msra.mxu1 %v6932_v8  ;;  %5630 = vmatprep.subr.bf16.mxu0 %v7210_v5  ;;  %v7477_v27 = vld [vmem:[%s9395_s1 + $0x20] sm:$0xff]   ;;  %v7484_v28 = vld [vmem:[%s9395_s1 + $0x110] sm:$0xff]   ;;  %v7490_v29 = vld [vmem:[%s9395_s1 + $0x28] sm:$0xff]  }
  0x2d   : > { %5662 = vmatprep.subr.bf16.mxu1 %v7210_v5  ;;  %v431_v30 = vld [vmem:[%s7396_s12] sm:$0x7f]  ;;  %v7499_v31 = vld [vmem:[%s9395_s1 + $0x118] sm:$0xff]   ;;  %v7513_v34 = vld [vmem:[%s9395_s1 + $0x150] sm:$0xff]   ;;  %p7148_p0 = pnand %p7147_p13, %p7311_p6 }
  0x2e   : > { %v432_v32 = vpack.c.bf16 %v431_v30, %v431_v30  ;;  %v7506_v33 = vld [vmem:[%s9395_s1 + $0x60] sm:$0xff]   ;;  %v7522_v35 = vld [vmem:[%s9395_s1 + $0x68] sm:$0xff]   ;;  %v7529_v36 = vld [vmem:[%s9395_s1 + $0x158] sm:$0xff]  }
  0x2f   : > { %5631 = vmatpush3.bf16.msra.mxu0 %v6933_v9  ;;  %v7540_v37 = vld [vmem:[%s9395_s1 + $0x70] sm:$0xff]   ;;  %v7547_v38 = vld [vmem:[%s9395_s1 + $0x160] sm:$0xff]   ;;  %v7554_v39 = vld [vmem:[%s9395_s1 + $0x78] sm:$0xff]   ;;  %p7149_p1 = pneg %p7148_p0 }
  0x30   : > { %5663 = vmatpush3.bf16.msra.mxu1 %v7356_v10  ;;  %5632 = vmatprep.subr.bf16.mxu0 %v7210_v5  ;;  %v7561_v40 = vld [vmem:[%s9395_s1 + $0x168] sm:$0xff]   ;;  %v7567_v41 = vld [vmem:[%s9395_s1 + $0x80] sm:$0xff]   ;;  %v7572_v42 = vld [vmem:[%s9395_s1 + $0x170] sm:$0xff]  }
  0x31   : > { %5664 = vmatprep.subr.bf16.mxu1 %v7210_v5  ;;  %v7581_v43 = vld [vmem:[%s9395_s1 + $0x88] sm:$0xff]   ;;  %v4739_v44 = vld [vmem:[%s7396_s12 + $0x10] sm:$0x7f]  ;;  %v7587_v45 = vld [vmem:[%s9395_s1 + $0x178] sm:$0xff]  }
  0x32   : > { %v7596_v46 = vld [vmem:[%s9395_s1 + $0x90] sm:$0xff]   ;;  %v7598_v47 = vpack.c.bf16 %v4739_v44, %v4739_v44  ;;  %v7603_v48 = vld [vmem:[%s9395_s1 + $0x180] sm:$0xff]   ;;  %v7612_v49 = vld [vmem:[%s9395_s1 + $0x98] sm:$0xff]  }
  0x33   : > { %5633 = vmatpush3.bf16.msra.mxu0 %v7365_v11  ;;  %v7619_v50 = vld [vmem:[%s9395_s1 + $0x188] sm:$0xff]   ;;  %v7630_v51 = vld [vmem:[%s9395_s1 + $0xa0] sm:$0xff]   ;;  %v7637_v52 = vld [vmem:[%s9395_s1 + $0x190] sm:$0xff]  }
  0x34   : > { %5665 = vmatpush3.bf16.msra.mxu1 %v7372_v12  ;;  %5634 = vmatprep.subr.bf16.mxu0 %v7210_v5  ;;  %v7648_v53 = vld [vmem:[%s9395_s1 + $0xa8] sm:$0xff]   ;;  %v7653_v54 = vld [vmem:[%s9395_s1 + $0x198] sm:$0xff]   ;;  %v7662_v55 = vld [vmem:[%s9395_s1 + $0xb0] sm:$0xff]  }
  0x35   : > { %5666 = vmatprep.subr.bf16.mxu1 %v7210_v5  ;;  %v7667_v56 = vld [vmem:[%s9395_s1 + $0x1a0] sm:$0xff]   ;;  %v7676_v57 = vld [vmem:[%s9395_s1 + $0xb8] sm:$0xff]   ;;  %v7682_v59 = vld [vmem:[%s9395_s1 + $0x1a8] sm:$0xff]  }
  0x36   : > { %v4778_v58 = vld [vmem:[%s7396_s12 + $0x18] sm:$0x7f]  ;;  %v7691_v60 = vld [vmem:[%s9395_s1 + $0xc0] sm:$0xff]   ;;  %v7698_v62 = vld [vmem:[%s9395_s1 + $0x1b0] sm:$0xff]  }
  0x37   : > { %5635 = vmatpush3.bf16.msra.mxu0 %v7380_v13  ;;  %v7693_v61 = vpack.c.bf16 %v4778_v58, %v4778_v58  ;;  %v7707_v63 = vld [vmem:[%s9395_s1 + $0xc8] sm:$0xff]   ;;  %v7714_v0 = vld [vmem:[%s9395_s1 + $0x1b8] sm:$0xff]   ;;  %v7725_v1 = vld [vmem:[%s9395_s1 + $0xd0] sm:$0xff]  }
  0x38   : > { %5667 = vmatpush3.bf16.msra.mxu1 %v7387_v14  ;;  %5636 = vmatprep.subr.bf16.mxu0 %v7210_v5  ;;  %v7732_v2 = vld [vmem:[%s9395_s1 + $0x1c0] sm:$0xff]   ;;  %v7743_v3 = vld [vmem:[%s9395_s1 + $0xd8] sm:$0xff]   ;;  %v7748_v4 = vld [vmem:[%s9395_s1 + $0x1c8] sm:$0xff]  }
  0x39   : > { %5668 = vmatprep.subr.bf16.mxu1 %v7210_v5  ;;  %v7757_v6 = vld [vmem:[%s9395_s1 + $0xe0] sm:$0xff]   ;;  %v7765_v7 = vld [vmem:[%s9395_s1 + $0x1d0] sm:$0xff]   ;;  %v7771_v8 = vld [vmem:[%s9395_s1 + $0xe8] sm:$0xff]  }
  0x3a   : > { %v1170_v9 = vld [vmem:[%s7396_s12 + $0x1] sm:$0x7f]  ;;  %v7777_v16 = vld [vmem:[%s9395_s1 + $0x1d8] sm:$0xff]  }
  0x3b   : > { %5637 = vmatpush3.bf16.msra.mxu0 %v7393_v15  ;;  %v7783_v30 = vpack.c.bf16 %v1170_v9, %v1170_v9  ;;  %v7802_v44 = vld [vmem:[%s9395_s1 + $0x120] sm:$0xff]   ;;  %v7814_v58 = vld [vmem:[%s9395_s1 + $0x38] sm:$0xff]   ;;  %v7820_v9 = vld [vmem:[%s9395_s1 + $0x128] sm:$0xff]  }
  0x3c   : > { %5669 = vmatpush3.bf16.msra.mxu1 %v7404_v17  ;;  %5642 = vmatprep.subr.bf16.mxu0 %v7210_v5  ;;  %9414 = vst [vmem:[#allocation6_spill] sm:$0xff] %v7802_v44 }
  0x3d   : > { %5674 = vmatprep.subr.bf16.mxu1 %v7210_v5 }
  0x3e   : > { %5639 = vmatmul.mubr.msk.bf16.vlgmr.msra.gmra.mrb[0].mxu0 %vm510_vm1, %v7407_v18 }
  0x3f   : > { %5643 = vmatpush3.bf16.msra.mxu0 %v7413_v19  ;;  %5671 = vmatmul.mubr.msk.bf16.vlgmr.msra.gmra.mrb[0].mxu1 %vm510_vm1, %v7407_v18 }
  0x40   : > { %5675 = vmatpush3.bf16.msra.mxu1 %v7420_v20  ;;  %5644 = vmatprep.subr.bf16.mxu0 %v7210_v5 }
  0x41   : > { %5676 = vmatprep.subr.bf16.mxu1 %v7210_v5  ;;  %5654 = vmatprep.mubr.msk.bf16.mxu0 %vm7211_vm0, %v7210_v5 }
  0x42   : > { %5686 = vmatprep.mubr.msk.bf16.mxu1 %vm7211_vm0, %v7210_v5 }
  0x43   : > { %5645 = vmatpush3.bf16.msra.mxu0 %v7431_v21 }
  0x44   : > { %5677 = vmatpush3.bf16.msra.mxu1 %v7438_v22  ;;  %5646 = vmatprep.subr.bf16.mxu0 %v7210_v5 }
  0x45   : > { %5678 = vmatprep.subr.bf16.mxu1 %v7210_v5 }
  0x47   : > { %5647 = vmatpush3.bf16.msra.mxu0 %v7449_v23 }
  0x48   : > { %5679 = vmatpush3.bf16.msra.mxu1 %v7456_v24  ;;  %5648 = vmatprep.subr.bf16.mxu0 %v7210_v5 }
  0x49   : > { %5680 = vmatprep.subr.bf16.mxu1 %v7210_v5 }
  0x4b   : > { %5649 = vmatpush3.bf16.msra.mxu0 %v7463_v25 }
  0x4c   : > { %5681 = vmatpush3.bf16.msra.mxu1 %v7470_v26  ;;  %5650 = vmatprep.subr.bf16.mxu0 %v7210_v5 }
  0x4d   : > { %5682 = vmatprep.subr.bf16.mxu1 %v7210_v5 }
  0x4f   : > { %5651 = vmatpush3.bf16.msra.mxu0 %v7477_v27 }
  0x50   : > { %5683 = vmatpush3.bf16.msra.mxu1 %v7484_v28  ;;  %5652 = vmatprep.subr.bf16.mxu0 %v7210_v5 }
  0x51   : > { %5684 = vmatprep.subr.bf16.mxu1 %v7210_v5 }
  0x53   : > { %5653 = vmatpush3.bf16.msra.mxu0 %v7490_v29 }
  0x54   : > { %5685 = vmatpush3.bf16.msra.mxu1 %v7499_v31  ;;  %5690 = vmatprep.subr.bf16.mxu0 %v7210_v5 }
  0x55   : > { %5706 = vmatprep.subr.bf16.mxu1 %v7210_v5 }
  0x56   : > { %5655 = vmatmul.mubr.msk.bf16.vlgmr.msra.gmra.mrb[0].mxu0 %vm510_vm1, %v432_v32 }
  0x57   : > { %5687 = vmatmul.mubr.msk.bf16.vlgmr.msra.gmra.mrb[0].mxu1 %vm510_vm1, %v432_v32  ;;  %5691 = vmatpush3.bf16.msra.mxu0 %v7506_v33  ;;  %v7796_v32 = vld [vmem:[%s9395_s1 + $0x30] sm:$0xff]  }
  0x58   : > { %5707 = vmatpush3.bf16.msra.mxu1 %v7513_v34  ;;  %5692 = vmatprep.subr.bf16.mxu0 %v7210_v5 }
  0x59   : > { %5708 = vmatprep.subr.bf16.mxu1 %v7210_v5  ;;  %5702 = vmatprep.mubr.msk.bf16.mxu0 %vm7211_vm0, %v7210_v5 }
  0x5a   : > { %5718 = vmatprep.mubr.msk.bf16.mxu1 %vm7211_vm0, %v7210_v5 }
  0x5b   : > { %5693 = vmatpush3.bf16.msra.mxu0 %v7522_v35 }
  0x5c   : > { %5709 = vmatpush3.bf16.msra.mxu1 %v7529_v36  ;;  %5694 = vmatprep.subr.bf16.mxu0 %v7210_v5 }
  0x5d   : > { %5710 = vmatprep.subr.bf16.mxu1 %v7210_v5 }
  0x5f   : > { %5695 = vmatpush3.bf16.msra.mxu0 %v7540_v37 }
  0x60   : > { %5711 = vmatpush3.bf16.msra.mxu1 %v7547_v38  ;;  %5696 = vmatprep.subr.bf16.mxu0 %v7210_v5 }
  0x61   : > { %5712 = vmatprep.subr.bf16.mxu1 %v7210_v5 }
  0x63   : > { %5697 = vmatpush3.bf16.msra.mxu0 %v7554_v39 }
  0x64   : > { %5713 = vmatpush3.bf16.msra.mxu1 %v7561_v40  ;;  %5698 = vmatprep.subr.bf16.mxu0 %v7210_v5 }
  0x65   : > { %5714 = vmatprep.subr.bf16.mxu1 %v7210_v5 }
  0x67   : > { %5699 = vmatpush3.bf16.msra.mxu0 %v7567_v41 }
  0x68   : > { %5715 = vmatpush3.bf16.msra.mxu1 %v7572_v42  ;;  %5700 = vmatprep.subr.bf16.mxu0 %v7210_v5 }
  0x69   : > { %5716 = vmatprep.subr.bf16.mxu1 %v7210_v5 }
  0x6b   : > { %5701 = vmatpush3.bf16.msra.mxu0 %v7581_v43 }
  0x6c   : > { %5717 = vmatpush3.bf16.msra.mxu1 %v7587_v45  ;;  %5722 = vmatprep.subr.bf16.mxu0 %v7210_v5 }
  0x6d   : > { %5738 = vmatprep.subr.bf16.mxu1 %v7210_v5 }
  0x6e   : > { %5703 = vmatmul.mubr.msk.bf16.vlgmr.msra.gmra.mrb[0].mxu0 %vm510_vm1, %v7598_v47 }
  0x6f   : > { %5719 = vmatmul.mubr.msk.bf16.vlgmr.msra.gmra.mrb[0].mxu1 %vm510_vm1, %v7598_v47  ;;  %5723 = vmatpush3.bf16.msra.mxu0 %v7596_v46 }
  0x70   : > { %5739 = vmatpush3.bf16.msra.mxu1 %v7603_v48  ;;  %5724 = vmatprep.subr.bf16.mxu0 %v7210_v5 }
  0x71   : > { %5740 = vmatprep.subr.bf16.mxu1 %v7210_v5  ;;  %5734 = vmatprep.mubr.msk.bf16.mxu0 %vm7211_vm0, %v7210_v5 }
  0x72   : > { %5750 = vmatprep.mubr.msk.bf16.mxu1 %vm7211_vm0, %v7210_v5 }
  0x73   : > { %5725 = vmatpush3.bf16.msra.mxu0 %v7612_v49 }
  0x74   : > { %5741 = vmatpush3.bf16.msra.mxu1 %v7619_v50  ;;  %5726 = vmatprep.subr.bf16.mxu0 %v7210_v5 }
  0x75   : > { %5742 = vmatprep.subr.bf16.mxu1 %v7210_v5 }
  0x77   : > { %5727 = vmatpush3.bf16.msra.mxu0 %v7630_v51 }
  0x78   : > { %5743 = vmatpush3.bf16.msra.mxu1 %v7637_v52  ;;  %5728 = vmatprep.subr.bf16.mxu0 %v7210_v5 }
  0x79   : > { %5744 = vmatprep.subr.bf16.mxu1 %v7210_v5 }
  0x7b   : > { %5729 = vmatpush3.bf16.msra.mxu0 %v7648_v53 }
  0x7c   : > { %5745 = vmatpush3.bf16.msra.mxu1 %v7653_v54  ;;  %5730 = vmatprep.subr.bf16.mxu0 %v7210_v5 }
  0x7d   : > { %5746 = vmatprep.subr.bf16.mxu1 %v7210_v5 }
  0x7f   : > { %5731 = vmatpush3.bf16.msra.mxu0 %v7662_v55 }
  0x80   : > { %5747 = vmatpush3.bf16.msra.mxu1 %v7667_v56  ;;  %5732 = vmatprep.subr.bf16.mxu0 %v7210_v5 }
  0x81   : > { %5748 = vmatprep.subr.bf16.mxu1 %v7210_v5 }
  0x83   : > { %5733 = vmatpush3.bf16.msra.mxu0 %v7676_v57 }
  0x84   : > { %5749 = vmatpush3.bf16.msra.mxu1 %v7682_v59  ;;  %5754 = vmatprep.subr.bf16.mxu0 %v7210_v5 }
  0x85   : > { %5770 = vmatprep.subr.bf16.mxu1 %v7210_v5 }
  0x86   : > { %5735 = vmatmul.mubr.msk.bf16.vlgmr.msra.gmra.mrb[0].mxu0 %vm510_vm1, %v7693_v61 }
  0x87   : > { %5751 = vmatmul.mubr.msk.bf16.vlgmr.msra.gmra.mrb[0].mxu1 %vm510_vm1, %v7693_v61  ;;  %5755 = vmatpush3.bf16.msra.mxu0 %v7691_v60 }
  0x88   : > { %5771 = vmatpush3.bf16.msra.mxu1 %v7698_v62  ;;  %5756 = vmatprep.subr.bf16.mxu0 %v7210_v5 }
  0x89   : > { %5772 = vmatprep.subr.bf16.mxu1 %v7210_v5  ;;  %5766 = vmatprep.mubr.msk.bf16.mxu0 %vm7211_vm0, %v7210_v5 }
  0x8a   : > { %5782 = vmatprep.mubr.msk.bf16.mxu1 %vm7211_vm0, %v7210_v5 }
  0x8b   : > { %5757 = vmatpush3.bf16.msra.mxu0 %v7707_v63 }
  0x8c   : > { %5773 = vmatpush3.bf16.msra.mxu1 %v7714_v0  ;;  %5758 = vmatprep.subr.bf16.mxu0 %v7210_v5 }
  0x8d   : > { %5774 = vmatprep.subr.bf16.mxu1 %v7210_v5 }
  0x8f   : > { %5759 = vmatpush3.bf16.msra.mxu0 %v7725_v1 }
  0x90   : > { %5775 = vmatpush3.bf16.msra.mxu1 %v7732_v2  ;;  %5760 = vmatprep.subr.bf16.mxu0 %v7210_v5 }
  0x91   : > { %5776 = vmatprep.subr.bf16.mxu1 %v7210_v5 }
  0x93   : > { %5761 = vmatpush3.bf16.msra.mxu0 %v7743_v3 }
  0x94   : > { %5777 = vmatpush3.bf16.msra.mxu1 %v7748_v4  ;;  %5762 = vmatprep.subr.bf16.mxu0 %v7210_v5 }
  0x95   : > { %5778 = vmatprep.subr.bf16.mxu1 %v7210_v5 }
  0x97   : > { %5763 = vmatpush3.bf16.msra.mxu0 %v7757_v6 }
  0x98   : > { %5779 = vmatpush3.bf16.msra.mxu1 %v7765_v7  ;;  %5764 = vmatprep.subr.bf16.mxu0 %v7210_v5 }
  0x99   : > { %5780 = vmatprep.subr.bf16.mxu1 %v7210_v5 }
  0x9b   : > { %5765 = vmatpush3.bf16.msra.mxu0 %v7771_v8 }
  0x9c   : > { %5781 = vmatpush3.bf16.msra.mxu1 %v7777_v16  ;;  %5786 = vmatprep.subr.bf16.mxu0 %v7210_v5 }
  0x9d   : > { %5818 = vmatprep.subr.bf16.mxu1 %v7210_v5 }
  0x9e   : > { %5767 = vmatmul.mubr.msk.bf16.vlgmr.msra.gmra.mrb[0].mxu0 %vm510_vm1, %v7783_v30 }
  0x9f   : > { %5783 = vmatmul.mubr.msk.bf16.vlgmr.msra.gmra.mrb[0].mxu1 %vm510_vm1, %v7783_v30  ;;  %5787 = vmatpush3.bf16.msra.mxu0 %v7796_v32 }
  0xa0   : > { %5819 = vmatpush3.bf16.msra.mxu1 %v7802_v44  ;;  %5788 = vmatprep.subr.bf16.mxu0 %v7210_v5  ;;  %v7828_v44 = vld [vmem:[%s9395_s1 + $0x40] sm:$0xff]  }
  0xa1   : > { %5820 = vmatprep.subr.bf16.mxu1 %v7210_v5  ;;  %5798 = vmatprep.mubr.msk.bf16.mxu0 %vm7211_vm0, %v7210_v5 }
  0xa2   : > { %5830 = vmatprep.mubr.msk.bf16.mxu1 %vm7211_vm0, %v7210_v5 }
  0xa3   : > { %5789 = vmatpush3.bf16.msra.mxu0 %v7814_v58 }
  0xa4   : > { %5821 = vmatpush3.bf16.msra.mxu1 %v7820_v9  ;;  %5790 = vmatprep.subr.bf16.mxu0 %v7210_v5 }
  0xa5   : > { %5822 = vmatprep.subr.bf16.mxu1 %v7210_v5 }
  0xa7   : > { %5791 = vmatpush3.bf16.msra.mxu0 %v7828_v44 }
  0xa8   : > { %5823 = vmatpush3.bf16.msra.mxu1 %v7356_v10  ;;  %5792 = vmatprep.subr.bf16.mxu0 %v7210_v5  ;;  %v4863_v10 = vld [vmem:[%s7396_s12 + $0x9] sm:$0x7f] }
  0xa9   : > { %5824 = vmatprep.subr.bf16.mxu1 %v7210_v5 }
  0xab   : > { %5793 = vmatpush3.bf16.msra.mxu0 %v7365_v11  ;;  %v7971_v11 = vpack.c.bf16 %v4863_v10, %v4863_v10  ;;  %v8209_v10 = vld [vmem:[%s9395_s1 + $0x170] sm:$0xff]  }
  0xac   : > { %5825 = vmatpush3.bf16.msra.mxu1 %v7372_v12  ;;  %5794 = vmatprep.subr.bf16.mxu0 %v7210_v5  ;;  %v9415_v12 = vld [vmem:[#allocation6_spill] sm:$0xff] }
  0xad   : > { %5826 = vmatprep.subr.bf16.mxu1 %v7210_v5 }
  0xaf   : > { %5795 = vmatpush3.bf16.msra.mxu0 %v7380_v13  ;;  %v7997_v13 = vld [vmem:[%s9395_s1 + $0x130] sm:$0xff]  }
  0xb0   : > { %5827 = vmatpush3.bf16.msra.mxu1 %v7387_v14  ;;  %5796 = vmatprep.subr.bf16.mxu0 %v7210_v5  ;;  %v8005_v14 = vld [vmem:[%s9395_s1 + $0x48] sm:$0xff]  }
  0xb1   : > { %5828 = vmatprep.subr.bf16.mxu1 %v7210_v5 }
  0xb3   : > { %5797 = vmatpush3.bf16.msra.mxu0 %v7393_v15  ;;  %v8011_v15 = vld [vmem:[%s9395_s1 + $0x138] sm:$0xff]  }
  0xb4   : > { %5829 = vmatpush3.bf16.msra.mxu1 %v7404_v17  ;;  %5802 = vmatprep.subr.bf16.mxu0 %v7210_v5  ;;  %v8019_v17 = vld [vmem:[%s9395_s1 + $0x50] sm:$0xff]  }
  0xb5   : > { %5834 = vmatprep.subr.bf16.mxu1 %v7210_v5 }
  0xb6   : > { %5799 = vmatmul.mubr.msk.bf16.vlgmr.msra.gmra.mrb[4].mxu0 %vm510_vm1, %v7598_v47 }
  0xb7   : > { %5803 = vmatpush3.bf16.msra.mxu0 %v7413_v19  ;;  %5831 = vmatmul.mubr.msk.bf16.vlgmr.msra.gmra.mrb[4].mxu1 %vm510_vm1, %v7598_v47  ;;  %v8033_v19 = vld [vmem:[%s9395_s1 + $0x58] sm:$0xff]  }
  0xb8   : > { %5835 = vmatpush3.bf16.msra.mxu1 %v7420_v20  ;;  %5804 = vmatprep.subr.bf16.mxu0 %v7210_v5  ;;  %v8039_v20 = vld [vmem:[%s9395_s1 + $0x148] sm:$0xff]  }
  0xb9   : > { %5836 = vmatprep.subr.bf16.mxu1 %v7210_v5  ;;  %5814 = vmatprep.mubr.msk.bf16.mxu0 %vm7211_vm0, %v7210_v5 }
  0xba   : > { %5846 = vmatprep.mubr.msk.bf16.mxu1 %vm7211_vm0, %v7210_v5 }
  0xbb   : > { %5805 = vmatpush3.bf16.msra.mxu0 %v7431_v21  ;;  %v8049_v21 = vld [vmem:[%s9395_s1] sm:$0xff]  }
  0xbc   : > { %5837 = vmatpush3.bf16.msra.mxu1 %v7438_v22  ;;  %5806 = vmatprep.subr.bf16.mxu0 %v7210_v5  ;;  %v8057_v22 = vld [vmem:[%s9395_s1 + $0xf0] sm:$0xff]  }
  0xbd   : > { %5838 = vmatprep.subr.bf16.mxu1 %v7210_v5 }
  0xbf   : > { %5807 = vmatpush3.bf16.msra.mxu0 %v7449_v23  ;;  %v8069_v23 = vld [vmem:[%s9395_s1 + $0x8] sm:$0xff]  }
  0xc0   : > { %5839 = vmatpush3.bf16.msra.mxu1 %v7456_v24  ;;  %5808 = vmatprep.subr.bf16.mxu0 %v7210_v5  ;;  %v8075_v24 = vld [vmem:[%s9395_s1 + $0xf8] sm:$0xff]  }
  0xc1   : > { %5840 = vmatprep.subr.bf16.mxu1 %v7210_v5 }
  0xc3   : > { %5809 = vmatpush3.bf16.msra.mxu0 %v7463_v25  ;;  %v8083_v25 = vld [vmem:[%s9395_s1 + $0x10] sm:$0xff]  }
  0xc4   : > { %5841 = vmatpush3.bf16.msra.mxu1 %v7470_v26  ;;  %5810 = vmatprep.subr.bf16.mxu0 %v7210_v5  ;;  %v8089_v26 = vld [vmem:[%s9395_s1 + $0x100] sm:$0xff]  }
  0xc5   : > { %5842 = vmatprep.subr.bf16.mxu1 %v7210_v5 }
  0xc7   : > { %5811 = vmatpush3.bf16.msra.mxu0 %v7477_v27  ;;  %v8097_v27 = vld [vmem:[%s9395_s1 + $0x18] sm:$0xff]  }
  0xc8   : > { %5843 = vmatpush3.bf16.msra.mxu1 %v7484_v28  ;;  %5812 = vmatprep.subr.bf16.mxu0 %v7210_v5  ;;  %v8103_v28 = vld [vmem:[%s9395_s1 + $0x108] sm:$0xff]  }
  0xc9   : > { %5844 = vmatprep.subr.bf16.mxu1 %v7210_v5 }
  0xcb   : > { %5813 = vmatpush3.bf16.msra.mxu0 %v7490_v29  ;;  %v8111_v29 = vld [vmem:[%s9395_s1 + $0x20] sm:$0xff]  }
  0xcc   : > { %5845 = vmatpush3.bf16.msra.mxu1 %v7499_v31  ;;  %5850 = vmatprep.subr.bf16.mxu0 %v7210_v5  ;;  %v8117_v31 = vld [vmem:[%s9395_s1 + $0x110] sm:$0xff]  }
  0xcd   : > { %5866 = vmatprep.subr.bf16.mxu1 %v7210_v5 }
  0xce   : > { %5815 = vmatmul.mubr.msk.bf16.vlgmr.msra.gmra.mrb[4].mxu0 %vm510_vm1, %v7407_v18 }
  0xcf   : > { %5847 = vmatmul.mubr.msk.bf16.vlgmr.msra.gmra.mrb[4].mxu1 %vm510_vm1, %v7407_v18  ;;  %5851 = vmatpush3.bf16.msra.mxu0 %v7506_v33  ;;  %v8025_v18 = vld [vmem:[%s9395_s1 + $0x140] sm:$0xff]   ;;  %v8125_v33 = vld [vmem:[%s9395_s1 + $0x28] sm:$0xff]  }
  0xd0   : > { %5867 = vmatpush3.bf16.msra.mxu1 %v7513_v34  ;;  %5852 = vmatprep.subr.bf16.mxu0 %v7210_v5  ;;  %v8131_v34 = vld [vmem:[%s9395_s1 + $0x118] sm:$0xff]  }
  0xd1   : > { %5868 = vmatprep.subr.bf16.mxu1 %v7210_v5  ;;  %5862 = vmatprep.mubr.msk.bf16.mxu0 %vm7211_vm0, %v7210_v5 }
  0xd2   : > { %5878 = vmatprep.mubr.msk.bf16.mxu1 %vm7211_vm0, %v7210_v5 }
  0xd3   : > { %5853 = vmatpush3.bf16.msra.mxu0 %v7522_v35  ;;  %v8143_v35 = vld [vmem:[%s9395_s1 + $0x60] sm:$0xff]  }
  0xd4   : > { %5869 = vmatpush3.bf16.msra.mxu1 %v7529_v36  ;;  %5854 = vmatprep.subr.bf16.mxu0 %v7210_v5  ;;  %v8149_v36 = vld [vmem:[%s9395_s1 + $0x150] sm:$0xff]  }
  0xd5   : > { %5870 = vmatprep.subr.bf16.mxu1 %v7210_v5 }
  0xd7   : > { %5855 = vmatpush3.bf16.msra.mxu0 %v7540_v37  ;;  %v8161_v37 = vld [vmem:[%s9395_s1 + $0x68] sm:$0xff]  }
  0xd8   : > { %5871 = vmatpush3.bf16.msra.mxu1 %v7547_v38  ;;  %5856 = vmatprep.subr.bf16.mxu0 %v7210_v5  ;;  %v8167_v38 = vld [vmem:[%s9395_s1 + $0x158] sm:$0xff]  }
  0xd9   : > { %5872 = vmatprep.subr.bf16.mxu1 %v7210_v5 }
  0xdb   : > { %5857 = vmatpush3.bf16.msra.mxu0 %v7554_v39  ;;  %v8175_v39 = vld [vmem:[%s9395_s1 + $0x70] sm:$0xff]  }
  0xdc   : > { %5873 = vmatpush3.bf16.msra.mxu1 %v7561_v40  ;;  %5858 = vmatprep.subr.bf16.mxu0 %v7210_v5  ;;  %v8181_v40 = vld [vmem:[%s9395_s1 + $0x160] sm:$0xff]  }
  0xdd   : > { %5874 = vmatprep.subr.bf16.mxu1 %v7210_v5 }
  0xdf   : > { %5859 = vmatpush3.bf16.msra.mxu0 %v7567_v41  ;;  %v8189_v41 = vld [vmem:[%s9395_s1 + $0x78] sm:$0xff]  }
  0xe0   : > { %5875 = vmatpush3.bf16.msra.mxu1 %v7572_v42  ;;  %5860 = vmatprep.subr.bf16.mxu0 %v7210_v5  ;;  %v8195_v42 = vld [vmem:[%s9395_s1 + $0x168] sm:$0xff]  }
  0xe1   : > { %5876 = vmatprep.subr.bf16.mxu1 %v7210_v5 }
  0xe3   : > { %5861 = vmatpush3.bf16.msra.mxu0 %v7581_v43 }
  0xe4   : > { %5877 = vmatpush3.bf16.msra.mxu1 %v7587_v45  ;;  %5882 = vmatprep.subr.bf16.mxu0 %v7210_v5 }
  0xe5   : > { %5898 = vmatprep.subr.bf16.mxu1 %v7210_v5 }
  0xe6   : > { %5863 = vmatmul.mubr.msk.bf16.vlgmr.msra.gmra.mrb[4].mxu0 %vm510_vm1, %v7693_v61 }
  0xe7   : > { %5879 = vmatmul.mubr.msk.bf16.vlgmr.msra.gmra.mrb[4].mxu1 %vm510_vm1, %v7693_v61  ;;  %5883 = vmatpush3.bf16.msra.mxu0 %v7596_v46 }
  0xe8   : > { %5899 = vmatpush3.bf16.msra.mxu1 %v7603_v48  ;;  %5884 = vmatprep.subr.bf16.mxu0 %v7210_v5 }
  0xe9   : > { %5900 = vmatprep.subr.bf16.mxu1 %v7210_v5  ;;  %5894 = vmatprep.mubr.msk.bf16.mxu0 %vm7211_vm0, %v7210_v5 }
  0xea   : > { %5910 = vmatprep.mubr.msk.bf16.mxu1 %vm7211_vm0, %v7210_v5 }
  0xeb   : > { %5885 = vmatpush3.bf16.msra.mxu0 %v7612_v49 }
  0xec   : > { %5901 = vmatpush3.bf16.msra.mxu1 %v7619_v50  ;;  %5886 = vmatprep.subr.bf16.mxu0 %v7210_v5 }
  0xed   : > { %5902 = vmatprep.subr.bf16.mxu1 %v7210_v5 }
  0xef   : > { %5887 = vmatpush3.bf16.msra.mxu0 %v7630_v51 }
  0xf0   : > { %5903 = vmatpush3.bf16.msra.mxu1 %v7637_v52  ;;  %5888 = vmatprep.subr.bf16.mxu0 %v7210_v5 }
  0xf1   : > { %5904 = vmatprep.subr.bf16.mxu1 %v7210_v5 }
  0xf3   : > { %5889 = vmatpush3.bf16.msra.mxu0 %v7648_v53 }
  0xf4   : > { %5905 = vmatpush3.bf16.msra.mxu1 %v7653_v54  ;;  %5890 = vmatprep.subr.bf16.mxu0 %v7210_v5 }
  0xf5   : > { %5906 = vmatprep.subr.bf16.mxu1 %v7210_v5 }
  0xf7   : > { %5891 = vmatpush3.bf16.msra.mxu0 %v7662_v55 }
  0xf8   : > { %5907 = vmatpush3.bf16.msra.mxu1 %v7667_v56  ;;  %5892 = vmatprep.subr.bf16.mxu0 %v7210_v5 }
  0xf9   : > { %5908 = vmatprep.subr.bf16.mxu1 %v7210_v5 }
  0xfb   : > { %5893 = vmatpush3.bf16.msra.mxu0 %v7676_v57 }
  0xfc   : > { %5909 = vmatpush3.bf16.msra.mxu1 %v7682_v59  ;;  %5914 = vmatprep.subr.bf16.mxu0 %v7210_v5 }
  0xfd   : > { %5930 = vmatprep.subr.bf16.mxu1 %v7210_v5 }
  0xfe   : > { %5895 = vmatmul.mubr.msk.bf16.vlgmr.msra.gmra.mrb[4].mxu0 %vm510_vm1, %v7783_v30 }
  0xff   : > { %5911 = vmatmul.mubr.msk.bf16.vlgmr.msra.gmra.mrb[4].mxu1 %vm510_vm1, %v7783_v30  ;;  %5915 = vmatpush3.bf16.msra.mxu0 %v7691_v60 }
 0x100   : > { %5931 = vmatpush3.bf16.msra.mxu1 %v7698_v62  ;;  %5916 = vmatprep.subr.bf16.mxu0 %v7210_v5 }
 0x101   : > { %5932 = vmatprep.subr.bf16.mxu1 %v7210_v5  ;;  %5926 = vmatprep.mubr.msk.bf16.mxu0 %vm7211_vm0, %v7210_v5 }
 0x102   : > { %5942 = vmatprep.mubr.msk.bf16.mxu1 %vm7211_vm0, %v7210_v5 }
 0x103   : > { %5917 = vmatpush3.bf16.msra.mxu0 %v7707_v63 }
 0x104   : > { %5933 = vmatpush3.bf16.msra.mxu1 %v7714_v0  ;;  %5918 = vmatprep.subr.bf16.mxu0 %v7210_v5 }
 0x105   : > { %5934 = vmatprep.subr.bf16.mxu1 %v7210_v5 }
 0x107   : > { %5919 = vmatpush3.bf16.msra.mxu0 %v7725_v1 }
 0x108   : > { %5935 = vmatpush3.bf16.msra.mxu1 %v7732_v2  ;;  %5920 = vmatprep.subr.bf16.mxu0 %v7210_v5 }
 0x109   : > { %5936 = vmatprep.subr.bf16.mxu1 %v7210_v5 }
 0x10b   : > { %5921 = vmatpush3.bf16.msra.mxu0 %v7743_v3 }
 0x10c   : > { %5937 = vmatpush3.bf16.msra.mxu1 %v7748_v4  ;;  %5922 = vmatprep.subr.bf16.mxu0 %v7210_v5 }
 0x10d   : > { %5938 = vmatprep.subr.bf16.mxu1 %v7210_v5 }
 0x10f   : > { %5923 = vmatpush3.bf16.msra.mxu0 %v7757_v6 }
 0x110   : > { %5939 = vmatpush3.bf16.msra.mxu1 %v7765_v7  ;;  %5924 = vmatprep.subr.bf16.mxu0 %v7210_v5 }
 0x111   : > { %5940 = vmatprep.subr.bf16.mxu1 %v7210_v5 }
 0x113   : > { %5925 = vmatpush3.bf16.msra.mxu0 %v7771_v8 }
 0x114   : > { %5941 = vmatpush3.bf16.msra.mxu1 %v7777_v16  ;;  %5946 = vmatprep.subr.bf16.mxu0 %v7210_v5 }
 0x115   : > { %5978 = vmatprep.subr.bf16.mxu1 %v7210_v5 }
 0x116   : > { %5927 = vmatmul.mubr.msk.bf16.vlgmr.msra.gmra.mrb[4].mxu0 %vm510_vm1, %v7971_v11 }
 0x117   : > { %5943 = vmatmul.mubr.msk.bf16.vlgmr.msra.gmra.mrb[4].mxu1 %vm510_vm1, %v7971_v11  ;;  %5947 = vmatpush3.bf16.msra.mxu0 %v7796_v32 }
 0x118   : > { %5979 = vmatpush3.bf16.msra.mxu1 %v9415_v12  ;;  %5948 = vmatprep.subr.bf16.mxu0 %v7210_v5 }
 0x119   : > { %5980 = vmatprep.subr.bf16.mxu1 %v7210_v5  ;;  %5958 = vmatprep.mubr.msk.bf16.mxu0 %vm7211_vm0, %v7210_v5 }
 0x11a   : > { %5990 = vmatprep.mubr.msk.bf16.mxu1 %vm7211_vm0, %v7210_v5 }
 0x11b   : > { %5949 = vmatpush3.bf16.msra.mxu0 %v7814_v58 }
 0x11c   : > { %5981 = vmatpush3.bf16.msra.mxu1 %v7820_v9  ;;  %5950 = vmatprep.subr.bf16.mxu0 %v7210_v5 }
 0x11d   : > { %5982 = vmatprep.subr.bf16.mxu1 %v7210_v5 }
 0x11f   : > { %5951 = vmatpush3.bf16.msra.mxu0 %v7828_v44 }
 0x120   : > { %5983 = vmatpush3.bf16.msra.mxu1 %v7997_v13  ;;  %5952 = vmatprep.subr.bf16.mxu0 %v7210_v5 }
 0x121   : > { %5984 = vmatprep.subr.bf16.mxu1 %v7210_v5 }
 0x123   : > { %5953 = vmatpush3.bf16.msra.mxu0 %v8005_v14 }
 0x124   : > { %5985 = vmatpush3.bf16.msra.mxu1 %v8011_v15  ;;  %5954 = vmatprep.subr.bf16.mxu0 %v7210_v5 }
 0x125   : > { %5986 = vmatprep.subr.bf16.mxu1 %v7210_v5 }
 0x127   : > { %5955 = vmatpush3.bf16.msra.mxu0 %v8019_v17 }
 0x128   : > { %5987 = vmatpush3.bf16.msra.mxu1 %v8025_v18  ;;  %5956 = vmatprep.subr.bf16.mxu0 %v7210_v5 }
 0x129   : > { %5988 = vmatprep.subr.bf16.mxu1 %v7210_v5 }
 0x12b   : > { %5957 = vmatpush3.bf16.msra.mxu0 %v8033_v19 }
 0x12c   : > { %5989 = vmatpush3.bf16.msra.mxu1 %v8039_v20  ;;  %5962 = vmatprep.subr.bf16.mxu0 %v7210_v5 }
 0x12d   : > { %5994 = vmatprep.subr.bf16.mxu1 %v7210_v5 }
 0x12e   : > { %5959 = vmatmul.mubr.msk.bf16.vlgmr.msra.gmra.mrb[8].mxu0 %vm510_vm1, %v7693_v61 }
 0x12f   : > { %5963 = vmatpush3.bf16.msra.mxu0 %v8049_v21  ;;  %5991 = vmatmul.mubr.msk.bf16.vlgmr.msra.gmra.mrb[8].mxu1 %vm510_vm1, %v7693_v61 }
 0x130   : > { %5995 = vmatpush3.bf16.msra.mxu1 %v8057_v22  ;;  %5964 = vmatprep.subr.bf16.mxu0 %v7210_v5 }
 0x131   : > { %5996 = vmatprep.subr.bf16.mxu1 %v7210_v5  ;;  %5974 = vmatprep.mubr.msk.bf16.mxu0 %vm7211_vm0, %v7210_v5 }
 0x132   : > { %6006 = vmatprep.mubr.msk.bf16.mxu1 %vm7211_vm0, %v7210_v5 }
 0x133   : > { %5965 = vmatpush3.bf16.msra.mxu0 %v8069_v23 }
 0x134   : > { %5997 = vmatpush3.bf16.msra.mxu1 %v8075_v24  ;;  %5966 = vmatprep.subr.bf16.mxu0 %v7210_v5 }
 0x135   : > { %5998 = vmatprep.subr.bf16.mxu1 %v7210_v5 }
 0x137   : > { %5967 = vmatpush3.bf16.msra.mxu0 %v8083_v25 }
 0x138   : > { %5999 = vmatpush3.bf16.msra.mxu1 %v8089_v26  ;;  %5968 = vmatprep.subr.bf16.mxu0 %v7210_v5 }
 0x139   : > { %6000 = vmatprep.subr.bf16.mxu1 %v7210_v5 }
 0x13b   : > { %5969 = vmatpush3.bf16.msra.mxu0 %v8097_v27 }
 0x13c   : > { %6001 = vmatpush3.bf16.msra.mxu1 %v8103_v28  ;;  %5970 = vmatprep.subr.bf16.mxu0 %v7210_v5 }
 0x13d   : > { %6002 = vmatprep.subr.bf16.mxu1 %v7210_v5 }
 0x13f   : > { %5971 = vmatpush3.bf16.msra.mxu0 %v8111_v29 }
 0x140   : > { %6003 = vmatpush3.bf16.msra.mxu1 %v8117_v31  ;;  %5972 = vmatprep.subr.bf16.mxu0 %v7210_v5 }
 0x141   : > { %6004 = vmatprep.subr.bf16.mxu1 %v7210_v5 }
 0x143   : > { %5973 = vmatpush3.bf16.msra.mxu0 %v8125_v33 }
 0x144   : > { %6005 = vmatpush3.bf16.msra.mxu1 %v8131_v34  ;;  %6010 = vmatprep.subr.bf16.mxu0 %v7210_v5 }
 0x145   : > { %6026 = vmatprep.subr.bf16.mxu1 %v7210_v5 }
 0x146   : > { %5975 = vmatmul.mubr.msk.bf16.vlgmr.msra.gmra.mrb[8].mxu0 %vm510_vm1, %v7598_v47 }
 0x147   : > { %6007 = vmatmul.mubr.msk.bf16.vlgmr.msra.gmra.mrb[8].mxu1 %vm510_vm1, %v7598_v47  ;;  %6011 = vmatpush3.bf16.msra.mxu0 %v8143_v35  ;;  %v8203_v47 = vld [vmem:[%s9395_s1 + $0x80] sm:$0xff]  }
 0x148   : > { %6027 = vmatpush3.bf16.msra.mxu1 %v8149_v36  ;;  %6012 = vmatprep.subr.bf16.mxu0 %v7210_v5 }
 0x149   : > { %6028 = vmatprep.subr.bf16.mxu1 %v7210_v5  ;;  %6022 = vmatprep.mubr.msk.bf16.mxu0 %vm7211_vm0, %v7210_v5 }
 0x14a   : > { %6038 = vmatprep.mubr.msk.bf16.mxu1 %vm7211_vm0, %v7210_v5 }
 0x14b   : > { %6013 = vmatpush3.bf16.msra.mxu0 %v8161_v37 }
 0x14c   : > { %6029 = vmatpush3.bf16.msra.mxu1 %v8167_v38  ;;  %6014 = vmatprep.subr.bf16.mxu0 %v7210_v5 }
 0x14d   : > { %6030 = vmatprep.subr.bf16.mxu1 %v7210_v5 }
 0x14f   : > { %6015 = vmatpush3.bf16.msra.mxu0 %v8175_v39 }
 0x150   : > { %6031 = vmatpush3.bf16.msra.mxu1 %v8181_v40  ;;  %6016 = vmatprep.subr.bf16.mxu0 %v7210_v5 }
 0x151   : > { %6032 = vmatprep.subr.bf16.mxu1 %v7210_v5 }
 0x153   : > { %6017 = vmatpush3.bf16.msra.mxu0 %v8189_v41 }
 0x154   : > { %6033 = vmatpush3.bf16.msra.mxu1 %v8195_v42  ;;  %6018 = vmatprep.subr.bf16.mxu0 %v7210_v5 }
 0x155   : > { %6034 = vmatprep.subr.bf16.mxu1 %v7210_v5 }
 0x157   : > { %6019 = vmatpush3.bf16.msra.mxu0 %v8203_v47 }
 0x158   : > { %6035 = vmatpush3.bf16.msra.mxu1 %v8209_v10  ;;  %6020 = vmatprep.subr.bf16.mxu0 %v7210_v5 }
 0x159   : > { %6036 = vmatprep.subr.bf16.mxu1 %v7210_v5 }
 0x15b   : > { %6021 = vmatpush3.bf16.msra.mxu0 %v7581_v43 }
 0x15c   : > { %6037 = vmatpush3.bf16.msra.mxu1 %v7587_v45  ;;  %6042 = vmatprep.subr.bf16.mxu0 %v7210_v5 }
 0x15d   : > { %6058 = vmatprep.subr.bf16.mxu1 %v7210_v5 }
 0x15e   : > { %6023 = vmatmul.mubr.msk.bf16.vlgmr.msra.gmra.mrb[8].mxu0 %vm510_vm1, %v7783_v30 }
 0x15f   : > { %6039 = vmatmul.mubr.msk.bf16.vlgmr.msra.gmra.mrb[8].mxu1 %vm510_vm1, %v7783_v30  ;;  %6043 = vmatpush3.bf16.msra.mxu0 %v7596_v46 }
 0x160   : > { %6059 = vmatpush3.bf16.msra.mxu1 %v7603_v48  ;;  %6044 = vmatprep.subr.bf16.mxu0 %v7210_v5 }
 0x161   : > { %6060 = vmatprep.subr.bf16.mxu1 %v7210_v5  ;;  %6054 = vmatprep.mubr.msk.bf16.mxu0 %vm7211_vm0, %v7210_v5 }
 0x162   : > { %6070 = vmatprep.mubr.msk.bf16.mxu1 %vm7211_vm0, %v7210_v5 }
 0x163   : > { %6045 = vmatpush3.bf16.msra.mxu0 %v7612_v49 }
 0x164   : > { %6061 = vmatpush3.bf16.msra.mxu1 %v7619_v50  ;;  %6046 = vmatprep.subr.bf16.mxu0 %v7210_v5 }
 0x165   : > { %6062 = vmatprep.subr.bf16.mxu1 %v7210_v5 }
 0x167   : > { %6047 = vmatpush3.bf16.msra.mxu0 %v7630_v51 }
 0x168   : > { %6063 = vmatpush3.bf16.msra.mxu1 %v7637_v52  ;;  %6048 = vmatprep.subr.bf16.mxu0 %v7210_v5 }
 0x169   : > { %6064 = vmatprep.subr.bf16.mxu1 %v7210_v5 }
 0x16b   : > { %6049 = vmatpush3.bf16.msra.mxu0 %v7648_v53 }
 0x16c   : > { %6065 = vmatpush3.bf16.msra.mxu1 %v7653_v54  ;;  %6050 = vmatprep.subr.bf16.mxu0 %v7210_v5  ;;  %v4875_v54 = vld [vmem:[%s7396_s12 + $0x11] sm:$0x7f] }
 0x16d   : > { %6066 = vmatprep.subr.bf16.mxu1 %v7210_v5 }
 0x16f   : > { %6051 = vmatpush3.bf16.msra.mxu0 %v7662_v55  ;;  %v8285_v55 = vpack.c.bf16 %v4875_v54, %v4875_v54 }
 0x170   : > { %6067 = vmatpush3.bf16.msra.mxu1 %v7667_v56  ;;  %6052 = vmatprep.subr.bf16.mxu0 %v7210_v5  ;;  %v7124_v56 = vld [vmem:[%s9395_s1 + $0x88] sm:$0xff]  }
 0x171   : > { %v8245_v43 = vpop.f32.mrb[0].mxu0  ;;  %6068 = vmatprep.subr.bf16.mxu1 %v7210_v5 }
 0x172   : > { %v8248_v45 = vpop.f32.mrb[0].mxu1  ;;  %v5768_v46 = vpop.f32.mrb[1].mxu0 }
 0x173   : > { %v1355_v48 = vmax.f32 %v8245_v43, %v8248_v45  ;;  %v5784_v49 = vpop.f32.mrb[1].mxu1  ;;  %v1261_v50 = vpop.f32.mrb[2].mxu0  ;;  %6053 = vmatpush3.bf16.msra.mxu0 %v7676_v57  ;;  %v7125_v57 = vld [vmem:[%s9395_s1 + $0x178] sm:$0xff]  }
 0x174   : > { %v1351_v51 = vpop.f32.mrb[2].mxu1  ;;  %6069 = vmatpush3.bf16.msra.mxu1 %v7682_v59  ;;  %v5769_v52 = vpop.f32.mrb[3].mxu0  ;;  %6074 = vmatprep.subr.bf16.mxu0 %v7210_v5  ;;  %v7126_v59 = vld [vmem:[%s9395_s1 + $0x90] sm:$0xff]  }
 0x175   : > { %v5785_v53 = vpop.f32.mrb[3].mxu1  ;;  %6090 = vmatprep.subr.bf16.mxu1 %v7210_v5 }
 0x176   : > { %6055 = vmatmul.mubr.msk.bf16.vlgmr.msra.gmra.mrb[8].mxu0 %vm510_vm1, %v7971_v11 }
 0x177   : > { %6071 = vmatmul.mubr.msk.bf16.vlgmr.msra.gmra.mrb[8].mxu1 %vm510_vm1, %v7971_v11  ;;  %6075 = vmatpush3.bf16.msra.mxu0 %v7691_v60  ;;  %v7127_v60 = vld [vmem:[%s9395_s1 + $0x180] sm:$0xff]  }
 0x178   : > { %6091 = vmatpush3.bf16.msra.mxu1 %v7698_v62  ;;  %6076 = vmatprep.subr.bf16.mxu0 %v7210_v5  ;;  %v7129_v62 = vld [vmem:[%s9395_s1 + $0x188] sm:$0xff]  }
 0x179   : > { %6092 = vmatprep.subr.bf16.mxu1 %v7210_v5  ;;  %6086 = vmatprep.mubr.msk.bf16.mxu0 %vm7211_vm0, %v7210_v5 }
 0x17a   : > { %6102 = vmatprep.mubr.msk.bf16.mxu1 %vm7211_vm0, %v7210_v5 }
 0x17b   : > { %6077 = vmatpush3.bf16.msra.mxu0 %v7707_v63  ;;  %v7130_v63 = vld [vmem:[%s9395_s1 + $0xa0] sm:$0xff]  }
 0x17c   : > { %6093 = vmatpush3.bf16.msra.mxu1 %v7714_v0  ;;  %6078 = vmatprep.subr.bf16.mxu0 %v7210_v5  ;;  %v7131_v0 = vld [vmem:[%s9395_s1 + $0x190] sm:$0xff]  }
 0x17d   : > { %6094 = vmatprep.subr.bf16.mxu1 %v7210_v5 }
 0x17f   : > { %6079 = vmatpush3.bf16.msra.mxu0 %v7725_v1  ;;  %v7132_v1 = vld [vmem:[%s9395_s1 + $0xa8] sm:$0xff]  }
 0x180   : > { %6095 = vmatpush3.bf16.msra.mxu1 %v7732_v2  ;;  %6080 = vmatprep.subr.bf16.mxu0 %v7210_v5  ;;  %v7133_v2 = vld [vmem:[%s9395_s1 + $0x198] sm:$0xff]  }
 0x181   : > { %6096 = vmatprep.subr.bf16.mxu1 %v7210_v5 }
 0x183   : > { %6081 = vmatpush3.bf16.msra.mxu0 %v7743_v3  ;;  %v7134_v3 = vld [vmem:[%s9395_s1 + $0xb0] sm:$0xff]  }
 0x184   : > { %6097 = vmatpush3.bf16.msra.mxu1 %v7748_v4  ;;  %6082 = vmatprep.subr.bf16.mxu0 %v7210_v5  ;;  %v7135_v4 = vld [vmem:[%s9395_s1 + $0x1a0] sm:$0xff]  }
 0x185   : > { %6098 = vmatprep.subr.bf16.mxu1 %v7210_v5 }
 0x187   : > { %6083 = vmatpush3.bf16.msra.mxu0 %v7757_v6 }
 0x188   : > { %6099 = vmatpush3.bf16.msra.mxu1 %v7765_v7  ;;  %6084 = vmatprep.subr.bf16.mxu0 %v7210_v5 }
 0x189   : > { %6100 = vmatprep.subr.bf16.mxu1 %v7210_v5 }
 0x18b   : > { %6085 = vmatpush3.bf16.msra.mxu0 %v7771_v8 }
 0x18c   : > { %6101 = vmatpush3.bf16.msra.mxu1 %v7777_v16  ;;  %6106 = vmatprep.subr.bf16.mxu0 %v7210_v5 }
 0x18d   : > { %6138 = vmatprep.subr.bf16.mxu1 %v7210_v5 }
 0x18e   : > { %6087 = vmatmul.mubr.msk.bf16.vlgmr.msra.gmra.mrb[8].mxu0 %vm510_vm1, %v8285_v55 }
 0x18f   : > { %6103 = vmatmul.mubr.msk.bf16.vlgmr.msra.gmra.mrb[8].mxu1 %vm510_vm1, %v8285_v55  ;;  %6107 = vmatpush3.bf16.msra.mxu0 %v7796_v32 }
 0x190   : > { %6139 = vmatpush3.bf16.msra.mxu1 %v9415_v12  ;;  %6108 = vmatprep.subr.bf16.mxu0 %v7210_v5  ;;  %v7136_v12 = vld [vmem:[%s9395_s1 + $0xb8] sm:$0xff]  }
 0x191   : > { %6140 = vmatprep.subr.bf16.mxu1 %v7210_v5  ;;  %6118 = vmatprep.mubr.msk.bf16.mxu0 %vm7211_vm0, %v7210_v5 }
 0x192   : > { %6150 = vmatprep.mubr.msk.bf16.mxu1 %vm7211_vm0, %v7210_v5 }
 0x193   : > { %6109 = vmatpush3.bf16.msra.mxu0 %v7814_v58 }
 0x194   : > { %6141 = vmatpush3.bf16.msra.mxu1 %v7820_v9  ;;  %6110 = vmatprep.subr.bf16.mxu0 %v7210_v5 }
 0x195   : > { %6142 = vmatprep.subr.bf16.mxu1 %v7210_v5 }
 0x197   : > { %6111 = vmatpush3.bf16.msra.mxu0 %v7828_v44 }
 0x198   : > { %6143 = vmatpush3.bf16.msra.mxu1 %v7997_v13  ;;  %6112 = vmatprep.subr.bf16.mxu0 %v7210_v5 }
 0x199   : > { %6144 = vmatprep.subr.bf16.mxu1 %v7210_v5 }
 0x19b   : > { %6113 = vmatpush3.bf16.msra.mxu0 %v8005_v14  ;;  %v7137_v14 = vld [vmem:[%s9395_s1 + $0x1a8] sm:$0xff]  }
 0x19c   : > { %6145 = vmatpush3.bf16.msra.mxu1 %v8011_v15  ;;  %6114 = vmatprep.subr.bf16.mxu0 %v7210_v5 }
 0x19d   : > { %6146 = vmatprep.subr.bf16.mxu1 %v7210_v5 }
 0x19f   : > { %6115 = vmatpush3.bf16.msra.mxu0 %v8019_v17 }
 0x1a0   : > { %6147 = vmatpush3.bf16.msra.mxu1 %v8025_v18  ;;  %6116 = vmatprep.subr.bf16.mxu0 %v7210_v5 }
 0x1a1   : > { %6148 = vmatprep.subr.bf16.mxu1 %v7210_v5 }
 0x1a3   : > { %6117 = vmatpush3.bf16.msra.mxu0 %v8033_v19  ;;  %v7138_v19 = vld [vmem:[%s9395_s1 + $0xc0] sm:$0xff]  }
 0x1a4   : > { %6149 = vmatpush3.bf16.msra.mxu1 %v8039_v20  ;;  %6122 = vmatprep.subr.bf16.mxu0 %v7210_v5  ;;  %v7139_v20 = vld [vmem:[%s9395_s1 + $0x1b0] sm:$0xff]  }
 0x1a5   : > { %6154 = vmatprep.subr.bf16.mxu1 %v7210_v5 }
 0x1a6   : > { %6119 = vmatmul.mubr.msk.bf16.vlgmr.msra.gmra.mrb[12].mxu0 %vm510_vm1, %v7783_v30 }
 0x1a7   : > { %6123 = vmatpush3.bf16.msra.mxu0 %v8049_v21  ;;  %6151 = vmatmul.mubr.msk.bf16.vlgmr.msra.gmra.mrb[12].mxu1 %vm510_vm1, %v7783_v30  ;;  %v7140_v21 = vld [vmem:[%s9395_s1 + $0xc8] sm:$0xff]  }
 0x1a8   : > { %6155 = vmatpush3.bf16.msra.mxu1 %v8057_v22  ;;  %6124 = vmatprep.subr.bf16.mxu0 %v7210_v5  ;;  %v7141_v22 = vld [vmem:[%s9395_s1 + $0x1b8] sm:$0xff]  }
 0x1a9   : > { %6156 = vmatprep.subr.bf16.mxu1 %v7210_v5  ;;  %6134 = vmatprep.mubr.msk.bf16.mxu0 %vm7211_vm0, %v7210_v5 }
 0x1aa   : > { %6166 = vmatprep.mubr.msk.bf16.mxu1 %vm7211_vm0, %v7210_v5 }
 0x1ab   : > { %6125 = vmatpush3.bf16.msra.mxu0 %v8069_v23  ;;  %v7142_v23 = vld [vmem:[%s9395_s1 + $0xd0] sm:$0xff]  }
 0x1ac   : > { %6157 = vmatpush3.bf16.msra.mxu1 %v8075_v24  ;;  %6126 = vmatprep.subr.bf16.mxu0 %v7210_v5  ;;  %v7143_v24 = vld [vmem:[%s9395_s1 + $0x1c0] sm:$0xff]  }
 0x1ad   : > { %6158 = vmatprep.subr.bf16.mxu1 %v7210_v5 }
 0x1af   : > { %6127 = vmatpush3.bf16.msra.mxu0 %v8083_v25  ;;  %v7144_v25 = vld [vmem:[%s9395_s1 + $0xd8] sm:$0xff]  }
 0x1b0   : > { %6159 = vmatpush3.bf16.msra.mxu1 %v8089_v26  ;;  %6128 = vmatprep.subr.bf16.mxu0 %v7210_v5  ;;  %v7145_v26 = vld [vmem:[%s9395_s1 + $0x1c8] sm:$0xff]  }
 0x1b1   : > { %6160 = vmatprep.subr.bf16.mxu1 %v7210_v5 }
 0x1b3   : > { %6129 = vmatpush3.bf16.msra.mxu0 %v8097_v27  ;;  %v4886_v27 = vld [vmem:[%s7396_s12 + $0x19] sm:$0x7f]  ;;  %s7212_s12 = smov [#allocation3]  }
 0x1b4   : > { %6161 = vmatpush3.bf16.msra.mxu1 %v8103_v28  ;;  %6130 = vmatprep.subr.bf16.mxu0 %v7210_v5  ;;  %v2515_v28 = vpack.c.bf16 %v4886_v27, %v4886_v27  ;;  %v8751_v27 = vld [vmem:[%s9397_s3 + $0x14c] sm:$0xff]   ;;  %s7150_s24 = sshll.u32 %s7212_s12, 4  ;;  %s7151_s24 = int_to_ptr.vmem [resolvable:$false] %s7150_s24 }
 0x1b5   : > { %6162 = vmatprep.subr.bf16.mxu1 %v7210_v5  ;;  %s7152_s15 = scalar_lea.vmem %s7151_s24, 32  ;;  %p7153_p2 = scmp.lt.s32.totalorder %s9352_s13, %s7151_s24 }
 0x1b6   : > { %p7154_p3 = scmp.lt.s32.totalorder %s7152_s15, %s7146_s21 }
 0x1b7   : > { %6131 = vmatpush3.bf16.msra.mxu0 %v8111_v29  ;;  %v8501_v29 = vld [vmem:[%s9397_s3 + $0x2c] sm:$0xff]  }
 0x1b8   : > { %6163 = vmatpush3.bf16.msra.mxu1 %v8117_v31  ;;  %6132 = vmatprep.subr.bf16.mxu0 %v7210_v5  ;;  %v8542_v31 = vld [vmem:[%s9397_s3 + $0x118] sm:$0xff]   ;;  %p7155_p4 = por %p7154_p3, %p7153_p2 }
 0x1b9   : > { %6164 = vmatprep.subr.bf16.mxu1 %v7210_v5 }
 0x1ba   : > { %p7156_p5 = pnand %p7155_p4, %p7149_p1 }
 0x1bb   : > { %6133 = vmatpush3.bf16.msra.mxu0 %v8125_v33  ;;  %v8549_v33 = vld [vmem:[%s9397_s3 + $0x44] sm:$0xff]  }
 0x1bc   : > { %6165 = vmatpush3.bf16.msra.mxu1 %v8131_v34  ;;  %6170 = vmatprep.subr.bf16.mxu0 %v7210_v5  ;;  %v8556_v34 = vld [vmem:[%s9397_s3 + $0x120] sm:$0xff]  }
 0x1bd   : > { %6186 = vmatprep.subr.bf16.mxu1 %v7210_v5 }
 0x1be   : > { %6135 = vmatmul.mubr.msk.bf16.vlgmr.msra.gmra.mrb[12].mxu0 %vm510_vm1, %v7693_v61 }
 0x1bf   : > { %6167 = vmatmul.mubr.msk.bf16.vlgmr.msra.gmra.mrb[12].mxu1 %vm510_vm1, %v7693_v61  ;;  %6171 = vmatpush3.bf16.msra.mxu0 %v8143_v35  ;;  %v7128_v61 = vld [vmem:[%s9395_s1 + $0x98] sm:$0xff]   ;;  %v8566_v35 = vld [vmem:[%s9397_s3 + $0x4c] sm:$0xff]  }
 0x1c0   : > { %6187 = vmatpush3.bf16.msra.mxu1 %v8149_v36  ;;  %6172 = vmatprep.subr.bf16.mxu0 %v7210_v5  ;;  %v8571_v36 = vld [vmem:[%s9397_s3 + $0x128] sm:$0xff]  }
 0x1c1   : > { %6188 = vmatprep.subr.bf16.mxu1 %v7210_v5  ;;  %6182 = vmatprep.mubr.msk.bf16.mxu0 %vm7211_vm0, %v7210_v5 }
 0x1c2   : > { %6198 = vmatprep.mubr.msk.bf16.mxu1 %vm7211_vm0, %v7210_v5 }
 0x1c3   : > { %6173 = vmatpush3.bf16.msra.mxu0 %v8161_v37  ;;  %v6999_v37 = vld [vmem:[%s9397_s3 + $0x54] ss:$0 sps:$4 sm:$0x33]  }
 0x1c4   : > { %6189 = vmatpush3.bf16.msra.mxu1 %v8167_v38  ;;  %6174 = vmatprep.subr.bf16.mxu0 %v7210_v5  ;;  %v7000_v38 = vld [vmem:[%s9397_s3 + $0x130] ss:$0 sps:$4 sm:$0x33]  }
 0x1c5   : > { %6190 = vmatprep.subr.bf16.mxu1 %v7210_v5 }
 0x1c7   : > { %6175 = vmatpush3.bf16.msra.mxu0 %v8175_v39  ;;  %v8584_v39 = vsel %vm2679_vm2, %v6999_v37, 0  ;;  %v8765_v37 = vld [vmem:[%s9397_s3 + $0x154] sm:$0xff]  }
 0x1c8   : > { %6191 = vmatpush3.bf16.msra.mxu1 %v8181_v40  ;;  %6176 = vmatprep.subr.bf16.mxu0 %v7210_v5  ;;  %v8587_v40 = vsel %vm2679_vm2, %v7000_v38, 0 }
 0x1c9   : > { %6192 = vmatprep.subr.bf16.mxu1 %v7210_v5 }
 0x1cb   : > { %6177 = vmatpush3.bf16.msra.mxu0 %v8189_v41 }
 0x1cc   : > { %6193 = vmatpush3.bf16.msra.mxu1 %v8195_v42  ;;  %6178 = vmatprep.subr.bf16.mxu0 %v7210_v5 }
 0x1cd   : > { %6194 = vmatprep.subr.bf16.mxu1 %v7210_v5 }
 0x1cf   : > { %6179 = vmatpush3.bf16.msra.mxu0 %v8203_v47 }
 0x1d0   : > { %6195 = vmatpush3.bf16.msra.mxu1 %v8209_v10  ;;  %6180 = vmatprep.subr.bf16.mxu0 %v7210_v5 }
 0x1d1   : > { %6196 = vmatprep.subr.bf16.mxu1 %v7210_v5 }
 0x1d3   : > { %6181 = vmatpush3.bf16.msra.mxu0 %v7124_v56 }
 0x1d4   : > { %6197 = vmatpush3.bf16.msra.mxu1 %v7125_v57  ;;  %6202 = vmatprep.subr.bf16.mxu0 %v7210_v5 }
 0x1d5   : > { %6218 = vmatprep.subr.bf16.mxu1 %v7210_v5 }
 0x1d6   : > { %6183 = vmatmul.mubr.msk.bf16.vlgmr.msra.gmra.mrb[12].mxu0 %vm510_vm1, %v7971_v11 }
 0x1d7   : > { %6199 = vmatmul.mubr.msk.bf16.vlgmr.msra.gmra.mrb[12].mxu1 %vm510_vm1, %v7971_v11  ;;  %6203 = vmatpush3.bf16.msra.mxu0 %v7126_v59 }
 0x1d8   : > { %6219 = vmatpush3.bf16.msra.mxu1 %v7127_v60  ;;  %6204 = vmatprep.subr.bf16.mxu0 %v7210_v5 }
 0x1d9   : > { %6220 = vmatprep.subr.bf16.mxu1 %v7210_v5  ;;  %6214 = vmatprep.mubr.msk.bf16.mxu0 %vm7211_vm0, %v7210_v5 }
 0x1da   : > { %6230 = vmatprep.mubr.msk.bf16.mxu1 %vm7211_vm0, %v7210_v5 }
 0x1db   : > { %6205 = vmatpush3.bf16.msra.mxu0 %v7128_v61  ;;  %v4866_v61 = vld [vmem:[%s9396_s2] ss:$0 sm:$0xff] }
 0x1dc   : > { %6221 = vmatpush3.bf16.msra.mxu1 %v7129_v62  ;;  %6206 = vmatprep.subr.bf16.mxu0 %v7210_v5 }
 0x1dd   : > { %6222 = vmatprep.subr.bf16.mxu1 %v7210_v5 }
 0x1df   : > { %6207 = vmatpush3.bf16.msra.mxu0 %v7130_v63 }
 0x1e0   : > { %6223 = vmatpush3.bf16.msra.mxu1 %v7131_v0  ;;  %6208 = vmatprep.subr.bf16.mxu0 %v7210_v5  ;;  %v8599_v0 = vld [vmem:[%s9397_s3] sm:$0xff]  }
 0x1e1   : > { %6224 = vmatprep.subr.bf16.mxu1 %v7210_v5 }
 0x1e3   : > { %6209 = vmatpush3.bf16.msra.mxu0 %v7132_v1  ;;  %v8604_v1 = vld [vmem:[%s9397_s3 + $0xdc] sm:$0xff]  }
 0x1e4   : > { %6225 = vmatpush3.bf16.msra.mxu1 %v7133_v2  ;;  %6210 = vmatprep.subr.bf16.mxu0 %v7210_v5 }
 0x1e5   : > { %6226 = vmatprep.subr.bf16.mxu1 %v7210_v5 }
 0x1e7   : > { %6211 = vmatpush3.bf16.msra.mxu0 %v7134_v3  ;;  %v8617_v3 = vld [vmem:[%s9397_s3 + $0x8] sm:$0xff]  }
 0x1e8   : > { %6227 = vmatpush3.bf16.msra.mxu1 %v7135_v4  ;;  %6212 = vmatprep.subr.bf16.mxu0 %v7210_v5  ;;  %v8622_v4 = vld [vmem:[%s9397_s3 + $0xe4] sm:$0xff]  }
 0x1e9   : > { %v1719_v30 = vpop.f32.mrb[4].mxu0  ;;  %6228 = vmatprep.subr.bf16.mxu1 %v7210_v5 }
 0x1ea   : > { %v1760_v32 = vpop.f32.mrb[4].mxu1  ;;  %v5928_v44 = vpop.f32.mrb[5].mxu0 }
 0x1eb   : > { %v1767_v58 = vmax.f32 %v1719_v30, %v1760_v32  ;;  %v5944_v9 = vpop.f32.mrb[5].mxu1  ;;  %v1722_v11 = vpop.f32.mrb[6].mxu0  ;;  %6213 = vmatpush3.bf16.msra.mxu0 %v7136_v12  ;;  %v8635_v30 = vld [vmem:[%s9397_s3 + $0x10] sm:$0xff]   ;;  %v8649_v44 = vld [vmem:[%s9397_s3 + $0x18] sm:$0xff]  }
 0x1ec   : > { %v1763_v13 = vpop.f32.mrb[6].mxu1  ;;  %6229 = vmatpush3.bf16.msra.mxu1 %v7137_v14  ;;  %v5929_v15 = vpop.f32.mrb[7].mxu0  ;;  %6234 = vmatprep.subr.bf16.mxu0 %v7210_v5  ;;  %v8640_v32 = vld [vmem:[%s9397_s3 + $0xec] sm:$0xff]   ;;  %v8663_v9 = vld [vmem:[%s9397_s3 + $0x20] sm:$0xff]  }
 0x1ed   : > { %v8449_v17 = vmax.f32 %v1355_v48, %v1767_v58  ;;  %v5945_v18 = vpop.f32.mrb[7].mxu1  ;;  %6250 = vmatprep.subr.bf16.mxu1 %v7210_v5  ;;  %v8654_v58 = vld [vmem:[%s9397_s3 + $0xf4] sm:$0xff]   ;;  %v8668_v11 = vld [vmem:[%s9397_s3 + $0xfc] sm:$0xff]   ;;  %v7011_v13 = vld [vmem:[%s9397_s3 + $0x28] ss:$0 sps:$4 sm:$0x33]  }
 0x1ee   : > { %6215 = vmatmul.mubr.msk.bf16.vlgmr.msra.gmra.mrb[12].mxu0 %vm510_vm1, %v8285_v55  ;;  %v7012_v14 = vld [vmem:[%s9397_s3 + $0x104] ss:$0 sps:$4 sm:$0x33]  }
 0x1ef   : > { %6231 = vmatmul.mubr.msk.bf16.vlgmr.msra.gmra.mrb[12].mxu1 %vm510_vm1, %v8285_v55  ;;  %6235 = vmatpush3.bf16.msra.mxu0 %v7138_v19  ;;  %v1776_v12 = vadd.f32 %v4866_v61, %v8449_v17  ;;  %v8684_v17 = vsel %vm2679_vm2, %v7011_v13, 0  ;;  %v8687_v18 = vsel %vm2679_vm2, %v7012_v14, 0  ;;  %v8694_v19 = vld [vmem:[%s9397_s3 + $0x58] sm:$0xff]   ;;  %v8890_v14 = vld [vmem:[%s9397_s3 + $0xb0] sm:$0xff]  }
 0x1f0   : > { %6251 = vmatpush3.bf16.msra.mxu1 %v7139_v20  ;;  %6236 = vmatprep.subr.bf16.mxu0 %v7210_v5  ;;  %v8699_v20 = vld [vmem:[%s9397_s3 + $0x134] sm:$0xff]  }
 0x1f1   : > { %6252 = vmatprep.subr.bf16.mxu1 %v7210_v5  ;;  %6246 = vmatprep.mubr.msk.bf16.mxu0 %vm7211_vm0, %v7210_v5  ;;  %v1777_v15 = vmax.f32 %v1776_v12, 0.0 }
 0x1f2   : > { %6262 = vmatprep.mubr.msk.bf16.mxu1 %vm7211_vm0, %v7210_v5 }
 0x1f3   : > { %6237 = vmatpush3.bf16.msra.mxu0 %v7140_v21  ;;  %v8701_v21 = vpack.c.bf16 %v1777_v15, %v1777_v15  ;;  %v8895_v15 = vld [vmem:[%s9397_s3 + $0x18c] sm:$0xff]  }
 0x1f4   : > { %6253 = vmatpush3.bf16.msra.mxu1 %v7141_v22  ;;  %6238 = vmatprep.subr.bf16.mxu0 %v7210_v5  ;;  %v8714_v22 = vld [vmem:[%s9397_s3 + $0x60] sm:$0xff]  }
 0x1f5   : > { %6254 = vmatprep.subr.bf16.mxu1 %v7210_v5  ;;  %v2980_v38 = vshll.u32 %v8701_v21, 16 }
 0x1f7   : > { %6239 = vmatpush3.bf16.msra.mxu0 %v7142_v23  ;;  %v8719_v23 = vld [vmem:[%s9397_s3 + $0x13c] sm:$0xff]  }
 0x1f8   : > { %6255 = vmatpush3.bf16.msra.mxu1 %v7143_v24  ;;  %6240 = vmatprep.subr.bf16.mxu0 %v7210_v5  ;;  %v8732_v24 = vld [vmem:[%s9397_s3 + $0x68] sm:$0xff]  }
 0x1f9   : > { %6256 = vmatprep.subr.bf16.mxu1 %v7210_v5 }
 0x1fb   : > { %6241 = vmatpush3.bf16.msra.mxu0 %v7144_v25  ;;  %v8737_v25 = vld [vmem:[%s9397_s3 + $0x144] sm:$0xff]  }
 0x1fc   : > { %6257 = vmatpush3.bf16.msra.mxu1 %v7145_v26  ;;  %6242 = vmatprep.subr.bf16.mxu0 %v7210_v5  ;;  %v8746_v26 = vld [vmem:[%s9397_s3 + $0x70] sm:$0xff]  }
 0x1fd   : > { %6258 = vmatprep.subr.bf16.mxu1 %v7210_v5 }
 0x1ff   : > { %6243 = vmatpush3.bf16.msra.mxu0 %v7757_v6  ;;  %v8508_v6 = vld [vmem:[%s9397_s3 + $0x108] sm:$0xff]  }
 0x200   : > { %6259 = vmatpush3.bf16.msra.mxu1 %v7765_v7  ;;  %6244 = vmatprep.subr.bf16.mxu0 %v7210_v5  ;;  %v8517_v7 = vld [vmem:[%s9397_s3 + $0x34] sm:$0xff]  }
 0x201   : > { %6260 = vmatprep.subr.bf16.mxu1 %v7210_v5 }
 0x203   : > { %6245 = vmatpush3.bf16.msra.mxu0 %v7771_v8  ;;  %v8524_v8 = vld [vmem:[%s9397_s3 + $0x110] sm:$0xff]  }
 0x204   : > { %6261 = vmatpush3.bf16.msra.mxu1 %v7777_v16  ;;  %6266 = vmatprep.subr.bf16.mxu0 %v7210_v5  ;;  %v8535_v16 = vld [vmem:[%s9397_s3 + $0x3c] sm:$0xff]  }
 0x205   : > { %6298 = vmatprep.subr.bf16.mxu1 %v7210_v5 }
 0x206   : > { %6247 = vmatmul.mubr.msk.bf16.vlgmr.msra.gmra.mrb[12].mxu0 %vm510_vm1, %v2515_v28 }
 0x207   : > { %6263 = vmatmul.mubr.msk.bf16.vlgmr.msra.gmra.mrb[12].mxu1 %vm510_vm1, %v2515_v28  ;;  %6267 = vmatpush3.bf16.msra.mxu0 %v8501_v29  ;;  %v8760_v28 = vld [vmem:[%s9397_s3 + $0x78] sm:$0xff]  }
 0x208   : > { %6299 = vmatpush3.bf16.msra.mxu1 %v8508_v6  ;;  %6268 = vmatprep.subr.bf16.mxu0 %v7210_v5 }
 0x209   : > { %6300 = vmatprep.subr.bf16.mxu1 %v7210_v5  ;;  %6278 = vmatprep.mubr.msk.bf16.mxu0 %vm7211_vm0, %v7210_v5 }
 0x20a   : > { %6310 = vmatprep.mubr.msk.bf16.mxu1 %vm7211_vm0, %v7210_v5 }
 0x20b   : > { %6269 = vmatpush3.bf16.msra.mxu0 %v8517_v7 }
 0x20c   : > { %6301 = vmatpush3.bf16.msra.mxu1 %v8524_v8  ;;  %6270 = vmatprep.subr.bf16.mxu0 %v7210_v5 }
 0x20d   : > { %6302 = vmatprep.subr.bf16.mxu1 %v7210_v5 }
 0x20f   : > { %6271 = vmatpush3.bf16.msra.mxu0 %v8535_v16 }
 0x210   : > { %6303 = vmatpush3.bf16.msra.mxu1 %v8542_v31  ;;  %6272 = vmatprep.subr.bf16.mxu0 %v7210_v5 }
 0x211   : > { %6304 = vmatprep.subr.bf16.mxu1 %v7210_v5 }
 0x213   : > { %6273 = vmatpush3.bf16.msra.mxu0 %v8549_v33 }
 0x214   : > { %6305 = vmatpush3.bf16.msra.mxu1 %v8556_v34  ;;  %6274 = vmatprep.subr.bf16.mxu0 %v7210_v5 }
 0x215   : > { %6306 = vmatprep.subr.bf16.mxu1 %v7210_v5 }
 0x217   : > { %6275 = vmatpush3.bf16.msra.mxu0 %v8566_v35 }
 0x218   : > { %6307 = vmatpush3.bf16.msra.mxu1 %v8571_v36  ;;  %6276 = vmatprep.subr.bf16.mxu0 %v7210_v5 }
 0x219   : > { %6308 = vmatprep.subr.bf16.mxu1 %v7210_v5 }
 0x21b   : > { %6277 = vmatpush3.bf16.msra.mxu0 %v8584_v39 }
 0x21c   : > { %6309 = vmatpush3.bf16.msra.mxu1 %v8587_v40  ;;  %6282 = vmatprep.subr.bf16.mxu0 %v7210_v5 }
 0x21d   : > { %6314 = vmatprep.subr.bf16.mxu1 %v7210_v5 }
 0x261   : > { %v2141_v41 = vpop.f32.mrb[8].mxu0 }
 0x262   : > { %v2182_v42 = vpop.f32.mrb[8].mxu1  ;;  %v6088_v47 = vpop.f32.mrb[9].mxu0 }
 0x263   : > { %v2189_v10 = vmax.f32 %v2141_v41, %v2182_v42  ;;  %v6104_v43 = vpop.f32.mrb[9].mxu1  ;;  %v2144_v45 = vpop.f32.mrb[10].mxu0  ;;  %v7023_v41 = vld [vmem:[%s9397_s3 + $0x80] ss:$0 sps:$4 sm:$0x33]  }
 0x264   : > { %v2185_v46 = vpop.f32.mrb[10].mxu1  ;;  %v6089_v48 = vpop.f32.mrb[11].mxu0  ;;  %v7024_v42 = vld [vmem:[%s9397_s3 + $0x15c] ss:$0 sps:$4 sm:$0x33]   ;;  %v8781_v47 = vsel %vm2679_vm2, %v7023_v41, 0 }
 0x265   : > { %v6105_v49 = vpop.f32.mrb[11].mxu1  ;;  %v2982_v43 = vrot.slane %v2980_v38, 1  ;;  %v2978_v45 = vshrl.u32 %v8701_v21, 16  ;;  %v8792_v46 = vld [vmem:[%s9397_s3 + $0x84] sm:$0xff]   ;;  %v8910_v41 = vld [vmem:[%s9397_s3 + $0xb8] sm:$0xff]  }
 0x266   : > { %v8797_v48 = vld [vmem:[%s9397_s3 + $0x160] sm:$0xff]  }
 0x267   : > { %v8799_v49 = vor.u32 %v2982_v43, %v2978_v45  ;;  %v8928_v43 = vld [vmem:[%s9397_s3 + $0xc0] sm:$0xff]  }
 0x268   : > { %9416 = vst [vmem:[#allocation6_spill] sm:$0xff] %v8928_v43  ;;  %v8933_v45 = vld [vmem:[%s9397_s3 + $0x19c] sm:$0xff]  }
 0x269   : > { %9417 = vst [vmem:[#allocation7_spill] sm:$0xff] %v8933_v45 }
 0x2d9   : > { %v2553_v50 = vpop.f32.mrb[12].mxu0 }
 0x2da   : > { %v2594_v51 = vpop.f32.mrb[12].mxu1  ;;  %v6248_v52 = vpop.f32.mrb[13].mxu0 }
 0x2db   : > { %v2601_v53 = vmax.f32 %v2553_v50, %v2594_v51  ;;  %v6264_v54 = vpop.f32.mrb[13].mxu1  ;;  %v2556_v55 = vpop.f32.mrb[14].mxu0  ;;  %v8812_v50 = vld [vmem:[%s9397_s3 + $0x8c] sm:$0xff]   ;;  %v8830_v52 = vld [vmem:[%s9397_s3 + $0x94] sm:$0xff]  }
 0x2dc   : > { %v2597_v56 = vpop.f32.mrb[14].mxu1  ;;  %v6249_v57 = vpop.f32.mrb[15].mxu0  ;;  %v8817_v51 = vld [vmem:[%s9397_s3 + $0x168] sm:$0xff]   ;;  %v8844_v54 = vld [vmem:[%s9397_s3 + $0x9c] sm:$0xff]  }
 0x2dd   : > { %v2602_v59 = vmax.f32 %v2189_v10, %v2601_v53  ;;  %v6265_v60 = vpop.f32.mrb[15].mxu1  ;;  %v8784_v10 = vsel %vm2679_vm2, %v7024_v42, 0  ;;  %v8835_v53 = vld [vmem:[%s9397_s3 + $0x170] sm:$0xff]   ;;  %v8849_v55 = vld [vmem:[%s9397_s3 + $0x178] sm:$0xff]   ;;  %v8858_v56 = vld [vmem:[%s9397_s3 + $0xa4] sm:$0xff]  }
 0x2de   : > { %v8863_v57 = vld [vmem:[%s9397_s3 + $0x180] sm:$0xff]   ;;  %v7036_v60 = vld [vmem:[%s9397_s3 + $0x188] ss:$0 sps:$4 sm:$0x33]   ;;  %v8915_v42 = vld [vmem:[%s9397_s3 + $0x194] sm:$0xff]  }
 0x2df   : > { %v2603_v62 = vadd.f32 %v4866_v61, %v2602_v59  ;;  %v7035_v59 = vld [vmem:[%s9397_s3 + $0xac] ss:$0 sps:$4 sm:$0x33]  }
 0x2e1   : > { %v2604_v63 = vmax.f32 %v2603_v62, 0.0  ;;  %v8879_v62 = vsel %vm2679_vm2, %v7035_v59, 0  ;;  %v8942_v59 = vld [vmem:[%s9397_s3 + $0xc8] sm:$0xff]  }
 0x2e2   : > { %9418 = vst [vmem:[#allocation8_spill] sm:$0xff] %v8942_v59 }
 0x2e3   : > { %v8606_v2 = vpack.c.bf16 %v2604_v63, %v2604_v63  ;;  %v8882_v63 = vsel %vm2679_vm2, %v7036_v60, 0  ;;  %v8947_v60 = vld [vmem:[%s9397_s3 + $0x1a4] sm:$0xff]  }
 0x2e4   : > { %9419 = vst [vmem:[#allocation9_spill] sm:$0xff] %v8947_v60 }
 0x2e5   : > { %6279 = vmatmul.mubr.msk.bf16.vlgmr.msra.gmra.mrb[16].mxu0 %vm2675_vm3, %v8606_v2  ;;  %6311 = vmatmul.mubr.msk.bf16.vlgmr.msra.gmra.mrb[16].mxu1 %vm2675_vm3, %v8606_v2  ;;  %v3167_v61 = vshll.u32 %v8606_v2, 16  ;;  %v3165_v13 = vshrl.u32 %v8606_v2, 16 }
 0x2e6   : > { %6283 = vmatpush3.bf16.msra.mxu0 %v8599_v0  ;;  %6315 = vmatpush3.bf16.msra.mxu1 %v8604_v1 }
 0x2e7   : > { %6284 = vmatprep.subr.bf16.mxu0 %v7210_v5  ;;  %6316 = vmatprep.subr.bf16.mxu1 %v7210_v5  ;;  %v3169_v12 = vrot.slane %v3167_v61, 1  ;;  %v8956_v61 = vld [vmem:[%s9397_s3 + $0xd0] sm:$0xff]  }
 0x2e8   : > { %6294 = vmatprep.mubr.msk.bf16.mxu0 %vm7211_vm0, %v7210_v5  ;;  %6326 = vmatprep.mubr.msk.bf16.mxu1 %vm7211_vm0, %v7210_v5 }
 0x2e9   : > { %v8897_v38 = vor.u32 %v3169_v12, %v3165_v13  ;;  %v8961_v12 = vld [vmem:[%s9397_s3 + $0x1ac] sm:$0xff]   ;;  %v7047_v13 = vld [vmem:[%s9397_s3 + $0xd8] ss:$0 sps:$4 sm:$0x33]  }
 0x2ea   : > { %6285 = vmatpush3.bf16.msra.mxu0 %v8617_v3  ;;  %6317 = vmatpush3.bf16.msra.mxu1 %v8622_v4 }
 0x2eb   : > { %6286 = vmatprep.subr.bf16.mxu0 %v7210_v5  ;;  %6318 = vmatprep.subr.bf16.mxu1 %v7210_v5 }
 0x2ee   : > { %6287 = vmatpush3.bf16.msra.mxu0 %v8635_v30  ;;  %6319 = vmatpush3.bf16.msra.mxu1 %v8640_v32 }
 0x2ef   : > { %6288 = vmatprep.subr.bf16.mxu0 %v7210_v5  ;;  %6320 = vmatprep.subr.bf16.mxu1 %v7210_v5 }
 0x2f2   : > { %6289 = vmatpush3.bf16.msra.mxu0 %v8649_v44  ;;  %6321 = vmatpush3.bf16.msra.mxu1 %v8654_v58 }
 0x2f3   : > { %6290 = vmatprep.subr.bf16.mxu0 %v7210_v5  ;;  %6322 = vmatprep.subr.bf16.mxu1 %v7210_v5 }
 0x2f6   : > { %6291 = vmatpush3.bf16.msra.mxu0 %v8663_v9  ;;  %6323 = vmatpush3.bf16.msra.mxu1 %v8668_v11 }
 0x2f7   : > { %6292 = vmatprep.subr.bf16.mxu0 %v7210_v5  ;;  %6324 = vmatprep.subr.bf16.mxu1 %v7210_v5 }
 0x2fa   : > { %6293 = vmatpush3.bf16.msra.mxu0 %v8684_v17  ;;  %6325 = vmatpush3.bf16.msra.mxu1 %v8687_v18 }
 0x2fb   : > { %6330 = vmatprep.subr.bf16.mxu0 %v7210_v5  ;;  %6346 = vmatprep.subr.bf16.mxu1 %v7210_v5 }
 0x2fd   : > { %6295 = vmatmul.mubr.msk.bf16.vlgmr.msra.gmra.mrb[16].mxu0 %vm2675_vm3, %v8701_v21  ;;  %6327 = vmatmul.mubr.msk.bf16.vlgmr.msra.gmra.mrb[16].mxu1 %vm2675_vm3, %v8701_v21 }
 0x2fe   : > { %6331 = vmatpush3.bf16.msra.mxu0 %v8694_v19  ;;  %6347 = vmatpush3.bf16.msra.mxu1 %v8699_v20 }
 0x2ff   : > { %6332 = vmatprep.subr.bf16.mxu0 %v7210_v5  ;;  %6348 = vmatprep.subr.bf16.mxu1 %v7210_v5 }
 0x300   : > { %6342 = vmatprep.mubr.msk.bf16.mxu0 %vm7211_vm0, %v7210_v5  ;;  %6358 = vmatprep.mubr.msk.bf16.mxu1 %vm7211_vm0, %v7210_v5 }
 0x302   : > { %6333 = vmatpush3.bf16.msra.mxu0 %v8714_v22  ;;  %6349 = vmatpush3.bf16.msra.mxu1 %v8719_v23 }
 0x303   : > { %6334 = vmatprep.subr.bf16.mxu0 %v7210_v5  ;;  %6350 = vmatprep.subr.bf16.mxu1 %v7210_v5 }
 0x306   : > { %6335 = vmatpush3.bf16.msra.mxu0 %v8732_v24  ;;  %6351 = vmatpush3.bf16.msra.mxu1 %v8737_v25 }
 0x307   : > { %6336 = vmatprep.subr.bf16.mxu0 %v7210_v5  ;;  %6352 = vmatprep.subr.bf16.mxu1 %v7210_v5 }
 0x30a   : > { %6337 = vmatpush3.bf16.msra.mxu0 %v8746_v26  ;;  %6353 = vmatpush3.bf16.msra.mxu1 %v8751_v27 }
 0x30b   : > { %6338 = vmatprep.subr.bf16.mxu0 %v7210_v5  ;;  %6354 = vmatprep.subr.bf16.mxu1 %v7210_v5 }
 0x30e   : > { %6339 = vmatpush3.bf16.msra.mxu0 %v8760_v28  ;;  %6355 = vmatpush3.bf16.msra.mxu1 %v8765_v37 }
 0x30f   : > { %6340 = vmatprep.subr.bf16.mxu0 %v7210_v5  ;;  %6356 = vmatprep.subr.bf16.mxu1 %v7210_v5 }
 0x312   : > { %6341 = vmatpush3.bf16.msra.mxu0 %v8781_v47  ;;  %6357 = vmatpush3.bf16.msra.mxu1 %v8784_v10 }
 0x313   : > { %6362 = vmatprep.subr.bf16.mxu0 %v7210_v5  ;;  %6378 = vmatprep.subr.bf16.mxu1 %v7210_v5 }
 0x315   : > { %6343 = vmatmul.mubr.msk.bf16.vlgmr.msra.gmra.mrb[16].mxu0 %vm2675_vm3, %v8799_v49  ;;  %6359 = vmatmul.mubr.msk.bf16.vlgmr.msra.gmra.mrb[16].mxu1 %vm2675_vm3, %v8799_v49 }
 0x316   : > { %6363 = vmatpush3.bf16.msra.mxu0 %v8792_v46  ;;  %6379 = vmatpush3.bf16.msra.mxu1 %v8797_v48 }
 0x317   : > { %6364 = vmatprep.subr.bf16.mxu0 %v7210_v5  ;;  %6380 = vmatprep.subr.bf16.mxu1 %v7210_v5 }
 0x318   : > { %6374 = vmatprep.mubr.msk.bf16.mxu0 %vm7211_vm0, %v7210_v5  ;;  %6390 = vmatprep.mubr.msk.bf16.mxu1 %vm7211_vm0, %v7210_v5 }
 0x31a   : > { %6365 = vmatpush3.bf16.msra.mxu0 %v8812_v50  ;;  %6381 = vmatpush3.bf16.msra.mxu1 %v8817_v51 }
 0x31b   : > { %6366 = vmatprep.subr.bf16.mxu0 %v7210_v5  ;;  %6382 = vmatprep.subr.bf16.mxu1 %v7210_v5 }
 0x31e   : > { %6367 = vmatpush3.bf16.msra.mxu0 %v8830_v52  ;;  %6383 = vmatpush3.bf16.msra.mxu1 %v8835_v53 }
 0x31f   : > { %6368 = vmatprep.subr.bf16.mxu0 %v7210_v5  ;;  %6384 = vmatprep.subr.bf16.mxu1 %v7210_v5 }
 0x322   : > { %6369 = vmatpush3.bf16.msra.mxu0 %v8844_v54  ;;  %6385 = vmatpush3.bf16.msra.mxu1 %v8849_v55 }
 0x323   : > { %6370 = vmatprep.subr.bf16.mxu0 %v7210_v5  ;;  %6386 = vmatprep.subr.bf16.mxu1 %v7210_v5 }
 0x326   : > { %6371 = vmatpush3.bf16.msra.mxu0 %v8858_v56  ;;  %6387 = vmatpush3.bf16.msra.mxu1 %v8863_v57 }
 0x327   : > { %6372 = vmatprep.subr.bf16.mxu0 %v7210_v5  ;;  %6388 = vmatprep.subr.bf16.mxu1 %v7210_v5 }
 0x32a   : > { %6373 = vmatpush3.bf16.msra.mxu0 %v8879_v62  ;;  %6389 = vmatpush3.bf16.msra.mxu1 %v8882_v63 }
 0x32b   : > { %6394 = vmatprep.subr.bf16.mxu0 %v7210_v5  ;;  %6410 = vmatprep.subr.bf16.mxu1 %v7210_v5 }
 0x32d   : > { %6375 = vmatmul.mubr.msk.bf16.vlgmr.msra.gmra.mrb[16].mxu0 %vm2675_vm3, %v8897_v38  ;;  %6391 = vmatmul.mubr.msk.bf16.vlgmr.msra.gmra.mrb[16].mxu1 %vm2675_vm3, %v8897_v38 }
 0x32e   : > { %6395 = vmatpush3.bf16.msra.mxu0 %v8890_v14  ;;  %6411 = vmatpush3.bf16.msra.mxu1 %v8895_v15 }
 0x32f   : > { %6396 = vmatprep.subr.bf16.mxu0 %v7210_v5  ;;  %6412 = vmatprep.subr.bf16.mxu1 %v7210_v5 }
 0x330   : > { %6406 = vmatprep.mubr.msk.bf16.mxu0 %vm7211_vm0, %v7210_v5  ;;  %6422 = vmatprep.mubr.msk.bf16.mxu1 %vm7211_vm0, %v7210_v5 }
 0x332   : > { %6397 = vmatpush3.bf16.msra.mxu0 %v8910_v41  ;;  %6413 = vmatpush3.bf16.msra.mxu1 %v8915_v42 }
 0x333   : > { %6398 = vmatprep.subr.bf16.mxu0 %v7210_v5  ;;  %6414 = vmatprep.subr.bf16.mxu1 %v7210_v5 }
 0x336   : > { %6399 = vmatpush3.bf16.msra.mxu0 %v8928_v43  ;;  %6415 = vmatpush3.bf16.msra.mxu1 %v8933_v45  ;;  %v8984_v43 = vrot.slane %v8701_v21, 1 }
 0x337   : > { %6400 = vmatprep.subr.bf16.mxu0 %v7210_v5  ;;  %6416 = vmatprep.subr.bf16.mxu1 %v7210_v5 }
 0x33a   : > { %6401 = vmatpush3.bf16.msra.mxu0 %v8942_v59  ;;  %6417 = vmatpush3.bf16.msra.mxu1 %v8947_v60  ;;  %v7048_v60 = vld [vmem:[%s9397_s3 + $0x1b4] ss:$0 sps:$4 sm:$0x33]   ;;  %v8976_v59 = vsel %vm2679_vm2, %v7047_v13, 0  ;;  %v7079_v13 = vld [vmem:[%s9401_s7 + $0x28] sm:$0xff]  }
 0x33b   : > { %6402 = vmatprep.subr.bf16.mxu0 %v7210_v5  ;;  %6418 = vmatprep.subr.bf16.mxu1 %v7210_v5  ;;  %v8979_v45 = vsel %vm2679_vm2, %v7048_v60, 0  ;;  %v7076_v60 = vld [vmem:[%s9401_s7 + $0x10] sm:$0xff]  }
 0x33e   : > { %6403 = vmatpush3.bf16.msra.mxu0 %v8956_v61  ;;  %6419 = vmatpush3.bf16.msra.mxu1 %v8961_v12 }
 0x33f   : > { %6404 = vmatprep.subr.bf16.mxu0 %v7210_v5  ;;  %6420 = vmatprep.subr.bf16.mxu1 %v7210_v5 }
 0x342   : > { %6405 = vmatpush3.bf16.msra.mxu0 %v8976_v59  ;;  %6421 = vmatpush3.bf16.msra.mxu1 %v8979_v45 }
 0x343   : > { %6426 = vmatprep.subr.bf16.mxu0 %v7210_v5  ;;  %6458 = vmatprep.subr.bf16.mxu1 %v7210_v5 }
 0x345   : > { %6407 = vmatmul.mubr.msk.bf16.vlgmr.msra.gmra.mrb[16].mxu0 %vm2675_vm3, %v8984_v43  ;;  %6423 = vmatmul.mubr.msk.bf16.vlgmr.msra.gmra.mrb[16].mxu1 %vm2675_vm3, %v8984_v43 }
 0x346   : > { %6427 = vmatpush3.bf16.msra.mxu0 %v8501_v29  ;;  %6459 = vmatpush3.bf16.msra.mxu1 %v8508_v6  ;;  %v9420_v29 = vld [vmem:[#allocation6_spill] sm:$0xff]  ;;  %v9421_v6 = vld [vmem:[#allocation7_spill] sm:$0xff] }
 0x347   : > { %6428 = vmatprep.subr.bf16.mxu0 %v7210_v5  ;;  %6460 = vmatprep.subr.bf16.mxu1 %v7210_v5 }
 0x348   : > { %6438 = vmatprep.mubr.msk.bf16.mxu0 %vm7211_vm0, %v7210_v5  ;;  %6470 = vmatprep.mubr.msk.bf16.mxu1 %vm7211_vm0, %v7210_v5 }
 0x34a   : > { %6429 = vmatpush3.bf16.msra.mxu0 %v8517_v7  ;;  %6461 = vmatpush3.bf16.msra.mxu1 %v8524_v8  ;;  %v9422_v7 = vld [vmem:[#allocation8_spill] sm:$0xff]  ;;  %v9423_v8 = vld [vmem:[#allocation9_spill] sm:$0xff] }
 0x34b   : > { %6430 = vmatprep.subr.bf16.mxu0 %v7210_v5  ;;  %6462 = vmatprep.subr.bf16.mxu1 %v7210_v5 }
 0x34e   : > { %6431 = vmatpush3.bf16.msra.mxu0 %v8535_v16  ;;  %6463 = vmatpush3.bf16.msra.mxu1 %v8542_v31  ;;  %v7049_v16 = vld [vmem:[%s9399_s5] sm:$0xff]   ;;  %v7050_v31 = vld [vmem:[%s9399_s5 + $0x28] sm:$0xff]  }
 0x34f   : > { %6432 = vmatprep.subr.bf16.mxu0 %v7210_v5  ;;  %6464 = vmatprep.subr.bf16.mxu1 %v7210_v5 }
 0x352   : > { %6433 = vmatpush3.bf16.msra.mxu0 %v8549_v33  ;;  %6465 = vmatpush3.bf16.msra.mxu1 %v8556_v34  ;;  %v3849_v33 = vrot.slane %v8606_v2, 1  ;;  %v7051_v34 = vld [vmem:[%s9399_s5 + $0x8] sm:$0xff]  }
 0x353   : > { %6434 = vmatprep.subr.bf16.mxu0 %v7210_v5  ;;  %6466 = vmatprep.subr.bf16.mxu1 %v7210_v5 }
 0x356   : > { %6435 = vmatpush3.bf16.msra.mxu0 %v8566_v35  ;;  %6467 = vmatpush3.bf16.msra.mxu1 %v8571_v36  ;;  %v7052_v35 = vld [vmem:[%s9399_s5 + $0x30] sm:$0xff]  }
 0x357   : > { %6436 = vmatprep.subr.bf16.mxu0 %v7210_v5  ;;  %6468 = vmatprep.subr.bf16.mxu1 %v7210_v5  ;;  %v7053_v36 = vld [vmem:[%s9399_s5 + $0x10] sm:$0xff]  }
 0x35a   : > { %6437 = vmatpush3.bf16.msra.mxu0 %v8584_v39  ;;  %6469 = vmatpush3.bf16.msra.mxu1 %v8587_v40  ;;  %v7054_v39 = vld [vmem:[%s9399_s5 + $0x38] sm:$0xff]  }
 0x35b   : > { %6442 = vmatprep.subr.bf16.mxu0 %v7210_v5  ;;  %6474 = vmatprep.subr.bf16.mxu1 %v7210_v5  ;;  %v7055_v40 = vld [vmem:[%s9399_s5 + $0x18] sm:$0xff]  }
 0x35d   : > { %6439 = vmatmul.mubr.msk.bf16.vlgmr.msra.gmra.mrb[20].mxu0 %vm2675_vm3, %v8799_v49  ;;  %6471 = vmatmul.mubr.msk.bf16.vlgmr.msra.gmra.mrb[20].mxu1 %vm2675_vm3, %v8799_v49 }
 0x35e   : > { %6443 = vmatpush3.bf16.msra.mxu0 %v8599_v0  ;;  %6475 = vmatpush3.bf16.msra.mxu1 %v8604_v1  ;;  %v7056_v0 = vld [vmem:[%s9399_s5 + $0x40] sm:$0xff]  }
 0x35f   : > { %6444 = vmatprep.subr.bf16.mxu0 %v7210_v5  ;;  %6476 = vmatprep.subr.bf16.mxu1 %v7210_v5  ;;  %v7057_v1 = vld [vmem:[%s9399_s5 + $0x20] sm:$0xff]  }
 0x360   : > { %6454 = vmatprep.mubr.msk.bf16.mxu0 %vm7211_vm0, %v7210_v5  ;;  %6486 = vmatprep.mubr.msk.bf16.mxu1 %vm7211_vm0, %v7210_v5 }
 0x362   : > { %6445 = vmatpush3.bf16.msra.mxu0 %v8617_v3  ;;  %6477 = vmatpush3.bf16.msra.mxu1 %v8622_v4 }
 0x363   : > { %6446 = vmatprep.subr.bf16.mxu0 %v7210_v5  ;;  %6478 = vmatprep.subr.bf16.mxu1 %v7210_v5 }
 0x366   : > { %6447 = vmatpush3.bf16.msra.mxu0 %v8635_v30  ;;  %6479 = vmatpush3.bf16.msra.mxu1 %v8640_v32 }
 0x367   : > { %6448 = vmatprep.subr.bf16.mxu0 %v7210_v5  ;;  %6480 = vmatprep.subr.bf16.mxu1 %v7210_v5 }
 0x36a   : > { %6449 = vmatpush3.bf16.msra.mxu0 %v8649_v44  ;;  %6481 = vmatpush3.bf16.msra.mxu1 %v8654_v58 }
 0x36b   : > { %6450 = vmatprep.subr.bf16.mxu0 %v7210_v5  ;;  %6482 = vmatprep.subr.bf16.mxu1 %v7210_v5 }
 0x36e   : > { %6451 = vmatpush3.bf16.msra.mxu0 %v8663_v9  ;;  %6483 = vmatpush3.bf16.msra.mxu1 %v8668_v11 }
 0x36f   : > { %6452 = vmatprep.subr.bf16.mxu0 %v7210_v5  ;;  %6484 = vmatprep.subr.bf16.mxu1 %v7210_v5 }
 0x372   : > { %6453 = vmatpush3.bf16.msra.mxu0 %v8684_v17  ;;  %6485 = vmatpush3.bf16.msra.mxu1 %v8687_v18 }
 0x373   : > { %6490 = vmatprep.subr.bf16.mxu0 %v7210_v5  ;;  %6506 = vmatprep.subr.bf16.mxu1 %v7210_v5 }
 0x375   : > { %6455 = vmatmul.mubr.msk.bf16.vlgmr.msra.gmra.mrb[20].mxu0 %vm2675_vm3, %v8606_v2  ;;  %6487 = vmatmul.mubr.msk.bf16.vlgmr.msra.gmra.mrb[20].mxu1 %vm2675_vm3, %v8606_v2  ;;  %v7058_v2 = vld [vmem:[%s9399_s5 + $0x48] sm:$0xff]  }
 0x376   : > { %6491 = vmatpush3.bf16.msra.mxu0 %v8694_v19  ;;  %6507 = vmatpush3.bf16.msra.mxu1 %v8699_v20 }
 0x377   : > { %6492 = vmatprep.subr.bf16.mxu0 %v7210_v5  ;;  %6508 = vmatprep.subr.bf16.mxu1 %v7210_v5 }
 0x378   : > { %6502 = vmatprep.mubr.msk.bf16.mxu0 %vm7211_vm0, %v7210_v5  ;;  %6518 = vmatprep.mubr.msk.bf16.mxu1 %vm7211_vm0, %v7210_v5 }
 0x37a   : > { %6493 = vmatpush3.bf16.msra.mxu0 %v8714_v22  ;;  %6509 = vmatpush3.bf16.msra.mxu1 %v8719_v23  ;;  %v5068_v23 = vld [vmem:[%s9398_s4] ss:$0 sm:$0xff] }
 0x37b   : > { %6494 = vmatprep.subr.bf16.mxu0 %v7210_v5  ;;  %6510 = vmatprep.subr.bf16.mxu1 %v7210_v5 }
 0x37e   : > { %6495 = vmatpush3.bf16.msra.mxu0 %v8732_v24  ;;  %6511 = vmatpush3.bf16.msra.mxu1 %v8737_v25 }
 0x37f   : > { %6496 = vmatprep.subr.bf16.mxu0 %v7210_v5  ;;  %6512 = vmatprep.subr.bf16.mxu1 %v7210_v5 }
 0x382   : > { %6497 = vmatpush3.bf16.msra.mxu0 %v8746_v26  ;;  %6513 = vmatpush3.bf16.msra.mxu1 %v8751_v27 }
 0x383   : > { %6498 = vmatprep.subr.bf16.mxu0 %v7210_v5  ;;  %6514 = vmatprep.subr.bf16.mxu1 %v7210_v5 }
 0x386   : > { %6499 = vmatpush3.bf16.msra.mxu0 %v8760_v28  ;;  %6515 = vmatpush3.bf16.msra.mxu1 %v8765_v37 }
 0x387   : > { %6500 = vmatprep.subr.bf16.mxu0 %v7210_v5  ;;  %6516 = vmatprep.subr.bf16.mxu1 %v7210_v5 }
 0x38a   : > { %6501 = vmatpush3.bf16.msra.mxu0 %v8781_v47  ;;  %6517 = vmatpush3.bf16.msra.mxu1 %v8784_v10  ;;  %v7059_v10 = vld [vmem:[%s9399_s5 + $0x78] sm:$0xff]  }
 0x38b   : > { %6522 = vmatprep.subr.bf16.mxu0 %v7210_v5  ;;  %6538 = vmatprep.subr.bf16.mxu1 %v7210_v5 }
 0x38d   : > { %6503 = vmatmul.mubr.msk.bf16.vlgmr.msra.gmra.mrb[20].mxu0 %vm2675_vm3, %v8897_v38  ;;  %6519 = vmatmul.mubr.msk.bf16.vlgmr.msra.gmra.mrb[20].mxu1 %vm2675_vm3, %v8897_v38  ;;  %v7071_v38 = vld [vmem:[%s9399_s5 + $0xb0] sm:$0xff]  }
 0x38e   : > { %6523 = vmatpush3.bf16.msra.mxu0 %v8792_v46  ;;  %6539 = vmatpush3.bf16.msra.mxu1 %v8797_v48  ;;  %v7060_v48 = vld [vmem:[%s9399_s5 + $0x50] sm:$0xff]  }
 0x38f   : > { %6524 = vmatprep.subr.bf16.mxu0 %v7210_v5  ;;  %6540 = vmatprep.subr.bf16.mxu1 %v7210_v5 }
 0x390   : > { %6534 = vmatprep.mubr.msk.bf16.mxu0 %vm7211_vm0, %v7210_v5  ;;  %6550 = vmatprep.mubr.msk.bf16.mxu1 %vm7211_vm0, %v7210_v5 }
 0x392   : > { %6525 = vmatpush3.bf16.msra.mxu0 %v8812_v50  ;;  %6541 = vmatpush3.bf16.msra.mxu1 %v8817_v51  ;;  %v7061_v50 = vld [vmem:[%s9399_s5 + $0x80] sm:$0xff]   ;;  %v7062_v51 = vld [vmem:[%s9399_s5 + $0x58] sm:$0xff]  }
 0x393   : > { %6526 = vmatprep.subr.bf16.mxu0 %v7210_v5  ;;  %6542 = vmatprep.subr.bf16.mxu1 %v7210_v5 }
 0x396   : > { %6527 = vmatpush3.bf16.msra.mxu0 %v8830_v52  ;;  %6543 = vmatpush3.bf16.msra.mxu1 %v8835_v53  ;;  %v7063_v52 = vld [vmem:[%s9399_s5 + $0x88] sm:$0xff]   ;;  %v7064_v53 = vld [vmem:[%s9399_s5 + $0x60] sm:$0xff]  }
 0x397   : > { %6528 = vmatprep.subr.bf16.mxu0 %v7210_v5  ;;  %6544 = vmatprep.subr.bf16.mxu1 %v7210_v5 }
 0x39a   : > { %6529 = vmatpush3.bf16.msra.mxu0 %v8844_v54  ;;  %6545 = vmatpush3.bf16.msra.mxu1 %v8849_v55  ;;  %v7065_v54 = vld [vmem:[%s9399_s5 + $0x90] sm:$0xff]   ;;  %v7066_v55 = vld [vmem:[%s9399_s5 + $0x68] sm:$0xff]  }
 0x39b   : > { %6530 = vmatprep.subr.bf16.mxu0 %v7210_v5  ;;  %6546 = vmatprep.subr.bf16.mxu1 %v7210_v5 }
 0x39e   : > { %6531 = vmatpush3.bf16.msra.mxu0 %v8858_v56  ;;  %6547 = vmatpush3.bf16.msra.mxu1 %v8863_v57  ;;  %v7067_v56 = vld [vmem:[%s9399_s5 + $0x98] sm:$0xff]   ;;  %v7068_v57 = vld [vmem:[%s9399_s5 + $0x70] sm:$0xff]  }
 0x39f   : > { %6532 = vmatprep.subr.bf16.mxu0 %v7210_v5  ;;  %6548 = vmatprep.subr.bf16.mxu1 %v7210_v5 }
 0x3a2   : > { %6533 = vmatpush3.bf16.msra.mxu0 %v8879_v62  ;;  %6549 = vmatpush3.bf16.msra.mxu1 %v8882_v63  ;;  %v7069_v63 = vld [vmem:[%s9399_s5 + $0xa0] sm:$0xff]  }
 0x3a3   : > { %6554 = vmatprep.subr.bf16.mxu0 %v7210_v5  ;;  %6570 = vmatprep.subr.bf16.mxu1 %v7210_v5 }
 0x3a5   : > { %6535 = vmatmul.mubr.msk.bf16.vlgmr.msra.gmra.mrb[20].mxu0 %vm2675_vm3, %v8984_v43  ;;  %6551 = vmatmul.mubr.msk.bf16.vlgmr.msra.gmra.mrb[20].mxu1 %vm2675_vm3, %v8984_v43 }
 0x3a6   : > { %6555 = vmatpush3.bf16.msra.mxu0 %v8890_v14  ;;  %6571 = vmatpush3.bf16.msra.mxu1 %v8895_v15  ;;  %v7070_v15 = vld [vmem:[%s9399_s5 + $0xa8] sm:$0xff]  }
 0x3a7   : > { %6556 = vmatprep.subr.bf16.mxu0 %v7210_v5  ;;  %6572 = vmatprep.subr.bf16.mxu1 %v7210_v5 }
 0x3a8   : > { %6566 = vmatprep.mubr.msk.bf16.mxu0 %vm7211_vm0, %v7210_v5  ;;  %6582 = vmatprep.mubr.msk.bf16.mxu1 %vm7211_vm0, %v7210_v5 }
 0x3aa   : > { %6557 = vmatpush3.bf16.msra.mxu0 %v8910_v41  ;;  %6573 = vmatpush3.bf16.msra.mxu1 %v8915_v42  ;;  %v7072_v41 = vld [vmem:[%s9399_s5 + $0xb8] sm:$0xff]   ;;  %v7073_v42 = vld [vmem:[%s9399_s5 + $0xc0] sm:$0xff]  }
 0x3ab   : > { %6558 = vmatprep.subr.bf16.mxu0 %v7210_v5  ;;  %6574 = vmatprep.subr.bf16.mxu1 %v7210_v5 }
 0x3ae   : > { %6559 = vmatpush3.bf16.msra.mxu0 %v9420_v29  ;;  %6575 = vmatpush3.bf16.msra.mxu1 %v9421_v6  ;;  %v7080_v29 = vld [vmem:[%s9401_s7 + $0x30] sm:$0xff]   ;;  %v7081_v6 = vld [vmem:[%s9401_s7 + $0x38] sm:$0xff]  }
 0x3af   : > { %6560 = vmatprep.subr.bf16.mxu0 %v7210_v5  ;;  %6576 = vmatprep.subr.bf16.mxu1 %v7210_v5 }
 0x3b2   : > { %6561 = vmatpush3.bf16.msra.mxu0 %v9422_v7  ;;  %6577 = vmatpush3.bf16.msra.mxu1 %v9423_v8  ;;  %v7082_v7 = vld [vmem:[%s9403_s9] sm:$0xff]   ;;  %v7083_v8 = vld [vmem:[%s9403_s9 + $0x8] sm:$0xff]  }
 0x3b3   : > { %6562 = vmatprep.subr.bf16.mxu0 %v7210_v5  ;;  %6578 = vmatprep.subr.bf16.mxu1 %v7210_v5 }
 0x3b6   : > { %6563 = vmatpush3.bf16.msra.mxu0 %v8956_v61  ;;  %6579 = vmatpush3.bf16.msra.mxu1 %v8961_v12  ;;  %v7077_v61 = vld [vmem:[%s9401_s7 + $0x18] sm:$0xff]   ;;  %v7078_v12 = vld [vmem:[%s9401_s7 + $0x20] sm:$0xff]  }
 0x3b7   : > { %6564 = vmatprep.subr.bf16.mxu0 %v7210_v5  ;;  %6580 = vmatprep.subr.bf16.mxu1 %v7210_v5 }
 0x3ba   : > { %6565 = vmatpush3.bf16.msra.mxu0 %v8976_v59  ;;  %6581 = vmatpush3.bf16.msra.mxu1 %v8979_v45  ;;  %v7074_v45 = vld [vmem:[%s9401_s7] sm:$0xff]   ;;  %v7075_v59 = vld [vmem:[%s9401_s7 + $0x8] sm:$0xff]  }
 0x3bb   : > { %6600 = vmatprep.subr.bf16.mxu1 %v7210_v5  ;;  %6586 = vmatprep.subr.bf16.mxu0 %v7210_v5 }
 0x3bd   : > { %6567 = vmatmul.mubr.msk.bf16.vlgmr.msra.gmra.mrb[20].mxu0 %vm2675_vm3, %v3849_v33  ;;  %6583 = vmatmul.mubr.msk.bf16.vlgmr.msra.gmra.mrb[20].mxu1 %vm2675_vm3, %v3849_v33  ;;  %v7086_v33 = vld [vmem:[%s9403_s9 + $0x20] sm:$0xff]  }
 0x3be   : > { %6601 = vmatpush3.bf16.msra.mxu1 %v7049_v16  ;;  %6587 = vmatpush3.bf16.msra.mxu0 %v7050_v31  ;;  %v7084_v16 = vld [vmem:[%s9403_s9 + $0x10] sm:$0xff]   ;;  %v7085_v31 = vld [vmem:[%s9403_s9 + $0x18] sm:$0xff]  }
 0x3bf   : > { %6602 = vmatprep.subr.bf16.mxu1 %v7210_v5  ;;  %6588 = vmatprep.subr.bf16.mxu0 %v7210_v5 }
 0x3c0   : > { %6610 = vmatprep.mubr.msk.bf16.mxu1 %vm7211_vm0, %v7210_v5  ;;  %6596 = vmatprep.mubr.msk.bf16.mxu0 %vm7211_vm0, %v7210_v5 }
 0x3c2   : > { %6603 = vmatpush3.bf16.msra.mxu1 %v7051_v34  ;;  %6589 = vmatpush3.bf16.msra.mxu0 %v7052_v35  ;;  %v7087_v34 = vld [vmem:[%s9403_s9 + $0x28] sm:$0xff]  }
 0x3c3   : > { %6604 = vmatprep.subr.bf16.mxu1 %v7210_v5  ;;  %6590 = vmatprep.subr.bf16.mxu0 %v7210_v5 }
 0x3c6   : > { %6605 = vmatpush3.bf16.msra.mxu1 %v7053_v36  ;;  %6591 = vmatpush3.bf16.msra.mxu0 %v7054_v39 }
 0x3c7   : > { %6606 = vmatprep.subr.bf16.mxu1 %v7210_v5  ;;  %6592 = vmatprep.subr.bf16.mxu0 %v7210_v5 }
 0x3ca   : > { %6607 = vmatpush3.bf16.msra.mxu1 %v7055_v40  ;;  %6593 = vmatpush3.bf16.msra.mxu0 %v7056_v0 }
 0x3cb   : > { %6608 = vmatprep.subr.bf16.mxu1 %v7210_v5  ;;  %6594 = vmatprep.subr.bf16.mxu0 %v7210_v5 }
 0x3ce   : > { %6609 = vmatpush3.bf16.msra.mxu1 %v7057_v1  ;;  %6595 = vmatpush3.bf16.msra.mxu0 %v7058_v2 }
 0x3cf   : > { %6628 = vmatprep.subr.bf16.mxu1 %v7210_v5  ;;  %6614 = vmatprep.subr.bf16.mxu0 %v7210_v5 }
 0x418   : > { %v3427_v3 = vpop.f32.mrb[16].mxu0  ;;  %v3516_v4 = vpop.f32.mrb[16].mxu1 }
 0x419   : > { %v3523_v30 = vmax.f32 %v3427_v3, %v3516_v4  ;;  %v6408_v32 = vpop.f32.mrb[17].mxu0  ;;  %v6424_v44 = vpop.f32.mrb[17].mxu1 }
 0x41a   : > { %v3430_v58 = vpop.f32.mrb[18].mxu0  ;;  %v3519_v9 = vpop.f32.mrb[18].mxu1 }
 0x41b   : > { %v6409_v11 = vpop.f32.mrb[19].mxu0  ;;  %v6425_v17 = vpop.f32.mrb[19].mxu1 }
 0x490   : > { %v3887_v18 = vpop.f32.mrb[20].mxu0  ;;  %v3928_v19 = vpop.f32.mrb[20].mxu1 }
 0x491   : > { %v3935_v20 = vmax.f32 %v3887_v18, %v3928_v19  ;;  %v6568_v21 = vpop.f32.mrb[21].mxu0  ;;  %v6584_v22 = vpop.f32.mrb[21].mxu1 }
 0x492   : > { %v3890_v24 = vpop.f32.mrb[22].mxu0  ;;  %v3931_v25 = vpop.f32.mrb[22].mxu1  ;;  %v4376_v22 = vld [vmem:[%s9400_s6] sm:$0x1] }
 0x493   : > { %v3936_v26 = vmax.f32 %v3523_v30, %v3935_v20  ;;  %v6569_v27 = vpop.f32.mrb[23].mxu0  ;;  %v6585_v28 = vpop.f32.mrb[23].mxu1 }
 0x495   : > { %v3944_v37 = vadd.f32 %v5068_v23, %v3936_v26 }
 0x497   : > { %v3945_v47 = vmax.f32 %v3944_v37, 0.0 }
 0x499   : > { %v3946_v46 = vpack.c.bf16 %v3945_v47, %v3945_v47  ;;  %v7088_v47 = vld [vmem:[%s9403_s9 + $0x30] sm:$0xff]  }
 0x49b   : > { %6611 = vmatmul.mubr.msk.bf16.vlgmr.msra.gmra.mrb[24].mxu1 %vm4001_vm4, %v3946_v46  ;;  %v3969_v49 = vshrl.u32 %v3946_v46, 16  ;;  %v4129_v14 = vrot.slane %v3946_v46, 1  ;;  %v4301_v43 = vrot.slane %v3946_v46, 2  ;;  %v4396_v46 = vld [vmem:[%s9402_s8] sm:$0x1] }
 0x49c   : > { %6629 = vmatpush3.bf16.msra.mxu1 %v7059_v10  ;;  %6638 = vmatprep.mubr.msk.bf16.mxu1 %vm7211_vm0, %v7210_v5  ;;  %v7089_v10 = vld [vmem:[%s9403_s9 + $0x38] sm:$0xff]  }
 0x49d   : > { %6597 = vmatmul.mubr.msk.bf16.vlgmr.msra.gmra.mrb[24].mxu0 %vm4001_vm4, %v3969_v49  ;;  %6630 = vmatprep.subr.bf16.mxu1 %v7210_v5  ;;  %v4215_v62 = vrot.slane %v3969_v49, 1 }
 0x49e   : > { %6615 = vmatpush3.bf16.msra.mxu0 %v7060_v48  ;;  %6624 = vmatprep.mubr.msk.bf16.mxu0 %vm7211_vm0, %v7210_v5 }
 0x49f   : > { %6616 = vmatprep.subr.bf16.mxu0 %v7210_v5 }
 0x4a0   : > { %6631 = vmatpush3.bf16.msra.mxu1 %v7061_v50 }
 0x4a1   : > { %6632 = vmatprep.subr.bf16.mxu1 %v7210_v5 }
 0x4a2   : > { %6617 = vmatpush3.bf16.msra.mxu0 %v7062_v51 }
 0x4a3   : > { %6618 = vmatprep.subr.bf16.mxu0 %v7210_v5 }
 0x4a4   : > { %6633 = vmatpush3.bf16.msra.mxu1 %v7063_v52 }
 0x4a5   : > { %6634 = vmatprep.subr.bf16.mxu1 %v7210_v5 }
 0x4a6   : > { %6619 = vmatpush3.bf16.msra.mxu0 %v7064_v53 }
 0x4a7   : > { %6620 = vmatprep.subr.bf16.mxu0 %v7210_v5 }
 0x4a8   : > { %6635 = vmatpush3.bf16.msra.mxu1 %v7065_v54 }
 0x4a9   : > { %6636 = vmatprep.subr.bf16.mxu1 %v7210_v5 }
 0x4aa   : > { %6621 = vmatpush3.bf16.msra.mxu0 %v7066_v55 }
 0x4ab   : > { %6622 = vmatprep.subr.bf16.mxu0 %v7210_v5 }
 0x4ac   : > { %6637 = vmatpush3.bf16.msra.mxu1 %v7067_v56 }
 0x4ad   : > { %6656 = vmatprep.subr.bf16.mxu1 %v7210_v5 }
 0x4ae   : > { %6623 = vmatpush3.bf16.msra.mxu0 %v7068_v57 }
 0x4af   : > { %6639 = vmatmul.mubr.msk.bf16.vlgmr.msra.gmra.mrb[28].mxu1 %vm4001_vm4, %v4215_v62  ;;  %6642 = vmatprep.subr.bf16.mxu0 %v7210_v5 }
 0x4b0   : > { %6672 = vmatprep.mubr.msk.bf16.mxu1 %vm7211_vm0, %v7210_v5  ;;  %6657 = vmatpush3.bf16.msra.mxu1 %v7074_v45 }
 0x4b1   : > { %6625 = vmatmul.mubr.msk.bf16.vlgmr.msra.gmra.mrb[28].mxu0 %vm4001_vm4, %v4129_v14  ;;  %6658 = vmatprep.subr.bf16.mxu1 %v7210_v5 }
 0x4b2   : > { %6643 = vmatpush3.bf16.msra.mxu0 %v7069_v63  ;;  %6652 = vmatprep.mubr.msk.bf16.mxu0 %vm7211_vm0, %v7210_v5 }
 0x4b3   : > { %6644 = vmatprep.subr.bf16.mxu0 %v7210_v5 }
 0x4b4   : > { %6659 = vmatpush3.bf16.msra.mxu1 %v7075_v59 }
 0x4b5   : > { %6660 = vmatprep.subr.bf16.mxu1 %v7210_v5 }
 0x4b6   : > { %6645 = vmatpush3.bf16.msra.mxu0 %v7070_v15 }
 0x4b7   : > { %6646 = vmatprep.subr.bf16.mxu0 %v7210_v5 }
 0x4b8   : > { %6661 = vmatpush3.bf16.msra.mxu1 %v7076_v60 }
 0x4b9   : > { %6662 = vmatprep.subr.bf16.mxu1 %v7210_v5 }
 0x4ba   : > { %6647 = vmatpush3.bf16.msra.mxu0 %v7071_v38 }
 0x4bb   : > { %6648 = vmatprep.subr.bf16.mxu0 %v7210_v5 }
 0x4bc   : > { %6663 = vmatpush3.bf16.msra.mxu1 %v7077_v61 }
 0x4bd   : > { %6664 = vmatprep.subr.bf16.mxu1 %v7210_v5 }
 0x4be   : > { %6649 = vmatpush3.bf16.msra.mxu0 %v7072_v41 }
 0x4bf   : > { %6650 = vmatprep.subr.bf16.mxu0 %v7210_v5 }
 0x4c0   : > { %6665 = vmatpush3.bf16.msra.mxu1 %v7078_v12 }
 0x4c1   : > { %6666 = vmatprep.subr.bf16.mxu1 %v7210_v5 }
 0x4c2   : > { %6651 = vmatpush3.bf16.msra.mxu0 %v7073_v42 }
 0x4c3   : > { %6676 = vmatprep.subr.bf16.mxu0 %v7210_v5 }
 0x4c4   : > { %6667 = vmatpush3.bf16.msra.mxu1 %v7079_v13 }
 0x4c5   : > { %6653 = vmatmul.mubr.msk.bf16.vlgmr.msra.gmra.mrb[32].mxu0 %vm4001_vm4, %v4301_v43  ;;  %6668 = vmatprep.subr.bf16.mxu1 %v7210_v5 }
 0x4c6   : > { %6692 = vmatprep.mubr.msk.bf16.mxu0 %vm7211_vm0, %v7210_v5  ;;  %6677 = vmatpush3.bf16.msra.mxu0 %v7082_v7 }
 0x4c7   : > { %6678 = vmatprep.subr.bf16.mxu0 %v7210_v5 }
 0x4c8   : > { %6669 = vmatpush3.bf16.msra.mxu1 %v7080_v29 }
 0x4c9   : > { %6670 = vmatprep.subr.bf16.mxu1 %v7210_v5 }
 0x4ca   : > { %6679 = vmatpush3.bf16.msra.mxu0 %v7083_v8 }
 0x4cb   : > { %6680 = vmatprep.subr.bf16.mxu0 %v7210_v5 }
 0x4cc   : > { %6671 = vmatpush3.bf16.msra.mxu1 %v7081_v6 }
 0x4ce   : > { %6681 = vmatpush3.bf16.msra.mxu0 %v7084_v16 }
 0x4cf   : > { %6682 = vmatprep.subr.bf16.mxu0 %v7210_v5 }
 0x4d2   : > { %6683 = vmatpush3.bf16.msra.mxu0 %v7085_v31 }
 0x4d3   : > { %6684 = vmatprep.subr.bf16.mxu0 %v7210_v5 }
 0x4d6   : > { %6685 = vmatpush3.bf16.msra.mxu0 %v7086_v33 }
 0x4d7   : > { %6686 = vmatprep.subr.bf16.mxu0 %v7210_v5 }
 0x4da   : > { %6687 = vmatpush3.bf16.msra.mxu0 %v7087_v34 }
 0x4db   : > { %6688 = vmatprep.subr.bf16.mxu0 %v7210_v5 }
 0x4de   : > { %6689 = vmatpush3.bf16.msra.mxu0 %v7088_v47 }
 0x4df   : > { %6690 = vmatprep.subr.bf16.mxu0 %v7210_v5  ;;  %v4503_v5 = vld [vmem:[%s9404_s10] sm:$0x1] }
 0x4e2   : > { %6691 = vmatpush3.bf16.msra.mxu0 %v7089_v10 }
 0x56e   : > { %v4111_v35 = vpop.f32.mrb[24].mxu1 }
 0x56f   : > { %v6612_v36 = vpop.f32.mrb[25].mxu1 }
 0x570   : > { %v4039_v39 = vpop.f32.mrb[24].mxu0  ;;  %v4114_v40 = vpop.f32.mrb[26].mxu1 }
 0x571   : > { %v4112_v0 = vadd.f32 %v4111_v35, %v4039_v39  ;;  %v6598_v1 = vpop.f32.mrb[25].mxu0  ;;  %v6613_v2 = vpop.f32.mrb[27].mxu1 }
 0x572   : > { %v4042_v3 = vpop.f32.mrb[26].mxu0 }
 0x573   : > { %v6599_v4 = vpop.f32.mrb[27].mxu0 }
 0x582   : > { %v4283_v30 = vpop.f32.mrb[28].mxu1 }
 0x583   : > { %v6640_v32 = vpop.f32.mrb[29].mxu1 }
 0x584   : > { %v4197_v44 = vpop.f32.mrb[28].mxu0  ;;  %v4286_v58 = vpop.f32.mrb[30].mxu1 }
 0x585   : > { %v4203_v9 = vadd.f32 %v4197_v44, %v4112_v0  ;;  %v6626_v11 = vpop.f32.mrb[29].mxu0  ;;  %v6641_v17 = vpop.f32.mrb[31].mxu1 }
 0x586   : > { %v4200_v18 = vpop.f32.mrb[30].mxu0 }
 0x587   : > { %v6627_v19 = vpop.f32.mrb[31].mxu0  ;;  %v4289_v20 = vadd.f32 %v4283_v30, %v4203_v9 }
 0x598   : > { %v4369_v21 = vpop.f32.mrb[32].mxu0 }
 0x599   : > { %v4375_v23 = vadd.f32 %v4369_v21, %v4289_v20  ;;  %v6654_v24 = vpop.f32.mrb[33].mxu0 }
 0x59a   : > { %v4372_v25 = vpop.f32.mrb[34].mxu0 }
 0x59b   : > { %v4377_v26 = vadd.f32 %v4376_v22, %v4375_v23  ;;  %v6655_v27 = vpop.f32.mrb[35].mxu0 }
 0x59d   : > { %v4378_v28 = vmax.f32 %v4377_v26, 0.0 }
 0x59f   : > { %v4379_v37 = vpack.c.bf16 %v4378_v28, %v4378_v28 }
 0x5a1   : > { %6673 = vmatmul.mubr.bf16.vlgmr.msra.gmra.mrb[32].mxu1 %v4379_v37 }
 0x674   : > { %v4479_v48 = vpop.f32.mrb[32].mxu1 }
 0x675   : > { %v4480_v49 = vadd.f32 %v4479_v48, %v4396_v46  ;;  %v6674_v50 = vpop.f32.mrb[33].mxu1 }
 0x676   : > { %v4482_v51 = vpop.f32.mrb[34].mxu1 }
 0x677   : > { %v4485_v52 = vmax.f32 %v4480_v49, 0.0  ;;  %v6675_v53 = vpop.f32.mrb[35].mxu1 }
 0x679   : > { %v4486_v54 = vpack.c.bf16 %v4485_v52, %v4485_v52 }
 0x67b   : > { %6693 = vmatmul.mubr.bf16.vlgmr.msra.gmra.mrb[36].mxu0 %v4486_v54 }
 0x74e   : > { %v4586_v55 = vpop.f32.mrb[36].mxu0 }
 0x74f   : > { %v4587_v56 = vadd.f32 %v4586_v55, %v4503_v5  ;;  %v6694_v57 = vpop.f32.mrb[37].mxu0 }
 0x750   : > { %v4589_v62 = vpop.f32.mrb[38].mxu0 }
 0x751   : > { %4592 = vst [vmem:[%s429_s30] sm:$0x1] %v4587_v56  ;;  %v6695_v63 = vpop.f32.mrb[39].mxu0 }
 0x752   : > { %7159 = shalt.err (!%p7156_p5)
}
 0x753   : > { %s7160_s25 = scalar_lea.hbm %s9350_s16, 16  ;;  %s7164_s14 = scalar_lea.hbm %s9405_s11, 32 }
 0x754   : > { %p7161_p7 = scmp.ne.s32.totalorder %s9350_s16, %s7160_s25  ;;  %p7165_p12 = scmp.lt.u32.totalorder %s9350_s16, %s9405_s11 }
 0x755   : > { %p7166_p13 = scmp.lt.u32.totalorder %s7164_s14, %s7160_s25  ;;  %p7168_p1 = scmp.lt.u32.totalorder %s7160_s25, %s9350_s16 }
 0x756   : > { %p7162_p10 = pnand %p7161_p7, %p7311_p6 }
 0x757   : > { %p7167_p0 = por %p7166_p13, %p7165_p12 }
 0x758   : > { %p7163_p11 = pneg %p7162_p10 }
 0x759   : > { %p7169_p2 = por %p7168_p1, %p7167_p0 }
 0x75b   : > { %p7170_p3 = pnand %p7169_p2, %p7163_p11 }
 0x75d   : > { %7173 = shalt.err (!%p7170_p3)
}
 0x75e   : > { %6888 = dma.vmem_to_hbm [thread:$0]  (%p7311_p6), %s9352_s13, 16, %s9350_s16, %s4594_s22  }
 0x75f PF: > { %s4618_s21 = sand.u32 1, %s7196_s17   ;;  %p6891_p4 = pnand %p4669_p9, %p7315_p8 }
 0x760   : > { %s4619_s15 = scalar_lea.sflag [#allocation4], %s4618_s21 }
 0x761   : > { %7191 = dma.done.wait (!%p6891_p4), %s4619_s15, 16  }
 0x762   : > { %7193 = vsyncadd (!%p6891_p4), %s4619_s15, 4294967280  ;;  %p21_p5 = scmp.ge.s32.totalorder %s7296_s23, 4   ;;  %s9424_s17 = smov %s7200_s18 }
 0x763   : > { %s9425_s18 = smov %s7204_s19  ;;  %s9426_s19 = smov %s7309_s26 }
 0x764   : > { %s9427_s20 = smov %s7296_s23  ;;  %23 = sbr.rel (!%p21_p5) target bundleno = 3 (0x3), region = 167 }
 0x76b   :  { %4623 = vsyncpa [#allocation4], 1 }
 0x76c   :  { %4625 = vsyncpa [#allocation4 + $0x1], 1 }

</bundles_post_ra>
